<compile_context>
chip_gen: v6e
topology: v6e:2x2x1
jax: 0.10.0
libtpu: 0.0.40
codegen_flags: <defaults>
</compile_context>

<pallas_src>
import functools
import math

import jax
import jax.numpy as jnp
from jax import lax
from jax.experimental import pallas as pl
from jax.experimental.pallas import tpu as pltpu


# Safe scoped-VMEM budget across v5e/v6e (128 MiB physical) and v7x (64 MiB).
_VMEM_LIMIT = 32 * 1024 * 1024


def _compiler_params(n_grid_axes):
    return pltpu.CompilerParams(
        dimension_semantics=("parallel",) * n_grid_axes,
        vmem_limit_bytes=_VMEM_LIMIT,
    )


def _row_tile(n):
    """Largest row-tile that tiles n (multiple of 8) else the full extent."""
    for rt in (1024, 512, 256, 128, 64, 32, 16, 8):
        if n % rt == 0:
            return rt
    return n


# ----------------------------------------------------------------------------
# In-kernel helpers (traced inside the Pallas kernels)
# ----------------------------------------------------------------------------
def _layer_norm_rows(x, gamma, beta, *, eps, var_denom):
    """gamma * (x - mean) / sqrt(var_unbiased + eps) + beta, rows of x."""
    mean = jnp.mean(x, axis=-1, keepdims=True)
    diff = x - mean
    var = jnp.sum(diff * diff, axis=-1, keepdims=True) * (1.0 / var_denom)
    return gamma * (diff * lax.rsqrt(var + eps)) + beta


def _mha_heads(q, k, v, mask, *, h, scale):
    """Per-head scaled dot-product attention.

    q: (Sq, d_model), k/v: (Sk, d_model), mask: (Sq, Sk).
    Heads are contiguous lane slices of width d_k; output is (Sq, d_model).
    """
    dm = q.shape[-1]
    dk = dm // h
    outs = []
    for i in range(h):
        qi = q[:, i * dk:(i + 1) * dk]
        ki = k[:, i * dk:(i + 1) * dk]
        vi = v[:, i * dk:(i + 1) * dk]
        # scores = qi @ ki^T   (contract last dims directly, no transpose)
        s = lax.dot_general(qi, ki, (((1,), (1,)), ((), ())),
                            preferred_element_type=jnp.float32) * scale
        s = jnp.where(mask == 0, jnp.float32(-1e9), s)
        s = s - jnp.max(s, axis=-1, keepdims=True)
        p = jnp.exp(s)
        p = p * pl.reciprocal(jnp.sum(p, axis=-1, keepdims=True), approx=True)
        outs.append(jnp.dot(p, vi, preferred_element_type=jnp.float32))
    return jnp.concatenate(outs, axis=-1)


# ----------------------------------------------------------------------------
# Fused sub-layer kernels
# ----------------------------------------------------------------------------
def _self_attn_kernel(x_ref, mask_ref, g_ref, bt_ref, wqkv_ref, bqkv_ref,
                      wo_ref, bo_ref, o_ref, *, h, eps, var_denom):
    """x + W_o(MHA(LN(x))) for one batch element. Dropout = identity."""
    x = x_ref[0].astype(jnp.float32)                          # (Sq, dm)
    dm = x.shape[-1]
    xn = _layer_norm_rows(x, g_ref[...].astype(jnp.float32),
                          bt_ref[...].astype(jnp.float32),
                          eps=eps, var_denom=var_denom)
    qkv = jnp.dot(xn, wqkv_ref[...].astype(jnp.float32),
                  preferred_element_type=jnp.float32)
    qkv = qkv + bqkv_ref[...].astype(jnp.float32)             # (Sq, 3*dm)
    q = qkv[:, 0 * dm:1 * dm]
    k = qkv[:, 1 * dm:2 * dm]
    v = qkv[:, 2 * dm:3 * dm]
    ctx = _mha_heads(q, k, v, mask_ref[0, 0], h=h,
                     scale=1.0 / math.sqrt(dm // h))           # (Sq, dm)
    out = jnp.dot(ctx, wo_ref[...].astype(jnp.float32),
                  preferred_element_type=jnp.float32)
    out = out + bo_ref[...].astype(jnp.float32)
    o_ref[0] = (x + out).astype(o_ref.dtype)


def _cross_attn_kernel(x_ref, enc_ref, mask_ref, g_ref, bt_ref,
                       wq_ref, bq_ref, wkv_ref, bkv_ref, wo_ref, bo_ref,
                       o_ref, *, h, eps, var_denom):
    """x + W_o(MHA(q=LN(x), k=v=enc_out)) for one batch element."""
    x = x_ref[0].astype(jnp.float32)                          # (Sq, dm)
    enc = enc_ref[0].astype(jnp.float32)                      # (Sk, dm)
    dm = x.shape[-1]
    xn = _layer_norm_rows(x, g_ref[...].astype(jnp.float32),
                          bt_ref[...].astype(jnp.float32),
                          eps=eps, var_denom=var_denom)
    q = jnp.dot(xn, wq_ref[...].astype(jnp.float32),
                preferred_element_type=jnp.float32) + bq_ref[...].astype(jnp.float32)
    kv = jnp.dot(enc, wkv_ref[...].astype(jnp.float32),
                 preferred_element_type=jnp.float32) + bkv_ref[...].astype(jnp.float32)
    k = kv[:, :dm]
    v = kv[:, dm:]
    ctx = _mha_heads(q, k, v, mask_ref[0, 0], h=h,
                     scale=1.0 / math.sqrt(dm // h))
    out = jnp.dot(ctx, wo_ref[...].astype(jnp.float32),
                  preferred_element_type=jnp.float32)
    out = out + bo_ref[...].astype(jnp.float32)
    o_ref[0] = (x + out).astype(o_ref.dtype)


def _ffn_kernel(x_ref, g_ref, bt_ref, w1_ref, b1_ref, w2_ref, b2_ref, o_ref,
                *, eps, var_denom):
    """x + W2(relu(W1(LN(x)))) on a tile of rows. Dropout = identity."""
    x = x_ref[...].astype(jnp.float32)                        # (rt, dm)
    xn = _layer_norm_rows(x, g_ref[...].astype(jnp.float32),
                          bt_ref[...].astype(jnp.float32),
                          eps=eps, var_denom=var_denom)
    h1 = jnp.dot(xn, w1_ref[...].astype(jnp.float32),
                 preferred_element_type=jnp.float32) + b1_ref[...].astype(jnp.float32)
    h1 = jnp.maximum(h1, 0.0)
    y = jnp.dot(h1, w2_ref[...].astype(jnp.float32),
                preferred_element_type=jnp.float32) + b2_ref[...].astype(jnp.float32)
    o_ref[...] = (x + y).astype(o_ref.dtype)


def _layernorm_kernel(x_ref, g_ref, bt_ref, o_ref, *, eps, var_denom):
    x = x_ref[...].astype(jnp.float32)
    y = _layer_norm_rows(x, g_ref[...].astype(jnp.float32),
                         bt_ref[...].astype(jnp.float32),
                         eps=eps, var_denom=var_denom)
    o_ref[...] = y.astype(o_ref.dtype)


# ----------------------------------------------------------------------------
# pallas_call wrappers
# ----------------------------------------------------------------------------
def self_attention_sublayer(x, mask, norm_p, attn_p, h, eps=1e-6):
    B, S, dm = x.shape
    Sk = mask.shape[-1]
    grid_spec = pltpu.PrefetchScalarGridSpec(
        num_scalar_prefetch=0,
        grid=(B,),
        in_specs=[
            pl.BlockSpec((1, S, dm), lambda b: (b, 0, 0)),        # x
            pl.BlockSpec((1, 1, S, Sk), lambda b: (0, 0, 0, 0)),  # mask (shared)
            pl.BlockSpec((1, dm), lambda b: (0, 0)),              # gamma
            pl.BlockSpec((1, dm), lambda b: (0, 0)),              # beta
            pl.BlockSpec((dm, 3 * dm), lambda b: (0, 0)),         # Wqkv
            pl.BlockSpec((1, 3 * dm), lambda b: (0, 0)),          # bqkv
            pl.BlockSpec((dm, dm), lambda b: (0, 0)),             # Wo
            pl.BlockSpec((1, dm), lambda b: (0, 0)),              # bo
        ],
        out_specs=pl.BlockSpec((1, S, dm), lambda b: (b, 0, 0)),
    )
    return pl.pallas_call(
        functools.partial(_self_attn_kernel, h=h, eps=eps, var_denom=float(dm - 1)),
        out_shape=jax.ShapeDtypeStruct((B, S, dm), x.dtype),
        grid_spec=grid_spec,
        compiler_params=_compiler_params(1),
    )(x, mask,
      norm_p["gamma"].reshape(1, dm), norm_p["beta"].reshape(1, dm),
      attn_p["wqkv"], attn_p["bqkv"].reshape(1, 3 * dm),
      attn_p["wo"], attn_p["bo"].reshape(1, dm))


def cross_attention_sublayer(x, enc_out, mask, norm_p, attn_p, h, eps=1e-6):
    B, Sq, dm = x.shape
    Sk = enc_out.shape[1]
    grid_spec = pltpu.PrefetchScalarGridSpec(
        num_scalar_prefetch=0,
        grid=(B,),
        in_specs=[
            pl.BlockSpec((1, Sq, dm), lambda b: (b, 0, 0)),        # x
            pl.BlockSpec((1, Sk, dm), lambda b: (b, 0, 0)),        # encoder out
            pl.BlockSpec((1, 1, Sq, Sk), lambda b: (0, 0, 0, 0)),  # mask (shared)
            pl.BlockSpec((1, dm), lambda b: (0, 0)),               # gamma
            pl.BlockSpec((1, dm), lambda b: (0, 0)),               # beta
            pl.BlockSpec((dm, dm), lambda b: (0, 0)),              # Wq
            pl.BlockSpec((1, dm), lambda b: (0, 0)),               # bq
            pl.BlockSpec((dm, 2 * dm), lambda b: (0, 0)),          # Wkv
            pl.BlockSpec((1, 2 * dm), lambda b: (0, 0)),           # bkv
            pl.BlockSpec((dm, dm), lambda b: (0, 0)),              # Wo
            pl.BlockSpec((1, dm), lambda b: (0, 0)),               # bo
        ],
        out_specs=pl.BlockSpec((1, Sq, dm), lambda b: (b, 0, 0)),
    )
    return pl.pallas_call(
        functools.partial(_cross_attn_kernel, h=h, eps=eps, var_denom=float(dm - 1)),
        out_shape=jax.ShapeDtypeStruct((B, Sq, dm), x.dtype),
        grid_spec=grid_spec,
        compiler_params=_compiler_params(1),
    )(x, enc_out, mask,
      norm_p["gamma"].reshape(1, dm), norm_p["beta"].reshape(1, dm),
      attn_p["wq"], attn_p["bq"].reshape(1, dm),
      attn_p["wkv"], attn_p["bkv"].reshape(1, 2 * dm),
      attn_p["wo"], attn_p["bo"].reshape(1, dm))


def ffn_sublayer(x, norm_p, ffn_p, eps=1e-6):
    B, S, dm = x.shape
    n = B * S
    rt = _row_tile(n)
    dff = ffn_p["w1"].shape[1]
    out = pl.pallas_call(
        functools.partial(_ffn_kernel, eps=eps, var_denom=float(dm - 1)),
        out_shape=jax.ShapeDtypeStruct((n, dm), x.dtype),
        grid_spec=pltpu.PrefetchScalarGridSpec(
            num_scalar_prefetch=0,
            grid=(n // rt,),
            in_specs=[
                pl.BlockSpec((rt, dm), lambda i: (i, 0)),
                pl.BlockSpec((1, dm), lambda i: (0, 0)),
                pl.BlockSpec((1, dm), lambda i: (0, 0)),
                pl.BlockSpec((dm, dff), lambda i: (0, 0)),
                pl.BlockSpec((1, dff), lambda i: (0, 0)),
                pl.BlockSpec((dff, dm), lambda i: (0, 0)),
                pl.BlockSpec((1, dm), lambda i: (0, 0)),
            ],
            out_specs=pl.BlockSpec((rt, dm), lambda i: (i, 0)),
        ),
        compiler_params=_compiler_params(1),
    )(x.reshape(n, dm),
      norm_p["gamma"].reshape(1, dm), norm_p["beta"].reshape(1, dm),
      ffn_p["w1"], ffn_p["b1"].reshape(1, dff),
      ffn_p["w2"], ffn_p["b2"].reshape(1, dm))
    return out.reshape(B, S, dm)


def layer_norm(x, norm_p, eps=1e-6):
    B, S, dm = x.shape
    n = B * S
    rt = _row_tile(n)
    out = pl.pallas_call(
        functools.partial(_layernorm_kernel, eps=eps, var_denom=float(dm - 1)),
        out_shape=jax.ShapeDtypeStruct((n, dm), x.dtype),
        grid_spec=pltpu.PrefetchScalarGridSpec(
            num_scalar_prefetch=0,
            grid=(n // rt,),
            in_specs=[
                pl.BlockSpec((rt, dm), lambda i: (i, 0)),
                pl.BlockSpec((1, dm), lambda i: (0, 0)),
                pl.BlockSpec((1, dm), lambda i: (0, 0)),
            ],
            out_specs=pl.BlockSpec((rt, dm), lambda i: (i, 0)),
        ),
        compiler_params=_compiler_params(1),
    )(x.reshape(n, dm), norm_p["gamma"].reshape(1, dm), norm_p["beta"].reshape(1, dm))
    return out.reshape(B, S, dm)


# ----------------------------------------------------------------------------
# Decoder (3 fused kernel launches per block + 1 final LayerNorm)
# ----------------------------------------------------------------------------
def decoder_block(x, enc_out, src_mask, tgt_mask, p, h):
    x = self_attention_sublayer(x, tgt_mask, p["norm0"], p["self_attn"], h)
    x = cross_attention_sublayer(x, enc_out, src_mask, p["norm1"], p["cross_attn"], h)
    x = ffn_sublayer(x, p["norm2"], p["ffn"])
    return x


def decoder_forward(x, enc_out, src_mask, tgt_mask, params, h):
    for layer_p in params["layers"]:
        x = decoder_block(x, enc_out, src_mask, tgt_mask, layer_p, h)
    return layer_norm(x, params["final_norm"])


# ----------------------------------------------------------------------------
# Deterministic parameter init (nn.Linear weight (out,in) stored transposed;
# Q/K/V projections fused along the output axis for the kernel).
# ----------------------------------------------------------------------------
def init_linear(key, d_in, d_out):
    kw, kb = jax.random.split(key)
    w = jax.random.normal(kw, (d_in, d_out), jnp.float32) * 0.05
    b = jax.random.normal(kb, (d_out,), jnp.float32) * 0.02
    return w, b


def init_self_attn(key, d_model):
    ks = jax.random.split(key, 4)
    wq, bq = init_linear(ks[0], d_model, d_model)
    wk, bk = init_linear(ks[1], d_model, d_model)
    wv, bv = init_linear(ks[2], d_model, d_model)
    wo, bo = init_linear(ks[3], d_model, d_model)
    return {"wqkv": jnp.concatenate([wq, wk, wv], axis=1),
            "bqkv": jnp.concatenate([bq, bk, bv], axis=0),
            "wo": wo, "bo": bo}


def init_cross_attn(key, d_model):
    ks = jax.random.split(key, 4)
    wq, bq = init_linear(ks[0], d_model, d_model)
    wk, bk = init_linear(ks[1], d_model, d_model)
    wv, bv = init_linear(ks[2], d_model, d_model)
    wo, bo = init_linear(ks[3], d_model, d_model)
    return {"wq": wq, "bq": bq,
            "wkv": jnp.concatenate([wk, wv], axis=1),
            "bkv": jnp.concatenate([bk, bv], axis=0),
            "wo": wo, "bo": bo}


def init_norm(d_model):
    return {"gamma": jnp.ones((d_model,), jnp.float32),
            "beta": jnp.zeros((d_model,), jnp.float32)}


def init_decoder(key, n_layers, d_model, d_ff):
    layers = []
    for _ in range(n_layers):
        k0, k1, k2, k3, key = jax.random.split(key, 5)
        w1, b1 = init_linear(k2, d_model, d_ff)
        w2, b2 = init_linear(k3, d_ff, d_model)
        layers.append({
            "self_attn": init_self_attn(k0, d_model),
            "cross_attn": init_cross_attn(k1, d_model),
            "ffn": {"w1": w1, "b1": b1, "w2": w2, "b2": b2},
            "norm0": init_norm(d_model),
            "norm1": init_norm(d_model),
            "norm2": init_norm(d_model),
        })
    return {"layers": layers, "final_norm": init_norm(d_model)}


# ----------------------------------------------------------------------------
if __name__ == "__main__":
    B, S_dec, S_enc = 2, 8, 8
    d_model, h, d_ff, n_layers = 32, 4, 64, 2

    key = jax.random.PRNGKey(0)
    kx, ke, kp = jax.random.split(key, 3)

    x = jax.random.normal(kx, (B, S_dec, d_model), jnp.float32)
    enc_out = jax.random.normal(ke, (B, S_enc, d_model), jnp.float32)

    # causal target mask, all-ones source mask (broadcast over batch & heads)
    tgt_mask = jnp.tril(jnp.ones((S_dec, S_dec), jnp.float32))[None, None]  # (1,1,S,S)
    src_mask = jnp.ones((1, 1, S_dec, S_enc), jnp.float32)

    params = init_decoder(kp, n_layers, d_model, d_ff)

    fwd = jax.jit(functools.partial(decoder_forward, h=h))
    out = fwd(x, enc_out, src_mask, tgt_mask, params)
    out = jax.block_until_ready(out)

    assert out.shape == (B, S_dec, d_model)
    assert bool(jnp.all(jnp.isfinite(out)))
    print("KERNEL_OK")
</pallas_src>

<mosaic_0001>
module attributes {stable_mosaic.version = 11 : i64} {
  func.func @_ffn_kernel(%arg0: i32, %arg1: memref<16x32xf32, #tpu.memory_space<vmem>>, %arg2: memref<1x32xf32, #tpu.memory_space<vmem>>, %arg3: memref<1x32xf32, #tpu.memory_space<vmem>>, %arg4: memref<32x64xf32, #tpu.memory_space<vmem>>, %arg5: memref<1x64xf32, #tpu.memory_space<vmem>>, %arg6: memref<64x32xf32, #tpu.memory_space<vmem>>, %arg7: memref<1x32xf32, #tpu.memory_space<vmem>>, %arg8: memref<16x32xf32, #tpu.memory_space<vmem>>) attributes {dimension_semantics = [#tpu.dimension_semantics<parallel>], iteration_bounds = array<i64: 1>, scalar_prefetch = 0 : i64, scratch_operands = 0 : i64, tpu.core_type = #tpu.core_type<tc>, window_params = [{transform_indices = @transform_0, window_bounds = array<i64: 16, 32>}, {pipeline_mode = #tpu.pipeline_mode<synchronous>, transform_indices = @transform_1, window_bounds = array<i64: 1, 32>}, {pipeline_mode = #tpu.pipeline_mode<synchronous>, transform_indices = @transform_2, window_bounds = array<i64: 1, 32>}, {pipeline_mode = #tpu.pipeline_mode<synchronous>, transform_indices = @transform_3, window_bounds = array<i64: 32, 64>}, {pipeline_mode = #tpu.pipeline_mode<synchronous>, transform_indices = @transform_4, window_bounds = array<i64: 1, 64>}, {pipeline_mode = #tpu.pipeline_mode<synchronous>, transform_indices = @transform_5, window_bounds = array<i64: 64, 32>}, {pipeline_mode = #tpu.pipeline_mode<synchronous>, transform_indices = @transform_6, window_bounds = array<i64: 1, 32>}, {transform_indices = @transform_7, window_bounds = array<i64: 16, 32>}]} {
    %c0 = arith.constant 0 : index
    %c0_0 = arith.constant 0 : index
    %0 = vector.load %arg1[%c0, %c0_0] : memref<16x32xf32, #tpu.memory_space<vmem>>, vector<16x32xf32>
    %c0_1 = arith.constant 0 : index
    %c0_2 = arith.constant 0 : index
    %1 = vector.load %arg2[%c0_1, %c0_2] : memref<1x32xf32, #tpu.memory_space<vmem>>, vector<1x32xf32>
    %c0_3 = arith.constant 0 : index
    %c0_4 = arith.constant 0 : index
    %2 = vector.load %arg3[%c0_3, %c0_4] : memref<1x32xf32, #tpu.memory_space<vmem>>, vector<1x32xf32>
    %cst = arith.constant dense<0.000000e+00> : vector<16xf32>
    %3 = vector.multi_reduction <add>, %0, %cst [1] : vector<16x32xf32> to vector<16xf32>
    %4 = vector.shape_cast %3 : vector<16xf32> to vector<16x1xf32>
    %cst_5 = arith.constant 3.200000e+01 : f32
    %5 = vector.broadcast %cst_5 : f32 to vector<16x1xf32>
    %6 = arith.divf %4, %5 : vector<16x1xf32>
    %7 = vector.broadcast %6 : vector<16x1xf32> to vector<16x32xf32>
    %8 = arith.subf %0, %7 : vector<16x32xf32>
    %9 = arith.mulf %8, %8 : vector<16x32xf32>
    %cst_6 = arith.constant dense<0.000000e+00> : vector<16xf32>
    %10 = vector.multi_reduction <add>, %9, %cst_6 [1] : vector<16x32xf32> to vector<16xf32>
    %11 = vector.shape_cast %10 : vector<16xf32> to vector<16x1xf32>
    %cst_7 = arith.constant 0.0322580636 : f32
    %12 = vector.broadcast %cst_7 : f32 to vector<16x1xf32>
    %13 = arith.mulf %11, %12 : vector<16x1xf32>
    %cst_8 = arith.constant 9.99999997E-7 : f32
    %14 = vector.broadcast %cst_8 : f32 to vector<16x1xf32>
    %15 = arith.addf %13, %14 : vector<16x1xf32>
    %16 = math.rsqrt %15 : vector<16x1xf32>
    %17 = vector.broadcast %16 : vector<16x1xf32> to vector<16x32xf32>
    %18 = arith.mulf %8, %17 : vector<16x32xf32>
    %19 = vector.broadcast %1 : vector<1x32xf32> to vector<16x32xf32>
    %20 = arith.mulf %19, %18 : vector<16x32xf32>
    %21 = vector.broadcast %2 : vector<1x32xf32> to vector<16x32xf32>
    %22 = arith.addf %20, %21 : vector<16x32xf32>
    %c0_9 = arith.constant 0 : index
    %c0_10 = arith.constant 0 : index
    %23 = vector.load %arg4[%c0_9, %c0_10] : memref<32x64xf32, #tpu.memory_space<vmem>>, vector<32x64xf32>
    %cst_11 = arith.constant dense<0.000000e+00> : vector<16x64xf32>
    %24 = tpu.matmul %22, %23, %cst_11 {dimension_numbers = #tpu.dot_dimension_numbers<[1], [0], [0], [1], [0, 0, 1, 1], [], []>} : vector<16x32xf32>, vector<32x64xf32>, vector<16x64xf32> -> vector<16x64xf32>
    %c0_12 = arith.constant 0 : index
    %c0_13 = arith.constant 0 : index
    %25 = vector.load %arg5[%c0_12, %c0_13] : memref<1x64xf32, #tpu.memory_space<vmem>>, vector<1x64xf32>
    %26 = vector.broadcast %25 : vector<1x64xf32> to vector<16x64xf32>
    %27 = arith.addf %24, %26 : vector<16x64xf32>
    %cst_14 = arith.constant 0.000000e+00 : f32
    %28 = vector.broadcast %cst_14 : f32 to vector<16x64xf32>
    %29 = arith.maximumf %27, %28 : vector<16x64xf32>
    %c0_15 = arith.constant 0 : index
    %c0_16 = arith.constant 0 : index
    %30 = vector.load %arg6[%c0_15, %c0_16] : memref<64x32xf32, #tpu.memory_space<vmem>>, vector<64x32xf32>
    %cst_17 = arith.constant dense<0.000000e+00> : vector<16x32xf32>
    %31 = tpu.matmul %29, %30, %cst_17 {dimension_numbers = #tpu.dot_dimension_numbers<[1], [0], [0], [1], [0, 0, 1, 1], [], []>} : vector<16x64xf32>, vector<64x32xf32>, vector<16x32xf32> -> vector<16x32xf32>
    %c0_18 = arith.constant 0 : index
    %c0_19 = arith.constant 0 : index
    %32 = vector.load %arg7[%c0_18, %c0_19] : memref<1x32xf32, #tpu.memory_space<vmem>>, vector<1x32xf32>
    %33 = vector.broadcast %32 : vector<1x32xf32> to vector<16x32xf32>
    %34 = arith.addf %31, %33 : vector<16x32xf32>
    %35 = arith.addf %0, %34 : vector<16x32xf32>
    %c0_20 = arith.constant 0 : index
    %c0_21 = arith.constant 0 : index
    %36 = vector.load %arg8[%c0_20, %c0_21] : memref<16x32xf32, #tpu.memory_space<vmem>>, vector<16x32xf32>
    tpu.vector_store %arg8[%c0_20, %c0_21], %35 {strides = array<i32>} : memref<16x32xf32, #tpu.memory_space<vmem>>, vector<16x32xf32>,
    return
  }
  func.func @transform_0(%arg0: i32) -> (i32, i32) {
    %c0_i32 = arith.constant 0 : i32
    %c0_i32_0 = arith.constant 0 : i32
    return %arg0, %c0_i32 : i32, i32
  }
  func.func @transform_1(%arg0: i32) -> (i32, i32) {
    %c0_i32 = arith.constant 0 : i32
    %c0_i32_0 = arith.constant 0 : i32
    %c0_i32_1 = arith.constant 0 : i32
    return %c0_i32, %c0_i32_0 : i32, i32
  }
  func.func @transform_2(%arg0: i32) -> (i32, i32) {
    %c0_i32 = arith.constant 0 : i32
    %c0_i32_0 = arith.constant 0 : i32
    %c0_i32_1 = arith.constant 0 : i32
    return %c0_i32, %c0_i32_0 : i32, i32
  }
  func.func @transform_3(%arg0: i32) -> (i32, i32) {
    %c0_i32 = arith.constant 0 : i32
    %c0_i32_0 = arith.constant 0 : i32
    %c0_i32_1 = arith.constant 0 : i32
    return %c0_i32, %c0_i32_0 : i32, i32
  }
  func.func @transform_4(%arg0: i32) -> (i32, i32) {
    %c0_i32 = arith.constant 0 : i32
    %c0_i32_0 = arith.constant 0 : i32
    %c0_i32_1 = arith.constant 0 : i32
    return %c0_i32, %c0_i32_0 : i32, i32
  }
  func.func @transform_5(%arg0: i32) -> (i32, i32) {
    %c0_i32 = arith.constant 0 : i32
    %c0_i32_0 = arith.constant 0 : i32
    %c0_i32_1 = arith.constant 0 : i32
    return %c0_i32, %c0_i32_0 : i32, i32
  }
  func.func @transform_6(%arg0: i32) -> (i32, i32) {
    %c0_i32 = arith.constant 0 : i32
    %c0_i32_0 = arith.constant 0 : i32
    %c0_i32_1 = arith.constant 0 : i32
    return %c0_i32, %c0_i32_0 : i32, i32
  }
  func.func @transform_7(%arg0: i32) -> (i32, i32) {
    %c0_i32 = arith.constant 0 : i32
    %c0_i32_0 = arith.constant 0 : i32
    return %arg0, %c0_i32 : i32, i32
  }
}

module attributes {stable_mosaic.version = 11 : i64} {
  func.func @_self_attn_kernel(%arg0: i32, %arg1: memref<1x8x32xf32, #tpu.memory_space<vmem>>, %arg2: memref<1x1x8x8xf32, #tpu.memory_space<vmem>>, %arg3: memref<1x32xf32, #tpu.memory_space<vmem>>, %arg4: memref<1x32xf32, #tpu.memory_space<vmem>>, %arg5: memref<32x96xf32, #tpu.memory_space<vmem>>, %arg6: memref<1x96xf32, #tpu.memory_space<vmem>>, %arg7: memref<32x32xf32, #tpu.memory_space<vmem>>, %arg8: memref<1x32xf32, #tpu.memory_space<vmem>>, %arg9: memref<1x8x32xf32, #tpu.memory_space<vmem>>) attributes {dimension_semantics = [#tpu.dimension_semantics<parallel>], iteration_bounds = array<i64: 2>, scalar_prefetch = 0 : i64, scratch_operands = 0 : i64, tpu.core_type = #tpu.core_type<tc>, window_params = [{transform_indices = @transform_0, window_bounds = array<i64: 1, 8, 32>}, {pipeline_mode = #tpu.pipeline_mode<synchronous>, transform_indices = @transform_1, window_bounds = array<i64: 1, 1, 8, 8>}, {pipeline_mode = #tpu.pipeline_mode<synchronous>, transform_indices = @transform_2, window_bounds = array<i64: 1, 32>}, {pipeline_mode = #tpu.pipeline_mode<synchronous>, transform_indices = @transform_3, window_bounds = array<i64: 1, 32>}, {pipeline_mode = #tpu.pipeline_mode<synchronous>, transform_indices = @transform_4, window_bounds = array<i64: 32, 96>}, {pipeline_mode = #tpu.pipeline_mode<synchronous>, transform_indices = @transform_5, window_bounds = array<i64: 1, 96>}, {pipeline_mode = #tpu.pipeline_mode<synchronous>, transform_indices = @transform_6, window_bounds = array<i64: 32, 32>}, {pipeline_mode = #tpu.pipeline_mode<synchronous>, transform_indices = @transform_7, window_bounds = array<i64: 1, 32>}, {transform_indices = @transform_8, window_bounds = array<i64: 1, 8, 32>}]} {
    %c0 = arith.constant 0 : index
    %c0_0 = arith.constant 0 : index
    %c0_1 = arith.constant 0 : index
    %0 = vector.load %arg1[%c0, %c0_0, %c0_1] : memref<1x8x32xf32, #tpu.memory_space<vmem>>, vector<1x8x32xf32>
    %1 = vector.shape_cast %0 : vector<1x8x32xf32> to vector<8x32xf32>
    %c0_2 = arith.constant 0 : index
    %c0_3 = arith.constant 0 : index
    %2 = vector.load %arg3[%c0_2, %c0_3] : memref<1x32xf32, #tpu.memory_space<vmem>>, vector<1x32xf32>
    %c0_4 = arith.constant 0 : index
    %c0_5 = arith.constant 0 : index
    %3 = vector.load %arg4[%c0_4, %c0_5] : memref<1x32xf32, #tpu.memory_space<vmem>>, vector<1x32xf32>
    %cst = arith.constant dense<0.000000e+00> : vector<8xf32>
    %4 = vector.multi_reduction <add>, %1, %cst [1] : vector<8x32xf32> to vector<8xf32>
    %5 = vector.shape_cast %4 : vector<8xf32> to vector<8x1xf32>
    %cst_6 = arith.constant 3.200000e+01 : f32
    %6 = vector.broadcast %cst_6 : f32 to vector<8x1xf32>
    %7 = arith.divf %5, %6 : vector<8x1xf32>
    %8 = vector.broadcast %7 : vector<8x1xf32> to vector<8x32xf32>
    %9 = arith.subf %1, %8 : vector<8x32xf32>
    %10 = arith.mulf %9, %9 : vector<8x32xf32>
    %cst_7 = arith.constant dense<0.000000e+00> : vector<8xf32>
    %11 = vector.multi_reduction <add>, %10, %cst_7 [1] : vector<8x32xf32> to vector<8xf32>
    %12 = vector.shape_cast %11 : vector<8xf32> to vector<8x1xf32>
    %cst_8 = arith.constant 0.0322580636 : f32
    %13 = vector.broadcast %cst_8 : f32 to vector<8x1xf32>
    %14 = arith.mulf %12, %13 : vector<8x1xf32>
    %cst_9 = arith.constant 9.99999997E-7 : f32
    %15 = vector.broadcast %cst_9 : f32 to vector<8x1xf32>
    %16 = arith.addf %14, %15 : vector<8x1xf32>
    %17 = math.rsqrt %16 : vector<8x1xf32>
    %18 = vector.broadcast %17 : vector<8x1xf32> to vector<8x32xf32>
    %19 = arith.mulf %9, %18 : vector<8x32xf32>
    %20 = vector.broadcast %2 : vector<1x32xf32> to vector<8x32xf32>
    %21 = arith.mulf %20, %19 : vector<8x32xf32>
    %22 = vector.broadcast %3 : vector<1x32xf32> to vector<8x32xf32>
    %23 = arith.addf %21, %22 : vector<8x32xf32>
    %c0_10 = arith.constant 0 : index
    %c0_11 = arith.constant 0 : index
    %24 = vector.load %arg5[%c0_10, %c0_11] : memref<32x96xf32, #tpu.memory_space<vmem>>, vector<32x96xf32>
    %cst_12 = arith.constant dense<0.000000e+00> : vector<8x96xf32>
    %25 = tpu.matmul %23, %24, %cst_12 {dimension_numbers = #tpu.dot_dimension_numbers<[1], [0], [0], [1], [0, 0, 1, 1], [], []>} : vector<8x32xf32>, vector<32x96xf32>, vector<8x96xf32> -> vector<8x96xf32>
    %c0_13 = arith.constant 0 : index
    %c0_14 = arith.constant 0 : index
    %26 = vector.load %arg6[%c0_13, %c0_14] : memref<1x96xf32, #tpu.memory_space<vmem>>, vector<1x96xf32>
    %27 = vector.broadcast %26 : vector<1x96xf32> to vector<8x96xf32>
    %28 = arith.addf %25, %27 : vector<8x96xf32>
    %29 = vector.extract_strided_slice %28 {offsets = [0, 0], sizes = [8, 32], strides = [1, 1]} : vector<8x96xf32> to vector<8x32xf32>
    %30 = vector.extract_strided_slice %28 {offsets = [0, 32], sizes = [8, 32], strides = [1, 1]} : vector<8x96xf32> to vector<8x32xf32>
    %31 = vector.extract_strided_slice %28 {offsets = [0, 64], sizes = [8, 32], strides = [1, 1]} : vector<8x96xf32> to vector<8x32xf32>
    %c0_15 = arith.constant 0 : index
    %c0_16 = arith.constant 0 : index
    %c0_17 = arith.constant 0 : index
    %c0_18 = arith.constant 0 : index
    %32 = vector.load %arg2[%c0_15, %c0_16, %c0_17, %c0_18] : memref<1x1x8x8xf32, #tpu.memory_space<vmem>>, vector<1x1x8x8xf32>
    %33 = vector.shape_cast %32 : vector<1x1x8x8xf32> to vector<8x8xf32>
    %34 = vector.extract_strided_slice %29 {offsets = [0, 0], sizes = [8, 8], strides = [1, 1]} : vector<8x32xf32> to vector<8x8xf32>
    %35 = vector.extract_strided_slice %30 {offsets = [0, 0], sizes = [8, 8], strides = [1, 1]} : vector<8x32xf32> to vector<8x8xf32>
    %36 = vector.extract_strided_slice %31 {offsets = [0, 0], sizes = [8, 8], strides = [1, 1]} : vector<8x32xf32> to vector<8x8xf32>
    %cst_19 = arith.constant dense<0.000000e+00> : vector<8x8xf32>
    %37 = tpu.matmul %34, %35, %cst_19 {dimension_numbers = #tpu.dot_dimension_numbers<[1], [1], [0], [0], [0, 0, 1, 0], [], []>} : vector<8x8xf32>, vector<8x8xf32>, vector<8x8xf32> -> vector<8x8xf32>
    %cst_20 = arith.constant 0.353553385 : f32
    %38 = vector.broadcast %cst_20 : f32 to vector<8x8xf32>
    %39 = arith.mulf %37, %38 : vector<8x8xf32>
    %cst_21 = arith.constant 0.000000e+00 : f32
    %40 = vector.broadcast %cst_21 : f32 to vector<8x8xf32>
    %41 = arith.cmpf oeq, %33, %40 : vector<8x8xf32>
    %cst_22 = arith.constant -1.000000e+09 : f32
    %42 = vector.broadcast %cst_22 : f32 to vector<8x8xf32>
    %43 = arith.select %41, %42, %39 : vector<8x8xi1>, vector<8x8xf32>
    %cst_23 = arith.constant dense<0xFF800000> : vector<8xf32>
    %44 = vector.multi_reduction <maximumf>, %43, %cst_23 [1] : vector<8x8xf32> to vector<8xf32>
    %45 = vector.shape_cast %44 : vector<8xf32> to vector<8x1xf32>
    %46 = vector.broadcast %45 : vector<8x1xf32> to vector<8x8xf32>
    %47 = arith.subf %43, %46 : vector<8x8xf32>
    %48 = math.exp %47 : vector<8x8xf32>
    %cst_24 = arith.constant dense<0.000000e+00> : vector<8xf32>
    %49 = vector.multi_reduction <add>, %48, %cst_24 [1] : vector<8x8xf32> to vector<8xf32>
    %50 = vector.shape_cast %49 : vector<8xf32> to vector<8x1xf32>
    %51 = tpu.reciprocal %50 {approx = true} : vector<8x1xf32> -> vector<8x1xf32>
    %52 = vector.broadcast %51 : vector<8x1xf32> to vector<8x8xf32>
    %53 = arith.mulf %48, %52 : vector<8x8xf32>
    %cst_25 = arith.constant dense<0.000000e+00> : vector<8x8xf32>
    %54 = tpu.matmul %53, %36, %cst_25 {dimension_numbers = #tpu.dot_dimension_numbers<[1], [0], [0], [1], [0, 0, 1, 1], [], []>} : vector<8x8xf32>, vector<8x8xf32>, vector<8x8xf32> -> vector<8x8xf32>
    %55 = vector.extract_strided_slice %29 {offsets = [0, 8], sizes = [8, 8], strides = [1, 1]} : vector<8x32xf32> to vector<8x8xf32>
    %56 = vector.extract_strided_slice %30 {offsets = [0, 8], sizes = [8, 8], strides = [1, 1]} : vector<8x32xf32> to vector<8x8xf32>
    %57 = vector.extract_strided_slice %31 {offsets = [0, 8], sizes = [8, 8], strides = [1, 1]} : vector<8x32xf32> to vector<8x8xf32>
    %cst_26 = arith.constant dense<0.000000e+00> : vector<8x8xf32>
    %58 = tpu.matmul %55, %56, %cst_26 {dimension_numbers = #tpu.dot_dimension_numbers<[1], [1], [0], [0], [0, 0, 1, 0], [], []>} : vector<8x8xf32>, vector<8x8xf32>, vector<8x8xf32> -> vector<8x8xf32>
    %cst_27 = arith.constant 0.353553385 : f32
    %59 = vector.broadcast %cst_27 : f32 to vector<8x8xf32>
    %60 = arith.mulf %58, %59 : vector<8x8xf32>
    %cst_28 = arith.constant 0.000000e+00 : f32
    %61 = vector.broadcast %cst_28 : f32 to vector<8x8xf32>
    %62 = arith.cmpf oeq, %33, %61 : vector<8x8xf32>
    %cst_29 = arith.constant -1.000000e+09 : f32
    %63 = vector.broadcast %cst_29 : f32 to vector<8x8xf32>
    %64 = arith.select %62, %63, %60 : vector<8x8xi1>, vector<8x8xf32>
    %cst_30 = arith.constant dense<0xFF800000> : vector<8xf32>
    %65 = vector.multi_reduction <maximumf>, %64, %cst_30 [1] : vector<8x8xf32> to vector<8xf32>
    %66 = vector.shape_cast %65 : vector<8xf32> to vector<8x1xf32>
    %67 = vector.broadcast %66 : vector<8x1xf32> to vector<8x8xf32>
    %68 = arith.subf %64, %67 : vector<8x8xf32>
    %69 = math.exp %68 : vector<8x8xf32>
    %cst_31 = arith.constant dense<0.000000e+00> : vector<8xf32>
    %70 = vector.multi_reduction <add>, %69, %cst_31 [1] : vector<8x8xf32> to vector<8xf32>
    %71 = vector.shape_cast %70 : vector<8xf32> to vector<8x1xf32>
    %72 = tpu.reciprocal %71 {approx = true} : vector<8x1xf32> -> vector<8x1xf32>
    %73 = vector.broadcast %72 : vector<8x1xf32> to vector<8x8xf32>
    %74 = arith.mulf %69, %73 : vector<8x8xf32>
    %cst_32 = arith.constant dense<0.000000e+00> : vector<8x8xf32>
    %75 = tpu.matmul %74, %57, %cst_32 {dimension_numbers = #tpu.dot_dimension_numbers<[1], [0], [0], [1], [0, 0, 1, 1], [], []>} : vector<8x8xf32>, vector<8x8xf32>, vector<8x8xf32> -> vector<8x8xf32>
    %76 = vector.extract_strided_slice %29 {offsets = [0, 16], sizes = [8, 8], strides = [1, 1]} : vector<8x32xf32> to vector<8x8xf32>
    %77 = vector.extract_strided_slice %30 {offsets = [0, 16], sizes = [8, 8], strides = [1, 1]} : vector<8x32xf32> to vector<8x8xf32>
    %78 = vector.extract_strided_slice %31 {offsets = [0, 16], sizes = [8, 8], strides = [1, 1]} : vector<8x32xf32> to vector<8x8xf32>
    %cst_33 = arith.constant dense<0.000000e+00> : vector<8x8xf32>
    %79 = tpu.matmul %76, %77, %cst_33 {dimension_numbers = #tpu.dot_dimension_numbers<[1], [1], [0], [0], [0, 0, 1, 0], [], []>} : vector<8x8xf32>, vector<8x8xf32>, vector<8x8xf32> -> vector<8x8xf32>
    %cst_34 = arith.constant 0.353553385 : f32
    %80 = vector.broadcast %cst_34 : f32 to vector<8x8xf32>
    %81 = arith.mulf %79, %80 : vector<8x8xf32>
    %cst_35 = arith.constant 0.000000e+00 : f32
    %82 = vector.broadcast %cst_35 : f32 to vector<8x8xf32>
    %83 = arith.cmpf oeq, %33, %82 : vector<8x8xf32>
    %cst_36 = arith.constant -1.000000e+09 : f32
    %84 = vector.broadcast %cst_36 : f32 to vector<8x8xf32>
    %85 = arith.select %83, %84, %81 : vector<8x8xi1>, vector<8x8xf32>
    %cst_37 = arith.constant dense<0xFF800000> : vector<8xf32>
    %86 = vector.multi_reduction <maximumf>, %85, %cst_37 [1] : vector<8x8xf32> to vector<8xf32>
    %87 = vector.shape_cast %86 : vector<8xf32> to vector<8x1xf32>
    %88 = vector.broadcast %87 : vector<8x1xf32> to vector<8x8xf32>
    %89 = arith.subf %85, %88 : vector<8x8xf32>
    %90 = math.exp %89 : vector<8x8xf32>
    %cst_38 = arith.constant dense<0.000000e+00> : vector<8xf32>
    %91 = vector.multi_reduction <add>, %90, %cst_38 [1] : vector<8x8xf32> to vector<8xf32>
    %92 = vector.shape_cast %91 : vector<8xf32> to vector<8x1xf32>
    %93 = tpu.reciprocal %92 {approx = true} : vector<8x1xf32> -> vector<8x1xf32>
    %94 = vector.broadcast %93 : vector<8x1xf32> to vector<8x8xf32>
    %95 = arith.mulf %90, %94 : vector<8x8xf32>
    %cst_39 = arith.constant dense<0.000000e+00> : vector<8x8xf32>
    %96 = tpu.matmul %95, %78, %cst_39 {dimension_numbers = #tpu.dot_dimension_numbers<[1], [0], [0], [1], [0, 0, 1, 1], [], []>} : vector<8x8xf32>, vector<8x8xf32>, vector<8x8xf32> -> vector<8x8xf32>
    %97 = vector.extract_strided_slice %29 {offsets = [0, 24], sizes = [8, 8], strides = [1, 1]} : vector<8x32xf32> to vector<8x8xf32>
    %98 = vector.extract_strided_slice %30 {offsets = [0, 24], sizes = [8, 8], strides = [1, 1]} : vector<8x32xf32> to vector<8x8xf32>
    %99 = vector.extract_strided_slice %31 {offsets = [0, 24], sizes = [8, 8], strides = [1, 1]} : vector<8x32xf32> to vector<8x8xf32>
    %cst_40 = arith.constant dense<0.000000e+00> : vector<8x8xf32>
    %100 = tpu.matmul %97, %98, %cst_40 {dimension_numbers = #tpu.dot_dimension_numbers<[1], [1], [0], [0], [0, 0, 1, 0], [], []>} : vector<8x8xf32>, vector<8x8xf32>, vector<8x8xf32> -> vector<8x8xf32>
    %cst_41 = arith.constant 0.353553385 : f32
    %101 = vector.broadcast %cst_41 : f32 to vector<8x8xf32>
    %102 = arith.mulf %100, %101 : vector<8x8xf32>
    %cst_42 = arith.constant 0.000000e+00 : f32
    %103 = vector.broadcast %cst_42 : f32 to vector<8x8xf32>
    %104 = arith.cmpf oeq, %33, %103 : vector<8x8xf32>
    %cst_43 = arith.constant -1.000000e+09 : f32
    %105 = vector.broadcast %cst_43 : f32 to vector<8x8xf32>
    %106 = arith.select %104, %105, %102 : vector<8x8xi1>, vector<8x8xf32>
    %cst_44 = arith.constant dense<0xFF800000> : vector<8xf32>
    %107 = vector.multi_reduction <maximumf>, %106, %cst_44 [1] : vector<8x8xf32> to vector<8xf32>
    %108 = vector.shape_cast %107 : vector<8xf32> to vector<8x1xf32>
    %109 = vector.broadcast %108 : vector<8x1xf32> to vector<8x8xf32>
    %110 = arith.subf %106, %109 : vector<8x8xf32>
    %111 = math.exp %110 : vector<8x8xf32>
    %cst_45 = arith.constant dense<0.000000e+00> : vector<8xf32>
    %112 = vector.multi_reduction <add>, %111, %cst_45 [1] : vector<8x8xf32> to vector<8xf32>
    %113 = vector.shape_cast %112 : vector<8xf32> to vector<8x1xf32>
    %114 = tpu.reciprocal %113 {approx = true} : vector<8x1xf32> -> vector<8x1xf32>
    %115 = vector.broadcast %114 : vector<8x1xf32> to vector<8x8xf32>
    %116 = arith.mulf %111, %115 : vector<8x8xf32>
    %cst_46 = arith.constant dense<0.000000e+00> : vector<8x8xf32>
    %117 = tpu.matmul %116, %99, %cst_46 {dimension_numbers = #tpu.dot_dimension_numbers<[1], [0], [0], [1], [0, 0, 1, 1], [], []>} : vector<8x8xf32>, vector<8x8xf32>, vector<8x8xf32> -> vector<8x8xf32>
    %118 = tpu.concatenate %54, %75, %96, %117 in 1 : vector<8x8xf32>, vector<8x8xf32>, vector<8x8xf32>, vector<8x8xf32> -> vector<8x32xf32>
    %c0_47 = arith.constant 0 : index
    %c0_48 = arith.constant 0 : index
    %119 = vector.load %arg7[%c0_47, %c0_48] : memref<32x32xf32, #tpu.memory_space<vmem>>, vector<32x32xf32>
    %cst_49 = arith.constant dense<0.000000e+00> : vector<8x32xf32>
    %120 = tpu.matmul %118, %119, %cst_49 {dimension_numbers = #tpu.dot_dimension_numbers<[1], [0], [0], [1], [0, 0, 1, 1], [], []>} : vector<8x32xf32>, vector<32x32xf32>, vector<8x32xf32> -> vector<8x32xf32>
    %c0_50 = arith.constant 0 : index
    %c0_51 = arith.constant 0 : index
    %121 = vector.load %arg8[%c0_50, %c0_51] : memref<1x32xf32, #tpu.memory_space<vmem>>, vector<1x32xf32>
    %122 = vector.broadcast %121 : vector<1x32xf32> to vector<8x32xf32>
    %123 = arith.addf %120, %122 : vector<8x32xf32>
    %124 = arith.addf %1, %123 : vector<8x32xf32>
    %c0_52 = arith.constant 0 : index
    %c0_53 = arith.constant 0 : index
    %c0_54 = arith.constant 0 : index
    %125 = vector.load %arg9[%c0_52, %c0_53, %c0_54] : memref<1x8x32xf32, #tpu.memory_space<vmem>>, vector<1x8x32xf32>
    %126 = vector.shape_cast %125 : vector<1x8x32xf32> to vector<8x32xf32>
    %127 = vector.shape_cast %124 : vector<8x32xf32> to vector<1x8x32xf32>
    tpu.vector_store %arg9[%c0_52, %c0_53, %c0_54], %127 {strides = array<i32>} : memref<1x8x32xf32, #tpu.memory_space<vmem>>, vector<1x8x32xf32>,
    return
  }
  func.func @transform_0(%arg0: i32) -> (i32, i32, i32) {
    %c0_i32 = arith.constant 0 : i32
    %c0_i32_0 = arith.constant 0 : i32
    %c0_i32_1 = arith.constant 0 : i32
    return %arg0, %c0_i32, %c0_i32_0 : i32, i32, i32
  }
  func.func @transform_1(%arg0: i32) -> (i32, i32, i32, i32) {
    %c0_i32 = arith.constant 0 : i32
    %c0_i32_0 = arith.constant 0 : i32
    %c0_i32_1 = arith.constant 0 : i32
    %c0_i32_2 = arith.constant 0 : i32
    %c0_i32_3 = arith.constant 0 : i32
    return %c0_i32, %c0_i32_0, %c0_i32_1, %c0_i32_2 : i32, i32, i32, i32
  }
  func.func @transform_2(%arg0: i32) -> (i32, i32) {
    %c0_i32 = arith.constant 0 : i32
    %c0_i32_0 = arith.constant 0 : i32
    %c0_i32_1 = arith.constant 0 : i32
    return %c0_i32, %c0_i32_0 : i32, i32
  }
  func.func @transform_3(%arg0: i32) -> (i32, i32) {
    %c0_i32 = arith.constant 0 : i32
    %c0_i32_0 = arith.constant 0 : i32
    %c0_i32_1 = arith.constant 0 : i32
    return %c0_i32, %c0_i32_0 : i32, i32
  }
  func.func @transform_4(%arg0: i32) -> (i32, i32) {
    %c0_i32 = arith.constant 0 : i32
    %c0_i32_0 = arith.constant 0 : i32
    %c0_i32_1 = arith.constant 0 : i32
    return %c0_i32, %c0_i32_0 : i32, i32
  }
  func.func @transform_5(%arg0: i32) -> (i32, i32) {
    %c0_i32 = arith.constant 0 : i32
    %c0_i32_0 = arith.constant 0 : i32
    %c0_i32_1 = arith.constant 0 : i32
    return %c0_i32, %c0_i32_0 : i32, i32
  }
  func.func @transform_6(%arg0: i32) -> (i32, i32) {
    %c0_i32 = arith.constant 0 : i32
    %c0_i32_0 = arith.constant 0 : i32
    %c0_i32_1 = arith.constant 0 : i32
    return %c0_i32, %c0_i32_0 : i32, i32
  }
  func.func @transform_7(%arg0: i32) -> (i32, i32) {
    %c0_i32 = arith.constant 0 : i32
    %c0_i32_0 = arith.constant 0 : i32
    %c0_i32_1 = arith.constant 0 : i32
    return %c0_i32, %c0_i32_0 : i32, i32
  }
  func.func @transform_8(%arg0: i32) -> (i32, i32, i32) {
    %c0_i32 = arith.constant 0 : i32
    %c0_i32_0 = arith.constant 0 : i32
    %c0_i32_1 = arith.constant 0 : i32
    return %arg0, %c0_i32, %c0_i32_0 : i32, i32, i32
  }
}

module attributes {stable_mosaic.version = 11 : i64} {
  func.func @_cross_attn_kernel(%arg0: i32, %arg1: memref<1x8x32xf32, #tpu.memory_space<vmem>>, %arg2: memref<1x8x32xf32, #tpu.memory_space<vmem>>, %arg3: memref<1x1x8x8xf32, #tpu.memory_space<vmem>>, %arg4: memref<1x32xf32, #tpu.memory_space<vmem>>, %arg5: memref<1x32xf32, #tpu.memory_space<vmem>>, %arg6: memref<32x32xf32, #tpu.memory_space<vmem>>, %arg7: memref<1x32xf32, #tpu.memory_space<vmem>>, %arg8: memref<32x64xf32, #tpu.memory_space<vmem>>, %arg9: memref<1x64xf32, #tpu.memory_space<vmem>>, %arg10: memref<32x32xf32, #tpu.memory_space<vmem>>, %arg11: memref<1x32xf32, #tpu.memory_space<vmem>>, %arg12: memref<1x8x32xf32, #tpu.memory_space<vmem>>) attributes {dimension_semantics = [#tpu.dimension_semantics<parallel>], iteration_bounds = array<i64: 2>, scalar_prefetch = 0 : i64, scratch_operands = 0 : i64, tpu.core_type = #tpu.core_type<tc>, window_params = [{transform_indices = @transform_0, window_bounds = array<i64: 1, 8, 32>}, {transform_indices = @transform_1, window_bounds = array<i64: 1, 8, 32>}, {pipeline_mode = #tpu.pipeline_mode<synchronous>, transform_indices = @transform_2, window_bounds = array<i64: 1, 1, 8, 8>}, {pipeline_mode = #tpu.pipeline_mode<synchronous>, transform_indices = @transform_3, window_bounds = array<i64: 1, 32>}, {pipeline_mode = #tpu.pipeline_mode<synchronous>, transform_indices = @transform_4, window_bounds = array<i64: 1, 32>}, {pipeline_mode = #tpu.pipeline_mode<synchronous>, transform_indices = @transform_5, window_bounds = array<i64: 32, 32>}, {pipeline_mode = #tpu.pipeline_mode<synchronous>, transform_indices = @transform_6, window_bounds = array<i64: 1, 32>}, {pipeline_mode = #tpu.pipeline_mode<synchronous>, transform_indices = @transform_7, window_bounds = array<i64: 32, 64>}, {pipeline_mode = #tpu.pipeline_mode<synchronous>, transform_indices = @transform_8, window_bounds = array<i64: 1, 64>}, {pipeline_mode = #tpu.pipeline_mode<synchronous>, transform_indices = @transform_9, window_bounds = array<i64: 32, 32>}, {pipeline_mode = #tpu.pipeline_mode<synchronous>, transform_indices = @transform_10, window_bounds = array<i64: 1, 32>}, {transform_indices = @transform_11, window_bounds = array<i64: 1, 8, 32>}]} {
    %c0 = arith.constant 0 : index
    %c0_0 = arith.constant 0 : index
    %c0_1 = arith.constant 0 : index
    %0 = vector.load %arg1[%c0, %c0_0, %c0_1] : memref<1x8x32xf32, #tpu.memory_space<vmem>>, vector<1x8x32xf32>
    %1 = vector.shape_cast %0 : vector<1x8x32xf32> to vector<8x32xf32>
    %c0_2 = arith.constant 0 : index
    %c0_3 = arith.constant 0 : index
    %c0_4 = arith.constant 0 : index
    %2 = vector.load %arg2[%c0_2, %c0_3, %c0_4] : memref<1x8x32xf32, #tpu.memory_space<vmem>>, vector<1x8x32xf32>
    %3 = vector.shape_cast %2 : vector<1x8x32xf32> to vector<8x32xf32>
    %c0_5 = arith.constant 0 : index
    %c0_6 = arith.constant 0 : index
    %4 = vector.load %arg4[%c0_5, %c0_6] : memref<1x32xf32, #tpu.memory_space<vmem>>, vector<1x32xf32>
    %c0_7 = arith.constant 0 : index
    %c0_8 = arith.constant 0 : index
    %5 = vector.load %arg5[%c0_7, %c0_8] : memref<1x32xf32, #tpu.memory_space<vmem>>, vector<1x32xf32>
    %cst = arith.constant dense<0.000000e+00> : vector<8xf32>
    %6 = vector.multi_reduction <add>, %1, %cst [1] : vector<8x32xf32> to vector<8xf32>
    %7 = vector.shape_cast %6 : vector<8xf32> to vector<8x1xf32>
    %cst_9 = arith.constant 3.200000e+01 : f32
    %8 = vector.broadcast %cst_9 : f32 to vector<8x1xf32>
    %9 = arith.divf %7, %8 : vector<8x1xf32>
    %10 = vector.broadcast %9 : vector<8x1xf32> to vector<8x32xf32>
    %11 = arith.subf %1, %10 : vector<8x32xf32>
    %12 = arith.mulf %11, %11 : vector<8x32xf32>
    %cst_10 = arith.constant dense<0.000000e+00> : vector<8xf32>
    %13 = vector.multi_reduction <add>, %12, %cst_10 [1] : vector<8x32xf32> to vector<8xf32>
    %14 = vector.shape_cast %13 : vector<8xf32> to vector<8x1xf32>
    %cst_11 = arith.constant 0.0322580636 : f32
    %15 = vector.broadcast %cst_11 : f32 to vector<8x1xf32>
    %16 = arith.mulf %14, %15 : vector<8x1xf32>
    %cst_12 = arith.constant 9.99999997E-7 : f32
    %17 = vector.broadcast %cst_12 : f32 to vector<8x1xf32>
    %18 = arith.addf %16, %17 : vector<8x1xf32>
    %19 = math.rsqrt %18 : vector<8x1xf32>
    %20 = vector.broadcast %19 : vector<8x1xf32> to vector<8x32xf32>
    %21 = arith.mulf %11, %20 : vector<8x32xf32>
    %22 = vector.broadcast %4 : vector<1x32xf32> to vector<8x32xf32>
    %23 = arith.mulf %22, %21 : vector<8x32xf32>
    %24 = vector.broadcast %5 : vector<1x32xf32> to vector<8x32xf32>
    %25 = arith.addf %23, %24 : vector<8x32xf32>
    %c0_13 = arith.constant 0 : index
    %c0_14 = arith.constant 0 : index
    %26 = vector.load %arg6[%c0_13, %c0_14] : memref<32x32xf32, #tpu.memory_space<vmem>>, vector<32x32xf32>
    %cst_15 = arith.constant dense<0.000000e+00> : vector<8x32xf32>
    %27 = tpu.matmul %25, %26, %cst_15 {dimension_numbers = #tpu.dot_dimension_numbers<[1], [0], [0], [1], [0, 0, 1, 1], [], []>} : vector<8x32xf32>, vector<32x32xf32>, vector<8x32xf32> -> vector<8x32xf32>
    %c0_16 = arith.constant 0 : index
    %c0_17 = arith.constant 0 : index
    %28 = vector.load %arg7[%c0_16, %c0_17] : memref<1x32xf32, #tpu.memory_space<vmem>>, vector<1x32xf32>
    %29 = vector.broadcast %28 : vector<1x32xf32> to vector<8x32xf32>
    %30 = arith.addf %27, %29 : vector<8x32xf32>
    %c0_18 = arith.constant 0 : index
    %c0_19 = arith.constant 0 : index
    %31 = vector.load %arg8[%c0_18, %c0_19] : memref<32x64xf32, #tpu.memory_space<vmem>>, vector<32x64xf32>
    %cst_20 = arith.constant dense<0.000000e+00> : vector<8x64xf32>
    %32 = tpu.matmul %3, %31, %cst_20 {dimension_numbers = #tpu.dot_dimension_numbers<[1], [0], [0], [1], [0, 0, 1, 1], [], []>} : vector<8x32xf32>, vector<32x64xf32>, vector<8x64xf32> -> vector<8x64xf32>
    %c0_21 = arith.constant 0 : index
    %c0_22 = arith.constant 0 : index
    %33 = vector.load %arg9[%c0_21, %c0_22] : memref<1x64xf32, #tpu.memory_space<vmem>>, vector<1x64xf32>
    %34 = vector.broadcast %33 : vector<1x64xf32> to vector<8x64xf32>
    %35 = arith.addf %32, %34 : vector<8x64xf32>
    %36 = vector.extract_strided_slice %35 {offsets = [0, 0], sizes = [8, 32], strides = [1, 1]} : vector<8x64xf32> to vector<8x32xf32>
    %37 = vector.extract_strided_slice %35 {offsets = [0, 32], sizes = [8, 32], strides = [1, 1]} : vector<8x64xf32> to vector<8x32xf32>
    %c0_23 = arith.constant 0 : index
    %c0_24 = arith.constant 0 : index
    %c0_25 = arith.constant 0 : index
    %c0_26 = arith.constant 0 : index
    %38 = vector.load %arg3[%c0_23, %c0_24, %c0_25, %c0_26] : memref<1x1x8x8xf32, #tpu.memory_space<vmem>>, vector<1x1x8x8xf32>
    %39 = vector.shape_cast %38 : vector<1x1x8x8xf32> to vector<8x8xf32>
    %40 = vector.extract_strided_slice %30 {offsets = [0, 0], sizes = [8, 8], strides = [1, 1]} : vector<8x32xf32> to vector<8x8xf32>
    %41 = vector.extract_strided_slice %36 {offsets = [0, 0], sizes = [8, 8], strides = [1, 1]} : vector<8x32xf32> to vector<8x8xf32>
    %42 = vector.extract_strided_slice %37 {offsets = [0, 0], sizes = [8, 8], strides = [1, 1]} : vector<8x32xf32> to vector<8x8xf32>
    %cst_27 = arith.constant dense<0.000000e+00> : vector<8x8xf32>
    %43 = tpu.matmul %40, %41, %cst_27 {dimension_numbers = #tpu.dot_dimension_numbers<[1], [1], [0], [0], [0, 0, 1, 0], [], []>} : vector<8x8xf32>, vector<8x8xf32>, vector<8x8xf32> -> vector<8x8xf32>
    %cst_28 = arith.constant 0.353553385 : f32
    %44 = vector.broadcast %cst_28 : f32 to vector<8x8xf32>
    %45 = arith.mulf %43, %44 : vector<8x8xf32>
    %cst_29 = arith.constant 0.000000e+00 : f32
    %46 = vector.broadcast %cst_29 : f32 to vector<8x8xf32>
    %47 = arith.cmpf oeq, %39, %46 : vector<8x8xf32>
    %cst_30 = arith.constant -1.000000e+09 : f32
    %48 = vector.broadcast %cst_30 : f32 to vector<8x8xf32>
    %49 = arith.select %47, %48, %45 : vector<8x8xi1>, vector<8x8xf32>
    %cst_31 = arith.constant dense<0xFF800000> : vector<8xf32>
    %50 = vector.multi_reduction <maximumf>, %49, %cst_31 [1] : vector<8x8xf32> to vector<8xf32>
    %51 = vector.shape_cast %50 : vector<8xf32> to vector<8x1xf32>
    %52 = vector.broadcast %51 : vector<8x1xf32> to vector<8x8xf32>
    %53 = arith.subf %49, %52 : vector<8x8xf32>
    %54 = math.exp %53 : vector<8x8xf32>
    %cst_32 = arith.constant dense<0.000000e+00> : vector<8xf32>
    %55 = vector.multi_reduction <add>, %54, %cst_32 [1] : vector<8x8xf32> to vector<8xf32>
    %56 = vector.shape_cast %55 : vector<8xf32> to vector<8x1xf32>
    %57 = tpu.reciprocal %56 {approx = true} : vector<8x1xf32> -> vector<8x1xf32>
    %58 = vector.broadcast %57 : vector<8x1xf32> to vector<8x8xf32>
    %59 = arith.mulf %54, %58 : vector<8x8xf32>
    %cst_33 = arith.constant dense<0.000000e+00> : vector<8x8xf32>
    %60 = tpu.matmul %59, %42, %cst_33 {dimension_numbers = #tpu.dot_dimension_numbers<[1], [0], [0], [1], [0, 0, 1, 1], [], []>} : vector<8x8xf32>, vector<8x8xf32>, vector<8x8xf32> -> vector<8x8xf32>
    %61 = vector.extract_strided_slice %30 {offsets = [0, 8], sizes = [8, 8], strides = [1, 1]} : vector<8x32xf32> to vector<8x8xf32>
    %62 = vector.extract_strided_slice %36 {offsets = [0, 8], sizes = [8, 8], strides = [1, 1]} : vector<8x32xf32> to vector<8x8xf32>
    %63 = vector.extract_strided_slice %37 {offsets = [0, 8], sizes = [8, 8], strides = [1, 1]} : vector<8x32xf32> to vector<8x8xf32>
    %cst_34 = arith.constant dense<0.000000e+00> : vector<8x8xf32>
    %64 = tpu.matmul %61, %62, %cst_34 {dimension_numbers = #tpu.dot_dimension_numbers<[1], [1], [0], [0], [0, 0, 1, 0], [], []>} : vector<8x8xf32>, vector<8x8xf32>, vector<8x8xf32> -> vector<8x8xf32>
    %cst_35 = arith.constant 0.353553385 : f32
    %65 = vector.broadcast %cst_35 : f32 to vector<8x8xf32>
    %66 = arith.mulf %64, %65 : vector<8x8xf32>
    %cst_36 = arith.constant 0.000000e+00 : f32
    %67 = vector.broadcast %cst_36 : f32 to vector<8x8xf32>
    %68 = arith.cmpf oeq, %39, %67 : vector<8x8xf32>
    %cst_37 = arith.constant -1.000000e+09 : f32
    %69 = vector.broadcast %cst_37 : f32 to vector<8x8xf32>
    %70 = arith.select %68, %69, %66 : vector<8x8xi1>, vector<8x8xf32>
    %cst_38 = arith.constant dense<0xFF800000> : vector<8xf32>
    %71 = vector.multi_reduction <maximumf>, %70, %cst_38 [1] : vector<8x8xf32> to vector<8xf32>
    %72 = vector.shape_cast %71 : vector<8xf32> to vector<8x1xf32>
    %73 = vector.broadcast %72 : vector<8x1xf32> to vector<8x8xf32>
    %74 = arith.subf %70, %73 : vector<8x8xf32>
    %75 = math.exp %74 : vector<8x8xf32>
    %cst_39 = arith.constant dense<0.000000e+00> : vector<8xf32>
    %76 = vector.multi_reduction <add>, %75, %cst_39 [1] : vector<8x8xf32> to vector<8xf32>
    %77 = vector.shape_cast %76 : vector<8xf32> to vector<8x1xf32>
    %78 = tpu.reciprocal %77 {approx = true} : vector<8x1xf32> -> vector<8x1xf32>
    %79 = vector.broadcast %78 : vector<8x1xf32> to vector<8x8xf32>
    %80 = arith.mulf %75, %79 : vector<8x8xf32>
    %cst_40 = arith.constant dense<0.000000e+00> : vector<8x8xf32>
    %81 = tpu.matmul %80, %63, %cst_40 {dimension_numbers = #tpu.dot_dimension_numbers<[1], [0], [0], [1], [0, 0, 1, 1], [], []>} : vector<8x8xf32>, vector<8x8xf32>, vector<8x8xf32> -> vector<8x8xf32>
    %82 = vector.extract_strided_slice %30 {offsets = [0, 16], sizes = [8, 8], strides = [1, 1]} : vector<8x32xf32> to vector<8x8xf32>
    %83 = vector.extract_strided_slice %36 {offsets = [0, 16], sizes = [8, 8], strides = [1, 1]} : vector<8x32xf32> to vector<8x8xf32>
    %84 = vector.extract_strided_slice %37 {offsets = [0, 16], sizes = [8, 8], strides = [1, 1]} : vector<8x32xf32> to vector<8x8xf32>
    %cst_41 = arith.constant dense<0.000000e+00> : vector<8x8xf32>
    %85 = tpu.matmul %82, %83, %cst_41 {dimension_numbers = #tpu.dot_dimension_numbers<[1], [1], [0], [0], [0, 0, 1, 0], [], []>} : vector<8x8xf32>, vector<8x8xf32>, vector<8x8xf32> -> vector<8x8xf32>
    %cst_42 = arith.constant 0.353553385 : f32
    %86 = vector.broadcast %cst_42 : f32 to vector<8x8xf32>
    %87 = arith.mulf %85, %86 : vector<8x8xf32>
    %cst_43 = arith.constant 0.000000e+00 : f32
    %88 = vector.broadcast %cst_43 : f32 to vector<8x8xf32>
    %89 = arith.cmpf oeq, %39, %88 : vector<8x8xf32>
    %cst_44 = arith.constant -1.000000e+09 : f32
    %90 = vector.broadcast %cst_44 : f32 to vector<8x8xf32>
    %91 = arith.select %89, %90, %87 : vector<8x8xi1>, vector<8x8xf32>
    %cst_45 = arith.constant dense<0xFF800000> : vector<8xf32>
    %92 = vector.multi_reduction <maximumf>, %91, %cst_45 [1] : vector<8x8xf32> to vector<8xf32>
    %93 = vector.shape_cast %92 : vector<8xf32> to vector<8x1xf32>
    %94 = vector.broadcast %93 : vector<8x1xf32> to vector<8x8xf32>
    %95 = arith.subf %91, %94 : vector<8x8xf32>
    %96 = math.exp %95 : vector<8x8xf32>
    %cst_46 = arith.constant dense<0.000000e+00> : vector<8xf32>
    %97 = vector.multi_reduction <add>, %96, %cst_46 [1] : vector<8x8xf32> to vector<8xf32>
    %98 = vector.shape_cast %97 : vector<8xf32> to vector<8x1xf32>
    %99 = tpu.reciprocal %98 {approx = true} : vector<8x1xf32> -> vector<8x1xf32>
    %100 = vector.broadcast %99 : vector<8x1xf32> to vector<8x8xf32>
    %101 = arith.mulf %96, %100 : vector<8x8xf32>
    %cst_47 = arith.constant dense<0.000000e+00> : vector<8x8xf32>
    %102 = tpu.matmul %101, %84, %cst_47 {dimension_numbers = #tpu.dot_dimension_numbers<[1], [0], [0], [1], [0, 0, 1, 1], [], []>} : vector<8x8xf32>, vector<8x8xf32>, vector<8x8xf32> -> vector<8x8xf32>
    %103 = vector.extract_strided_slice %30 {offsets = [0, 24], sizes = [8, 8], strides = [1, 1]} : vector<8x32xf32> to vector<8x8xf32>
    %104 = vector.extract_strided_slice %36 {offsets = [0, 24], sizes = [8, 8], strides = [1, 1]} : vector<8x32xf32> to vector<8x8xf32>
    %105 = vector.extract_strided_slice %37 {offsets = [0, 24], sizes = [8, 8], strides = [1, 1]} : vector<8x32xf32> to vector<8x8xf32>
    %cst_48 = arith.constant dense<0.000000e+00> : vector<8x8xf32>
    %106 = tpu.matmul %103, %104, %cst_48 {dimension_numbers = #tpu.dot_dimension_numbers<[1], [1], [0], [0], [0, 0, 1, 0], [], []>} : vector<8x8xf32>, vector<8x8xf32>, vector<8x8xf32> -> vector<8x8xf32>
    %cst_49 = arith.constant 0.353553385 : f32
    %107 = vector.broadcast %cst_49 : f32 to vector<8x8xf32>
    %108 = arith.mulf %106, %107 : vector<8x8xf32>
    %cst_50 = arith.constant 0.000000e+00 : f32
    %109 = vector.broadcast %cst_50 : f32 to vector<8x8xf32>
    %110 = arith.cmpf oeq, %39, %109 : vector<8x8xf32>
    %cst_51 = arith.constant -1.000000e+09 : f32
    %111 = vector.broadcast %cst_51 : f32 to vector<8x8xf32>
    %112 = arith.select %110, %111, %108 : vector<8x8xi1>, vector<8x8xf32>
    %cst_52 = arith.constant dense<0xFF800000> : vector<8xf32>
    %113 = vector.multi_reduction <maximumf>, %112, %cst_52 [1] : vector<8x8xf32> to vector<8xf32>
    %114 = vector.shape_cast %113 : vector<8xf32> to vector<8x1xf32>
    %115 = vector.broadcast %114 : vector<8x1xf32> to vector<8x8xf32>
    %116 = arith.subf %112, %115 : vector<8x8xf32>
    %117 = math.exp %116 : vector<8x8xf32>
    %cst_53 = arith.constant dense<0.000000e+00> : vector<8xf32>
    %118 = vector.multi_reduction <add>, %117, %cst_53 [1] : vector<8x8xf32> to vector<8xf32>
    %119 = vector.shape_cast %118 : vector<8xf32> to vector<8x1xf32>
    %120 = tpu.reciprocal %119 {approx = true} : vector<8x1xf32> -> vector<8x1xf32>
    %121 = vector.broadcast %120 : vector<8x1xf32> to vector<8x8xf32>
    %122 = arith.mulf %117, %121 : vector<8x8xf32>
    %cst_54 = arith.constant dense<0.000000e+00> : vector<8x8xf32>
    %123 = tpu.matmul %122, %105, %cst_54 {dimension_numbers = #tpu.dot_dimension_numbers<[1], [0], [0], [1], [0, 0, 1, 1], [], []>} : vector<8x8xf32>, vector<8x8xf32>, vector<8x8xf32> -> vector<8x8xf32>
    %124 = tpu.concatenate %60, %81, %102, %123 in 1 : vector<8x8xf32>, vector<8x8xf32>, vector<8x8xf32>, vector<8x8xf32> -> vector<8x32xf32>
    %c0_55 = arith.constant 0 : index
    %c0_56 = arith.constant 0 : index
    %125 = vector.load %arg10[%c0_55, %c0_56] : memref<32x32xf32, #tpu.memory_space<vmem>>, vector<32x32xf32>
    %cst_57 = arith.constant dense<0.000000e+00> : vector<8x32xf32>
    %126 = tpu.matmul %124, %125, %cst_57 {dimension_numbers = #tpu.dot_dimension_numbers<[1], [0], [0], [1], [0, 0, 1, 1], [], []>} : vector<8x32xf32>, vector<32x32xf32>, vector<8x32xf32> -> vector<8x32xf32>
    %c0_58 = arith.constant 0 : index
    %c0_59 = arith.constant 0 : index
    %127 = vector.load %arg11[%c0_58, %c0_59] : memref<1x32xf32, #tpu.memory_space<vmem>>, vector<1x32xf32>
    %128 = vector.broadcast %127 : vector<1x32xf32> to vector<8x32xf32>
    %129 = arith.addf %126, %128 : vector<8x32xf32>
    %130 = arith.addf %1, %129 : vector<8x32xf32>
    %c0_60 = arith.constant 0 : index
    %c0_61 = arith.constant 0 : index
    %c0_62 = arith.constant 0 : index
    %131 = vector.load %arg12[%c0_60, %c0_61, %c0_62] : memref<1x8x32xf32, #tpu.memory_space<vmem>>, vector<1x8x32xf32>
    %132 = vector.shape_cast %131 : vector<1x8x32xf32> to vector<8x32xf32>
    %133 = vector.shape_cast %130 : vector<8x32xf32> to vector<1x8x32xf32>
    tpu.vector_store %arg12[%c0_60, %c0_61, %c0_62], %133 {strides = array<i32>} : memref<1x8x32xf32, #tpu.memory_space<vmem>>, vector<1x8x32xf32>,
    return
  }
  func.func @transform_0(%arg0: i32) -> (i32, i32, i32) {
    %c0_i32 = arith.constant 0 : i32
    %c0_i32_0 = arith.constant 0 : i32
    %c0_i32_1 = arith.constant 0 : i32
    return %arg0, %c0_i32, %c0_i32_0 : i32, i32, i32
  }
  func.func @transform_1(%arg0: i32) -> (i32, i32, i32) {
    %c0_i32 = arith.constant 0 : i32
    %c0_i32_0 = arith.constant 0 : i32
    %c0_i32_1 = arith.constant 0 : i32
    return %arg0, %c0_i32, %c0_i32_0 : i32, i32, i32
  }
  func.func @transform_2(%arg0: i32) -> (i32, i32, i32, i32) {
    %c0_i32 = arith.constant 0 : i32
    %c0_i32_0 = arith.constant 0 : i32
    %c0_i32_1 = arith.constant 0 : i32
    %c0_i32_2 = arith.constant 0 : i32
    %c0_i32_3 = arith.constant 0 : i32
    return %c0_i32, %c0_i32_0, %c0_i32_1, %c0_i32_2 : i32, i32, i32, i32
  }
  func.func @transform_3(%arg0: i32) -> (i32, i32) {
    %c0_i32 = arith.constant 0 : i32
    %c0_i32_0 = arith.constant 0 : i32
    %c0_i32_1 = arith.constant 0 : i32
    return %c0_i32, %c0_i32_0 : i32, i32
  }
  func.func @transform_4(%arg0: i32) -> (i32, i32) {
    %c0_i32 = arith.constant 0 : i32
    %c0_i32_0 = arith.constant 0 : i32
    %c0_i32_1 = arith.constant 0 : i32
    return %c0_i32, %c0_i32_0 : i32, i32
  }
  func.func @transform_5(%arg0: i32) -> (i32, i32) {
    %c0_i32 = arith.constant 0 : i32
    %c0_i32_0 = arith.constant 0 : i32
    %c0_i32_1 = arith.constant 0 : i32
    return %c0_i32, %c0_i32_0 : i32, i32
  }
  func.func @transform_6(%arg0: i32) -> (i32, i32) {
    %c0_i32 = arith.constant 0 : i32
    %c0_i32_0 = arith.constant 0 : i32
    %c0_i32_1 = arith.constant 0 : i32
    return %c0_i32, %c0_i32_0 : i32, i32
  }
  func.func @transform_7(%arg0: i32) -> (i32, i32) {
    %c0_i32 = arith.constant 0 : i32
    %c0_i32_0 = arith.constant 0 : i32
    %c0_i32_1 = arith.constant 0 : i32
    return %c0_i32, %c0_i32_0 : i32, i32
  }
  func.func @transform_8(%arg0: i32) -> (i32, i32) {
    %c0_i32 = arith.constant 0 : i32
    %c0_i32_0 = arith.constant 0 : i32
    %c0_i32_1 = arith.constant 0 : i32
    return %c0_i32, %c0_i32_0 : i32, i32
  }
  func.func @transform_9(%arg0: i32) -> (i32, i32) {
    %c0_i32 = arith.constant 0 : i32
    %c0_i32_0 = arith.constant 0 : i32
    %c0_i32_1 = arith.constant 0 : i32
    return %c0_i32, %c0_i32_0 : i32, i32
  }
  func.func @transform_10(%arg0: i32) -> (i32, i32) {
    %c0_i32 = arith.constant 0 : i32
    %c0_i32_0 = arith.constant 0 : i32
    %c0_i32_1 = arith.constant 0 : i32
    return %c0_i32, %c0_i32_0 : i32, i32
  }
  func.func @transform_11(%arg0: i32) -> (i32, i32, i32) {
    %c0_i32 = arith.constant 0 : i32
    %c0_i32_0 = arith.constant 0 : i32
    %c0_i32_1 = arith.constant 0 : i32
    return %arg0, %c0_i32, %c0_i32_0 : i32, i32, i32
  }
}

module attributes {stable_mosaic.version = 11 : i64} {
  func.func @_self_attn_kernel(%arg0: i32, %arg1: memref<1x8x32xf32, #tpu.memory_space<vmem>>, %arg2: memref<1x1x8x8xf32, #tpu.memory_space<vmem>>, %arg3: memref<1x32xf32, #tpu.memory_space<vmem>>, %arg4: memref<1x32xf32, #tpu.memory_space<vmem>>, %arg5: memref<32x96xf32, #tpu.memory_space<vmem>>, %arg6: memref<1x96xf32, #tpu.memory_space<vmem>>, %arg7: memref<32x32xf32, #tpu.memory_space<vmem>>, %arg8: memref<1x32xf32, #tpu.memory_space<vmem>>, %arg9: memref<1x8x32xf32, #tpu.memory_space<vmem>>) attributes {dimension_semantics = [#tpu.dimension_semantics<parallel>], iteration_bounds = array<i64: 2>, scalar_prefetch = 0 : i64, scratch_operands = 0 : i64, tpu.core_type = #tpu.core_type<tc>, window_params = [{transform_indices = @transform_0, window_bounds = array<i64: 1, 8, 32>}, {pipeline_mode = #tpu.pipeline_mode<synchronous>, transform_indices = @transform_1, window_bounds = array<i64: 1, 1, 8, 8>}, {pipeline_mode = #tpu.pipeline_mode<synchronous>, transform_indices = @transform_2, window_bounds = array<i64: 1, 32>}, {pipeline_mode = #tpu.pipeline_mode<synchronous>, transform_indices = @transform_3, window_bounds = array<i64: 1, 32>}, {pipeline_mode = #tpu.pipeline_mode<synchronous>, transform_indices = @transform_4, window_bounds = array<i64: 32, 96>}, {pipeline_mode = #tpu.pipeline_mode<synchronous>, transform_indices = @transform_5, window_bounds = array<i64: 1, 96>}, {pipeline_mode = #tpu.pipeline_mode<synchronous>, transform_indices = @transform_6, window_bounds = array<i64: 32, 32>}, {pipeline_mode = #tpu.pipeline_mode<synchronous>, transform_indices = @transform_7, window_bounds = array<i64: 1, 32>}, {transform_indices = @transform_8, window_bounds = array<i64: 1, 8, 32>}]} {
    %c0 = arith.constant 0 : index
    %c0_0 = arith.constant 0 : index
    %c0_1 = arith.constant 0 : index
    %0 = vector.load %arg1[%c0, %c0_0, %c0_1] : memref<1x8x32xf32, #tpu.memory_space<vmem>>, vector<1x8x32xf32>
    %1 = vector.shape_cast %0 : vector<1x8x32xf32> to vector<8x32xf32>
    %c0_2 = arith.constant 0 : index
    %c0_3 = arith.constant 0 : index
    %2 = vector.load %arg3[%c0_2, %c0_3] : memref<1x32xf32, #tpu.memory_space<vmem>>, vector<1x32xf32>
    %c0_4 = arith.constant 0 : index
    %c0_5 = arith.constant 0 : index
    %3 = vector.load %arg4[%c0_4, %c0_5] : memref<1x32xf32, #tpu.memory_space<vmem>>, vector<1x32xf32>
    %cst = arith.constant dense<0.000000e+00> : vector<8xf32>
    %4 = vector.multi_reduction <add>, %1, %cst [1] : vector<8x32xf32> to vector<8xf32>
    %5 = vector.shape_cast %4 : vector<8xf32> to vector<8x1xf32>
    %cst_6 = arith.constant 3.200000e+01 : f32
    %6 = vector.broadcast %cst_6 : f32 to vector<8x1xf32>
    %7 = arith.divf %5, %6 : vector<8x1xf32>
    %8 = vector.broadcast %7 : vector<8x1xf32> to vector<8x32xf32>
    %9 = arith.subf %1, %8 : vector<8x32xf32>
    %10 = arith.mulf %9, %9 : vector<8x32xf32>
    %cst_7 = arith.constant dense<0.000000e+00> : vector<8xf32>
    %11 = vector.multi_reduction <add>, %10, %cst_7 [1] : vector<8x32xf32> to vector<8xf32>
    %12 = vector.shape_cast %11 : vector<8xf32> to vector<8x1xf32>
    %cst_8 = arith.constant 0.0322580636 : f32
    %13 = vector.broadcast %cst_8 : f32 to vector<8x1xf32>
    %14 = arith.mulf %12, %13 : vector<8x1xf32>
    %cst_9 = arith.constant 9.99999997E-7 : f32
    %15 = vector.broadcast %cst_9 : f32 to vector<8x1xf32>
    %16 = arith.addf %14, %15 : vector<8x1xf32>
    %17 = math.rsqrt %16 : vector<8x1xf32>
    %18 = vector.broadcast %17 : vector<8x1xf32> to vector<8x32xf32>
    %19 = arith.mulf %9, %18 : vector<8x32xf32>
    %20 = vector.broadcast %2 : vector<1x32xf32> to vector<8x32xf32>
    %21 = arith.mulf %20, %19 : vector<8x32xf32>
    %22 = vector.broadcast %3 : vector<1x32xf32> to vector<8x32xf32>
    %23 = arith.addf %21, %22 : vector<8x32xf32>
    %c0_10 = arith.constant 0 : index
    %c0_11 = arith.constant 0 : index
    %24 = vector.load %arg5[%c0_10, %c0_11] : memref<32x96xf32, #tpu.memory_space<vmem>>, vector<32x96xf32>
    %cst_12 = arith.constant dense<0.000000e+00> : vector<8x96xf32>
    %25 = tpu.matmul %23, %24, %cst_12 {dimension_numbers = #tpu.dot_dimension_numbers<[1], [0], [0], [1], [0, 0, 1, 1], [], []>} : vector<8x32xf32>, vector<32x96xf32>, vector<8x96xf32> -> vector<8x96xf32>
    %c0_13 = arith.constant 0 : index
    %c0_14 = arith.constant 0 : index
    %26 = vector.load %arg6[%c0_13, %c0_14] : memref<1x96xf32, #tpu.memory_space<vmem>>, vector<1x96xf32>
    %27 = vector.broadcast %26 : vector<1x96xf32> to vector<8x96xf32>
    %28 = arith.addf %25, %27 : vector<8x96xf32>
    %29 = vector.extract_strided_slice %28 {offsets = [0, 0], sizes = [8, 32], strides = [1, 1]} : vector<8x96xf32> to vector<8x32xf32>
    %30 = vector.extract_strided_slice %28 {offsets = [0, 32], sizes = [8, 32], strides = [1, 1]} : vector<8x96xf32> to vector<8x32xf32>
    %31 = vector.extract_strided_slice %28 {offsets = [0, 64], sizes = [8, 32], strides = [1, 1]} : vector<8x96xf32> to vector<8x32xf32>
    %c0_15 = arith.constant 0 : index
    %c0_16 = arith.constant 0 : index
    %c0_17 = arith.constant 0 : index
    %c0_18 = arith.constant 0 : index
    %32 = vector.load %arg2[%c0_15, %c0_16, %c0_17, %c0_18] : memref<1x1x8x8xf32, #tpu.memory_space<vmem>>, vector<1x1x8x8xf32>
    %33 = vector.shape_cast %32 : vector<1x1x8x8xf32> to vector<8x8xf32>
    %34 = vector.extract_strided_slice %29 {offsets = [0, 0], sizes = [8, 8], strides = [1, 1]} : vector<8x32xf32> to vector<8x8xf32>
    %35 = vector.extract_strided_slice %30 {offsets = [0, 0], sizes = [8, 8], strides = [1, 1]} : vector<8x32xf32> to vector<8x8xf32>
    %36 = vector.extract_strided_slice %31 {offsets = [0, 0], sizes = [8, 8], strides = [1, 1]} : vector<8x32xf32> to vector<8x8xf32>
    %cst_19 = arith.constant dense<0.000000e+00> : vector<8x8xf32>
    %37 = tpu.matmul %34, %35, %cst_19 {dimension_numbers = #tpu.dot_dimension_numbers<[1], [1], [0], [0], [0, 0, 1, 0], [], []>} : vector<8x8xf32>, vector<8x8xf32>, vector<8x8xf32> -> vector<8x8xf32>
    %cst_20 = arith.constant 0.353553385 : f32
    %38 = vector.broadcast %cst_20 : f32 to vector<8x8xf32>
    %39 = arith.mulf %37, %38 : vector<8x8xf32>
    %cst_21 = arith.constant 0.000000e+00 : f32
    %40 = vector.broadcast %cst_21 : f32 to vector<8x8xf32>
    %41 = arith.cmpf oeq, %33, %40 : vector<8x8xf32>
    %cst_22 = arith.constant -1.000000e+09 : f32
    %42 = vector.broadcast %cst_22 : f32 to vector<8x8xf32>
    %43 = arith.select %41, %42, %39 : vector<8x8xi1>, vector<8x8xf32>
    %cst_23 = arith.constant dense<0xFF800000> : vector<8xf32>
    %44 = vector.multi_reduction <maximumf>, %43, %cst_23 [1] : vector<8x8xf32> to vector<8xf32>
    %45 = vector.shape_cast %44 : vector<8xf32> to vector<8x1xf32>
    %46 = vector.broadcast %45 : vector<8x1xf32> to vector<8x8xf32>
    %47 = arith.subf %43, %46 : vector<8x8xf32>
    %48 = math.exp %47 : vector<8x8xf32>
    %cst_24 = arith.constant dense<0.000000e+00> : vector<8xf32>
    %49 = vector.multi_reduction <add>, %48, %cst_24 [1] : vector<8x8xf32> to vector<8xf32>
    %50 = vector.shape_cast %49 : vector<8xf32> to vector<8x1xf32>
    %51 = tpu.reciprocal %50 {approx = true} : vector<8x1xf32> -> vector<8x1xf32>
    %52 = vector.broadcast %51 : vector<8x1xf32> to vector<8x8xf32>
    %53 = arith.mulf %48, %52 : vector<8x8xf32>
    %cst_25 = arith.constant dense<0.000000e+00> : vector<8x8xf32>
    %54 = tpu.matmul %53, %36, %cst_25 {dimension_numbers = #tpu.dot_dimension_numbers<[1], [0], [0], [1], [0, 0, 1, 1], [], []>} : vector<8x8xf32>, vector<8x8xf32>, vector<8x8xf32> -> vector<8x8xf32>
    %55 = vector.extract_strided_slice %29 {offsets = [0, 8], sizes = [8, 8], strides = [1, 1]} : vector<8x32xf32> to vector<8x8xf32>
    %56 = vector.extract_strided_slice %30 {offsets = [0, 8], sizes = [8, 8], strides = [1, 1]} : vector<8x32xf32> to vector<8x8xf32>
    %57 = vector.extract_strided_slice %31 {offsets = [0, 8], sizes = [8, 8], strides = [1, 1]} : vector<8x32xf32> to vector<8x8xf32>
    %cst_26 = arith.constant dense<0.000000e+00> : vector<8x8xf32>
    %58 = tpu.matmul %55, %56, %cst_26 {dimension_numbers = #tpu.dot_dimension_numbers<[1], [1], [0], [0], [0, 0, 1, 0], [], []>} : vector<8x8xf32>, vector<8x8xf32>, vector<8x8xf32> -> vector<8x8xf32>
    %cst_27 = arith.constant 0.353553385 : f32
    %59 = vector.broadcast %cst_27 : f32 to vector<8x8xf32>
    %60 = arith.mulf %58, %59 : vector<8x8xf32>
    %cst_28 = arith.constant 0.000000e+00 : f32
    %61 = vector.broadcast %cst_28 : f32 to vector<8x8xf32>
    %62 = arith.cmpf oeq, %33, %61 : vector<8x8xf32>
    %cst_29 = arith.constant -1.000000e+09 : f32
    %63 = vector.broadcast %cst_29 : f32 to vector<8x8xf32>
    %64 = arith.select %62, %63, %60 : vector<8x8xi1>, vector<8x8xf32>
    %cst_30 = arith.constant dense<0xFF800000> : vector<8xf32>
    %65 = vector.multi_reduction <maximumf>, %64, %cst_30 [1] : vector<8x8xf32> to vector<8xf32>
    %66 = vector.shape_cast %65 : vector<8xf32> to vector<8x1xf32>
    %67 = vector.broadcast %66 : vector<8x1xf32> to vector<8x8xf32>
    %68 = arith.subf %64, %67 : vector<8x8xf32>
    %69 = math.exp %68 : vector<8x8xf32>
    %cst_31 = arith.constant dense<0.000000e+00> : vector<8xf32>
    %70 = vector.multi_reduction <add>, %69, %cst_31 [1] : vector<8x8xf32> to vector<8xf32>
    %71 = vector.shape_cast %70 : vector<8xf32> to vector<8x1xf32>
    %72 = tpu.reciprocal %71 {approx = true} : vector<8x1xf32> -> vector<8x1xf32>
    %73 = vector.broadcast %72 : vector<8x1xf32> to vector<8x8xf32>
    %74 = arith.mulf %69, %73 : vector<8x8xf32>
    %cst_32 = arith.constant dense<0.000000e+00> : vector<8x8xf32>
    %75 = tpu.matmul %74, %57, %cst_32 {dimension_numbers = #tpu.dot_dimension_numbers<[1], [0], [0], [1], [0, 0, 1, 1], [], []>} : vector<8x8xf32>, vector<8x8xf32>, vector<8x8xf32> -> vector<8x8xf32>
    %76 = vector.extract_strided_slice %29 {offsets = [0, 16], sizes = [8, 8], strides = [1, 1]} : vector<8x32xf32> to vector<8x8xf32>
    %77 = vector.extract_strided_slice %30 {offsets = [0, 16], sizes = [8, 8], strides = [1, 1]} : vector<8x32xf32> to vector<8x8xf32>
    %78 = vector.extract_strided_slice %31 {offsets = [0, 16], sizes = [8, 8], strides = [1, 1]} : vector<8x32xf32> to vector<8x8xf32>
    %cst_33 = arith.constant dense<0.000000e+00> : vector<8x8xf32>
    %79 = tpu.matmul %76, %77, %cst_33 {dimension_numbers = #tpu.dot_dimension_numbers<[1], [1], [0], [0], [0, 0, 1, 0], [], []>} : vector<8x8xf32>, vector<8x8xf32>, vector<8x8xf32> -> vector<8x8xf32>
    %cst_34 = arith.constant 0.353553385 : f32
    %80 = vector.broadcast %cst_34 : f32 to vector<8x8xf32>
    %81 = arith.mulf %79, %80 : vector<8x8xf32>
    %cst_35 = arith.constant 0.000000e+00 : f32
    %82 = vector.broadcast %cst_35 : f32 to vector<8x8xf32>
    %83 = arith.cmpf oeq, %33, %82 : vector<8x8xf32>
    %cst_36 = arith.constant -1.000000e+09 : f32
    %84 = vector.broadcast %cst_36 : f32 to vector<8x8xf32>
    %85 = arith.select %83, %84, %81 : vector<8x8xi1>, vector<8x8xf32>
    %cst_37 = arith.constant dense<0xFF800000> : vector<8xf32>
    %86 = vector.multi_reduction <maximumf>, %85, %cst_37 [1] : vector<8x8xf32> to vector<8xf32>
    %87 = vector.shape_cast %86 : vector<8xf32> to vector<8x1xf32>
    %88 = vector.broadcast %87 : vector<8x1xf32> to vector<8x8xf32>
    %89 = arith.subf %85, %88 : vector<8x8xf32>
    %90 = math.exp %89 : vector<8x8xf32>
    %cst_38 = arith.constant dense<0.000000e+00> : vector<8xf32>
    %91 = vector.multi_reduction <add>, %90, %cst_38 [1] : vector<8x8xf32> to vector<8xf32>
    %92 = vector.shape_cast %91 : vector<8xf32> to vector<8x1xf32>
    %93 = tpu.reciprocal %92 {approx = true} : vector<8x1xf32> -> vector<8x1xf32>
    %94 = vector.broadcast %93 : vector<8x1xf32> to vector<8x8xf32>
    %95 = arith.mulf %90, %94 : vector<8x8xf32>
    %cst_39 = arith.constant dense<0.000000e+00> : vector<8x8xf32>
    %96 = tpu.matmul %95, %78, %cst_39 {dimension_numbers = #tpu.dot_dimension_numbers<[1], [0], [0], [1], [0, 0, 1, 1], [], []>} : vector<8x8xf32>, vector<8x8xf32>, vector<8x8xf32> -> vector<8x8xf32>
    %97 = vector.extract_strided_slice %29 {offsets = [0, 24], sizes = [8, 8], strides = [1, 1]} : vector<8x32xf32> to vector<8x8xf32>
    %98 = vector.extract_strided_slice %30 {offsets = [0, 24], sizes = [8, 8], strides = [1, 1]} : vector<8x32xf32> to vector<8x8xf32>
    %99 = vector.extract_strided_slice %31 {offsets = [0, 24], sizes = [8, 8], strides = [1, 1]} : vector<8x32xf32> to vector<8x8xf32>
    %cst_40 = arith.constant dense<0.000000e+00> : vector<8x8xf32>
    %100 = tpu.matmul %97, %98, %cst_40 {dimension_numbers = #tpu.dot_dimension_numbers<[1], [1], [0], [0], [0, 0, 1, 0], [], []>} : vector<8x8xf32>, vector<8x8xf32>, vector<8x8xf32> -> vector<8x8xf32>
    %cst_41 = arith.constant 0.353553385 : f32
    %101 = vector.broadcast %cst_41 : f32 to vector<8x8xf32>
    %102 = arith.mulf %100, %101 : vector<8x8xf32>
    %cst_42 = arith.constant 0.000000e+00 : f32
    %103 = vector.broadcast %cst_42 : f32 to vector<8x8xf32>
    %104 = arith.cmpf oeq, %33, %103 : vector<8x8xf32>
    %cst_43 = arith.constant -1.000000e+09 : f32
    %105 = vector.broadcast %cst_43 : f32 to vector<8x8xf32>
    %106 = arith.select %104, %105, %102 : vector<8x8xi1>, vector<8x8xf32>
    %cst_44 = arith.constant dense<0xFF800000> : vector<8xf32>
    %107 = vector.multi_reduction <maximumf>, %106, %cst_44 [1] : vector<8x8xf32> to vector<8xf32>
    %108 = vector.shape_cast %107 : vector<8xf32> to vector<8x1xf32>
    %109 = vector.broadcast %108 : vector<8x1xf32> to vector<8x8xf32>
    %110 = arith.subf %106, %109 : vector<8x8xf32>
    %111 = math.exp %110 : vector<8x8xf32>
    %cst_45 = arith.constant dense<0.000000e+00> : vector<8xf32>
    %112 = vector.multi_reduction <add>, %111, %cst_45 [1] : vector<8x8xf32> to vector<8xf32>
    %113 = vector.shape_cast %112 : vector<8xf32> to vector<8x1xf32>
    %114 = tpu.reciprocal %113 {approx = true} : vector<8x1xf32> -> vector<8x1xf32>
    %115 = vector.broadcast %114 : vector<8x1xf32> to vector<8x8xf32>
    %116 = arith.mulf %111, %115 : vector<8x8xf32>
    %cst_46 = arith.constant dense<0.000000e+00> : vector<8x8xf32>
    %117 = tpu.matmul %116, %99, %cst_46 {dimension_numbers = #tpu.dot_dimension_numbers<[1], [0], [0], [1], [0, 0, 1, 1], [], []>} : vector<8x8xf32>, vector<8x8xf32>, vector<8x8xf32> -> vector<8x8xf32>
    %118 = tpu.concatenate %54, %75, %96, %117 in 1 : vector<8x8xf32>, vector<8x8xf32>, vector<8x8xf32>, vector<8x8xf32> -> vector<8x32xf32>
    %c0_47 = arith.constant 0 : index
    %c0_48 = arith.constant 0 : index
    %119 = vector.load %arg7[%c0_47, %c0_48] : memref<32x32xf32, #tpu.memory_space<vmem>>, vector<32x32xf32>
    %cst_49 = arith.constant dense<0.000000e+00> : vector<8x32xf32>
    %120 = tpu.matmul %118, %119, %cst_49 {dimension_numbers = #tpu.dot_dimension_numbers<[1], [0], [0], [1], [0, 0, 1, 1], [], []>} : vector<8x32xf32>, vector<32x32xf32>, vector<8x32xf32> -> vector<8x32xf32>
    %c0_50 = arith.constant 0 : index
    %c0_51 = arith.constant 0 : index
    %121 = vector.load %arg8[%c0_50, %c0_51] : memref<1x32xf32, #tpu.memory_space<vmem>>, vector<1x32xf32>
    %122 = vector.broadcast %121 : vector<1x32xf32> to vector<8x32xf32>
    %123 = arith.addf %120, %122 : vector<8x32xf32>
    %124 = arith.addf %1, %123 : vector<8x32xf32>
    %c0_52 = arith.constant 0 : index
    %c0_53 = arith.constant 0 : index
    %c0_54 = arith.constant 0 : index
    %125 = vector.load %arg9[%c0_52, %c0_53, %c0_54] : memref<1x8x32xf32, #tpu.memory_space<vmem>>, vector<1x8x32xf32>
    %126 = vector.shape_cast %125 : vector<1x8x32xf32> to vector<8x32xf32>
    %127 = vector.shape_cast %124 : vector<8x32xf32> to vector<1x8x32xf32>
    tpu.vector_store %arg9[%c0_52, %c0_53, %c0_54], %127 {strides = array<i32>} : memref<1x8x32xf32, #tpu.memory_space<vmem>>, vector<1x8x32xf32>,
    return
  }
  func.func @transform_0(%arg0: i32) -> (i32, i32, i32) {
    %c0_i32 = arith.constant 0 : i32
    %c0_i32_0 = arith.constant 0 : i32
    %c0_i32_1 = arith.constant 0 : i32
    return %arg0, %c0_i32, %c0_i32_0 : i32, i32, i32
  }
  func.func @transform_1(%arg0: i32) -> (i32, i32, i32, i32) {
    %c0_i32 = arith.constant 0 : i32
    %c0_i32_0 = arith.constant 0 : i32
    %c0_i32_1 = arith.constant 0 : i32
    %c0_i32_2 = arith.constant 0 : i32
    %c0_i32_3 = arith.constant 0 : i32
    return %c0_i32, %c0_i32_0, %c0_i32_1, %c0_i32_2 : i32, i32, i32, i32
  }
  func.func @transform_2(%arg0: i32) -> (i32, i32) {
    %c0_i32 = arith.constant 0 : i32
    %c0_i32_0 = arith.constant 0 : i32
    %c0_i32_1 = arith.constant 0 : i32
    return %c0_i32, %c0_i32_0 : i32, i32
  }
  func.func @transform_3(%arg0: i32) -> (i32, i32) {
    %c0_i32 = arith.constant 0 : i32
    %c0_i32_0 = arith.constant 0 : i32
    %c0_i32_1 = arith.constant 0 : i32
    return %c0_i32, %c0_i32_0 : i32, i32
  }
  func.func @transform_4(%arg0: i32) -> (i32, i32) {
    %c0_i32 = arith.constant 0 : i32
    %c0_i32_0 = arith.constant 0 : i32
    %c0_i32_1 = arith.constant 0 : i32
    return %c0_i32, %c0_i32_0 : i32, i32
  }
  func.func @transform_5(%arg0: i32) -> (i32, i32) {
    %c0_i32 = arith.constant 0 : i32
    %c0_i32_0 = arith.constant 0 : i32
    %c0_i32_1 = arith.constant 0 : i32
    return %c0_i32, %c0_i32_0 : i32, i32
  }
  func.func @transform_6(%arg0: i32) -> (i32, i32) {
    %c0_i32 = arith.constant 0 : i32
    %c0_i32_0 = arith.constant 0 : i32
    %c0_i32_1 = arith.constant 0 : i32
    return %c0_i32, %c0_i32_0 : i32, i32
  }
  func.func @transform_7(%arg0: i32) -> (i32, i32) {
    %c0_i32 = arith.constant 0 : i32
    %c0_i32_0 = arith.constant 0 : i32
    %c0_i32_1 = arith.constant 0 : i32
    return %c0_i32, %c0_i32_0 : i32, i32
  }
  func.func @transform_8(%arg0: i32) -> (i32, i32, i32) {
    %c0_i32 = arith.constant 0 : i32
    %c0_i32_0 = arith.constant 0 : i32
    %c0_i32_1 = arith.constant 0 : i32
    return %arg0, %c0_i32, %c0_i32_0 : i32, i32, i32
  }
}

module attributes {stable_mosaic.version = 11 : i64} {
  func.func @_layernorm_kernel(%arg0: i32, %arg1: memref<16x32xf32, #tpu.memory_space<vmem>>, %arg2: memref<1x32xf32, #tpu.memory_space<vmem>>, %arg3: memref<1x32xf32, #tpu.memory_space<vmem>>, %arg4: memref<16x32xf32, #tpu.memory_space<vmem>>) attributes {dimension_semantics = [#tpu.dimension_semantics<parallel>], iteration_bounds = array<i64: 1>, scalar_prefetch = 0 : i64, scratch_operands = 0 : i64, tpu.core_type = #tpu.core_type<tc>, window_params = [{transform_indices = @transform_0, window_bounds = array<i64: 16, 32>}, {pipeline_mode = #tpu.pipeline_mode<synchronous>, transform_indices = @transform_1, window_bounds = array<i64: 1, 32>}, {pipeline_mode = #tpu.pipeline_mode<synchronous>, transform_indices = @transform_2, window_bounds = array<i64: 1, 32>}, {transform_indices = @transform_3, window_bounds = array<i64: 16, 32>}]} {
    %c0 = arith.constant 0 : index
    %c0_0 = arith.constant 0 : index
    %0 = vector.load %arg1[%c0, %c0_0] : memref<16x32xf32, #tpu.memory_space<vmem>>, vector<16x32xf32>
    %c0_1 = arith.constant 0 : index
    %c0_2 = arith.constant 0 : index
    %1 = vector.load %arg2[%c0_1, %c0_2] : memref<1x32xf32, #tpu.memory_space<vmem>>, vector<1x32xf32>
    %c0_3 = arith.constant 0 : index
    %c0_4 = arith.constant 0 : index
    %2 = vector.load %arg3[%c0_3, %c0_4] : memref<1x32xf32, #tpu.memory_space<vmem>>, vector<1x32xf32>
    %cst = arith.constant dense<0.000000e+00> : vector<16xf32>
    %3 = vector.multi_reduction <add>, %0, %cst [1] : vector<16x32xf32> to vector<16xf32>
    %4 = vector.shape_cast %3 : vector<16xf32> to vector<16x1xf32>
    %cst_5 = arith.constant 3.200000e+01 : f32
    %5 = vector.broadcast %cst_5 : f32 to vector<16x1xf32>
    %6 = arith.divf %4, %5 : vector<16x1xf32>
    %7 = vector.broadcast %6 : vector<16x1xf32> to vector<16x32xf32>
    %8 = arith.subf %0, %7 : vector<16x32xf32>
    %9 = arith.mulf %8, %8 : vector<16x32xf32>
    %cst_6 = arith.constant dense<0.000000e+00> : vector<16xf32>
    %10 = vector.multi_reduction <add>, %9, %cst_6 [1] : vector<16x32xf32> to vector<16xf32>
    %11 = vector.shape_cast %10 : vector<16xf32> to vector<16x1xf32>
    %cst_7 = arith.constant 0.0322580636 : f32
    %12 = vector.broadcast %cst_7 : f32 to vector<16x1xf32>
    %13 = arith.mulf %11, %12 : vector<16x1xf32>
    %cst_8 = arith.constant 9.99999997E-7 : f32
    %14 = vector.broadcast %cst_8 : f32 to vector<16x1xf32>
    %15 = arith.addf %13, %14 : vector<16x1xf32>
    %16 = math.rsqrt %15 : vector<16x1xf32>
    %17 = vector.broadcast %16 : vector<16x1xf32> to vector<16x32xf32>
    %18 = arith.mulf %8, %17 : vector<16x32xf32>
    %19 = vector.broadcast %1 : vector<1x32xf32> to vector<16x32xf32>
    %20 = arith.mulf %19, %18 : vector<16x32xf32>
    %21 = vector.broadcast %2 : vector<1x32xf32> to vector<16x32xf32>
    %22 = arith.addf %20, %21 : vector<16x32xf32>
    %c0_9 = arith.constant 0 : index
    %c0_10 = arith.constant 0 : index
    %23 = vector.load %arg4[%c0_9, %c0_10] : memref<16x32xf32, #tpu.memory_space<vmem>>, vector<16x32xf32>
    tpu.vector_store %arg4[%c0_9, %c0_10], %22 {strides = array<i32>} : memref<16x32xf32, #tpu.memory_space<vmem>>, vector<16x32xf32>,
    return
  }
  func.func @transform_0(%arg0: i32) -> (i32, i32) {
    %c0_i32 = arith.constant 0 : i32
    %c0_i32_0 = arith.constant 0 : i32
    return %arg0, %c0_i32 : i32, i32
  }
  func.func @transform_1(%arg0: i32) -> (i32, i32) {
    %c0_i32 = arith.constant 0 : i32
    %c0_i32_0 = arith.constant 0 : i32
    %c0_i32_1 = arith.constant 0 : i32
    return %c0_i32, %c0_i32_0 : i32, i32
  }
  func.func @transform_2(%arg0: i32) -> (i32, i32) {
    %c0_i32 = arith.constant 0 : i32
    %c0_i32_0 = arith.constant 0 : i32
    %c0_i32_1 = arith.constant 0 : i32
    return %c0_i32, %c0_i32_0 : i32, i32
  }
  func.func @transform_3(%arg0: i32) -> (i32, i32) {
    %c0_i32 = arith.constant 0 : i32
    %c0_i32_0 = arith.constant 0 : i32
    return %arg0, %c0_i32 : i32, i32
  }
}

module attributes {stable_mosaic.version = 11 : i64} {
  func.func @_cross_attn_kernel(%arg0: i32, %arg1: memref<1x8x32xf32, #tpu.memory_space<vmem>>, %arg2: memref<1x8x32xf32, #tpu.memory_space<vmem>>, %arg3: memref<1x1x8x8xf32, #tpu.memory_space<vmem>>, %arg4: memref<1x32xf32, #tpu.memory_space<vmem>>, %arg5: memref<1x32xf32, #tpu.memory_space<vmem>>, %arg6: memref<32x32xf32, #tpu.memory_space<vmem>>, %arg7: memref<1x32xf32, #tpu.memory_space<vmem>>, %arg8: memref<32x64xf32, #tpu.memory_space<vmem>>, %arg9: memref<1x64xf32, #tpu.memory_space<vmem>>, %arg10: memref<32x32xf32, #tpu.memory_space<vmem>>, %arg11: memref<1x32xf32, #tpu.memory_space<vmem>>, %arg12: memref<1x8x32xf32, #tpu.memory_space<vmem>>) attributes {dimension_semantics = [#tpu.dimension_semantics<parallel>], iteration_bounds = array<i64: 2>, scalar_prefetch = 0 : i64, scratch_operands = 0 : i64, tpu.core_type = #tpu.core_type<tc>, window_params = [{transform_indices = @transform_0, window_bounds = array<i64: 1, 8, 32>}, {transform_indices = @transform_1, window_bounds = array<i64: 1, 8, 32>}, {pipeline_mode = #tpu.pipeline_mode<synchronous>, transform_indices = @transform_2, window_bounds = array<i64: 1, 1, 8, 8>}, {pipeline_mode = #tpu.pipeline_mode<synchronous>, transform_indices = @transform_3, window_bounds = array<i64: 1, 32>}, {pipeline_mode = #tpu.pipeline_mode<synchronous>, transform_indices = @transform_4, window_bounds = array<i64: 1, 32>}, {pipeline_mode = #tpu.pipeline_mode<synchronous>, transform_indices = @transform_5, window_bounds = array<i64: 32, 32>}, {pipeline_mode = #tpu.pipeline_mode<synchronous>, transform_indices = @transform_6, window_bounds = array<i64: 1, 32>}, {pipeline_mode = #tpu.pipeline_mode<synchronous>, transform_indices = @transform_7, window_bounds = array<i64: 32, 64>}, {pipeline_mode = #tpu.pipeline_mode<synchronous>, transform_indices = @transform_8, window_bounds = array<i64: 1, 64>}, {pipeline_mode = #tpu.pipeline_mode<synchronous>, transform_indices = @transform_9, window_bounds = array<i64: 32, 32>}, {pipeline_mode = #tpu.pipeline_mode<synchronous>, transform_indices = @transform_10, window_bounds = array<i64: 1, 32>}, {transform_indices = @transform_11, window_bounds = array<i64: 1, 8, 32>}]} {
    %c0 = arith.constant 0 : index
    %c0_0 = arith.constant 0 : index
    %c0_1 = arith.constant 0 : index
    %0 = vector.load %arg1[%c0, %c0_0, %c0_1] : memref<1x8x32xf32, #tpu.memory_space<vmem>>, vector<1x8x32xf32>
    %1 = vector.shape_cast %0 : vector<1x8x32xf32> to vector<8x32xf32>
    %c0_2 = arith.constant 0 : index
    %c0_3 = arith.constant 0 : index
    %c0_4 = arith.constant 0 : index
    %2 = vector.load %arg2[%c0_2, %c0_3, %c0_4] : memref<1x8x32xf32, #tpu.memory_space<vmem>>, vector<1x8x32xf32>
    %3 = vector.shape_cast %2 : vector<1x8x32xf32> to vector<8x32xf32>
    %c0_5 = arith.constant 0 : index
    %c0_6 = arith.constant 0 : index
    %4 = vector.load %arg4[%c0_5, %c0_6] : memref<1x32xf32, #tpu.memory_space<vmem>>, vector<1x32xf32>
    %c0_7 = arith.constant 0 : index
    %c0_8 = arith.constant 0 : index
    %5 = vector.load %arg5[%c0_7, %c0_8] : memref<1x32xf32, #tpu.memory_space<vmem>>, vector<1x32xf32>
    %cst = arith.constant dense<0.000000e+00> : vector<8xf32>
    %6 = vector.multi_reduction <add>, %1, %cst [1] : vector<8x32xf32> to vector<8xf32>
    %7 = vector.shape_cast %6 : vector<8xf32> to vector<8x1xf32>
    %cst_9 = arith.constant 3.200000e+01 : f32
    %8 = vector.broadcast %cst_9 : f32 to vector<8x1xf32>
    %9 = arith.divf %7, %8 : vector<8x1xf32>
    %10 = vector.broadcast %9 : vector<8x1xf32> to vector<8x32xf32>
    %11 = arith.subf %1, %10 : vector<8x32xf32>
    %12 = arith.mulf %11, %11 : vector<8x32xf32>
    %cst_10 = arith.constant dense<0.000000e+00> : vector<8xf32>
    %13 = vector.multi_reduction <add>, %12, %cst_10 [1] : vector<8x32xf32> to vector<8xf32>
    %14 = vector.shape_cast %13 : vector<8xf32> to vector<8x1xf32>
    %cst_11 = arith.constant 0.0322580636 : f32
    %15 = vector.broadcast %cst_11 : f32 to vector<8x1xf32>
    %16 = arith.mulf %14, %15 : vector<8x1xf32>
    %cst_12 = arith.constant 9.99999997E-7 : f32
    %17 = vector.broadcast %cst_12 : f32 to vector<8x1xf32>
    %18 = arith.addf %16, %17 : vector<8x1xf32>
    %19 = math.rsqrt %18 : vector<8x1xf32>
    %20 = vector.broadcast %19 : vector<8x1xf32> to vector<8x32xf32>
    %21 = arith.mulf %11, %20 : vector<8x32xf32>
    %22 = vector.broadcast %4 : vector<1x32xf32> to vector<8x32xf32>
    %23 = arith.mulf %22, %21 : vector<8x32xf32>
    %24 = vector.broadcast %5 : vector<1x32xf32> to vector<8x32xf32>
    %25 = arith.addf %23, %24 : vector<8x32xf32>
    %c0_13 = arith.constant 0 : index
    %c0_14 = arith.constant 0 : index
    %26 = vector.load %arg6[%c0_13, %c0_14] : memref<32x32xf32, #tpu.memory_space<vmem>>, vector<32x32xf32>
    %cst_15 = arith.constant dense<0.000000e+00> : vector<8x32xf32>
    %27 = tpu.matmul %25, %26, %cst_15 {dimension_numbers = #tpu.dot_dimension_numbers<[1], [0], [0], [1], [0, 0, 1, 1], [], []>} : vector<8x32xf32>, vector<32x32xf32>, vector<8x32xf32> -> vector<8x32xf32>
    %c0_16 = arith.constant 0 : index
    %c0_17 = arith.constant 0 : index
    %28 = vector.load %arg7[%c0_16, %c0_17] : memref<1x32xf32, #tpu.memory_space<vmem>>, vector<1x32xf32>
    %29 = vector.broadcast %28 : vector<1x32xf32> to vector<8x32xf32>
    %30 = arith.addf %27, %29 : vector<8x32xf32>
    %c0_18 = arith.constant 0 : index
    %c0_19 = arith.constant 0 : index
    %31 = vector.load %arg8[%c0_18, %c0_19] : memref<32x64xf32, #tpu.memory_space<vmem>>, vector<32x64xf32>
    %cst_20 = arith.constant dense<0.000000e+00> : vector<8x64xf32>
    %32 = tpu.matmul %3, %31, %cst_20 {dimension_numbers = #tpu.dot_dimension_numbers<[1], [0], [0], [1], [0, 0, 1, 1], [], []>} : vector<8x32xf32>, vector<32x64xf32>, vector<8x64xf32> -> vector<8x64xf32>
    %c0_21 = arith.constant 0 : index
    %c0_22 = arith.constant 0 : index
    %33 = vector.load %arg9[%c0_21, %c0_22] : memref<1x64xf32, #tpu.memory_space<vmem>>, vector<1x64xf32>
    %34 = vector.broadcast %33 : vector<1x64xf32> to vector<8x64xf32>
    %35 = arith.addf %32, %34 : vector<8x64xf32>
    %36 = vector.extract_strided_slice %35 {offsets = [0, 0], sizes = [8, 32], strides = [1, 1]} : vector<8x64xf32> to vector<8x32xf32>
    %37 = vector.extract_strided_slice %35 {offsets = [0, 32], sizes = [8, 32], strides = [1, 1]} : vector<8x64xf32> to vector<8x32xf32>
    %c0_23 = arith.constant 0 : index
    %c0_24 = arith.constant 0 : index
    %c0_25 = arith.constant 0 : index
    %c0_26 = arith.constant 0 : index
    %38 = vector.load %arg3[%c0_23, %c0_24, %c0_25, %c0_26] : memref<1x1x8x8xf32, #tpu.memory_space<vmem>>, vector<1x1x8x8xf32>
    %39 = vector.shape_cast %38 : vector<1x1x8x8xf32> to vector<8x8xf32>
    %40 = vector.extract_strided_slice %30 {offsets = [0, 0], sizes = [8, 8], strides = [1, 1]} : vector<8x32xf32> to vector<8x8xf32>
    %41 = vector.extract_strided_slice %36 {offsets = [0, 0], sizes = [8, 8], strides = [1, 1]} : vector<8x32xf32> to vector<8x8xf32>
    %42 = vector.extract_strided_slice %37 {offsets = [0, 0], sizes = [8, 8], strides = [1, 1]} : vector<8x32xf32> to vector<8x8xf32>
    %cst_27 = arith.constant dense<0.000000e+00> : vector<8x8xf32>
    %43 = tpu.matmul %40, %41, %cst_27 {dimension_numbers = #tpu.dot_dimension_numbers<[1], [1], [0], [0], [0, 0, 1, 0], [], []>} : vector<8x8xf32>, vector<8x8xf32>, vector<8x8xf32> -> vector<8x8xf32>
    %cst_28 = arith.constant 0.353553385 : f32
    %44 = vector.broadcast %cst_28 : f32 to vector<8x8xf32>
    %45 = arith.mulf %43, %44 : vector<8x8xf32>
    %cst_29 = arith.constant 0.000000e+00 : f32
    %46 = vector.broadcast %cst_29 : f32 to vector<8x8xf32>
    %47 = arith.cmpf oeq, %39, %46 : vector<8x8xf32>
    %cst_30 = arith.constant -1.000000e+09 : f32
    %48 = vector.broadcast %cst_30 : f32 to vector<8x8xf32>
    %49 = arith.select %47, %48, %45 : vector<8x8xi1>, vector<8x8xf32>
    %cst_31 = arith.constant dense<0xFF800000> : vector<8xf32>
    %50 = vector.multi_reduction <maximumf>, %49, %cst_31 [1] : vector<8x8xf32> to vector<8xf32>
    %51 = vector.shape_cast %50 : vector<8xf32> to vector<8x1xf32>
    %52 = vector.broadcast %51 : vector<8x1xf32> to vector<8x8xf32>
    %53 = arith.subf %49, %52 : vector<8x8xf32>
    %54 = math.exp %53 : vector<8x8xf32>
    %cst_32 = arith.constant dense<0.000000e+00> : vector<8xf32>
    %55 = vector.multi_reduction <add>, %54, %cst_32 [1] : vector<8x8xf32> to vector<8xf32>
    %56 = vector.shape_cast %55 : vector<8xf32> to vector<8x1xf32>
    %57 = tpu.reciprocal %56 {approx = true} : vector<8x1xf32> -> vector<8x1xf32>
    %58 = vector.broadcast %57 : vector<8x1xf32> to vector<8x8xf32>
    %59 = arith.mulf %54, %58 : vector<8x8xf32>
    %cst_33 = arith.constant dense<0.000000e+00> : vector<8x8xf32>
    %60 = tpu.matmul %59, %42, %cst_33 {dimension_numbers = #tpu.dot_dimension_numbers<[1], [0], [0], [1], [0, 0, 1, 1], [], []>} : vector<8x8xf32>, vector<8x8xf32>, vector<8x8xf32> -> vector<8x8xf32>
    %61 = vector.extract_strided_slice %30 {offsets = [0, 8], sizes = [8, 8], strides = [1, 1]} : vector<8x32xf32> to vector<8x8xf32>
    %62 = vector.extract_strided_slice %36 {offsets = [0, 8], sizes = [8, 8], strides = [1, 1]} : vector<8x32xf32> to vector<8x8xf32>
    %63 = vector.extract_strided_slice %37 {offsets = [0, 8], sizes = [8, 8], strides = [1, 1]} : vector<8x32xf32> to vector<8x8xf32>
    %cst_34 = arith.constant dense<0.000000e+00> : vector<8x8xf32>
    %64 = tpu.matmul %61, %62, %cst_34 {dimension_numbers = #tpu.dot_dimension_numbers<[1], [1], [0], [0], [0, 0, 1, 0], [], []>} : vector<8x8xf32>, vector<8x8xf32>, vector<8x8xf32> -> vector<8x8xf32>
    %cst_35 = arith.constant 0.353553385 : f32
    %65 = vector.broadcast %cst_35 : f32 to vector<8x8xf32>
    %66 = arith.mulf %64, %65 : vector<8x8xf32>
    %cst_36 = arith.constant 0.000000e+00 : f32
    %67 = vector.broadcast %cst_36 : f32 to vector<8x8xf32>
    %68 = arith.cmpf oeq, %39, %67 : vector<8x8xf32>
    %cst_37 = arith.constant -1.000000e+09 : f32
    %69 = vector.broadcast %cst_37 : f32 to vector<8x8xf32>
    %70 = arith.select %68, %69, %66 : vector<8x8xi1>, vector<8x8xf32>
    %cst_38 = arith.constant dense<0xFF800000> : vector<8xf32>
    %71 = vector.multi_reduction <maximumf>, %70, %cst_38 [1] : vector<8x8xf32> to vector<8xf32>
    %72 = vector.shape_cast %71 : vector<8xf32> to vector<8x1xf32>
    %73 = vector.broadcast %72 : vector<8x1xf32> to vector<8x8xf32>
    %74 = arith.subf %70, %73 : vector<8x8xf32>
    %75 = math.exp %74 : vector<8x8xf32>
    %cst_39 = arith.constant dense<0.000000e+00> : vector<8xf32>
    %76 = vector.multi_reduction <add>, %75, %cst_39 [1] : vector<8x8xf32> to vector<8xf32>
    %77 = vector.shape_cast %76 : vector<8xf32> to vector<8x1xf32>
    %78 = tpu.reciprocal %77 {approx = true} : vector<8x1xf32> -> vector<8x1xf32>
    %79 = vector.broadcast %78 : vector<8x1xf32> to vector<8x8xf32>
    %80 = arith.mulf %75, %79 : vector<8x8xf32>
    %cst_40 = arith.constant dense<0.000000e+00> : vector<8x8xf32>
    %81 = tpu.matmul %80, %63, %cst_40 {dimension_numbers = #tpu.dot_dimension_numbers<[1], [0], [0], [1], [0, 0, 1, 1], [], []>} : vector<8x8xf32>, vector<8x8xf32>, vector<8x8xf32> -> vector<8x8xf32>
    %82 = vector.extract_strided_slice %30 {offsets = [0, 16], sizes = [8, 8], strides = [1, 1]} : vector<8x32xf32> to vector<8x8xf32>
    %83 = vector.extract_strided_slice %36 {offsets = [0, 16], sizes = [8, 8], strides = [1, 1]} : vector<8x32xf32> to vector<8x8xf32>
    %84 = vector.extract_strided_slice %37 {offsets = [0, 16], sizes = [8, 8], strides = [1, 1]} : vector<8x32xf32> to vector<8x8xf32>
    %cst_41 = arith.constant dense<0.000000e+00> : vector<8x8xf32>
    %85 = tpu.matmul %82, %83, %cst_41 {dimension_numbers = #tpu.dot_dimension_numbers<[1], [1], [0], [0], [0, 0, 1, 0], [], []>} : vector<8x8xf32>, vector<8x8xf32>, vector<8x8xf32> -> vector<8x8xf32>
    %cst_42 = arith.constant 0.353553385 : f32
    %86 = vector.broadcast %cst_42 : f32 to vector<8x8xf32>
    %87 = arith.mulf %85, %86 : vector<8x8xf32>
    %cst_43 = arith.constant 0.000000e+00 : f32
    %88 = vector.broadcast %cst_43 : f32 to vector<8x8xf32>
    %89 = arith.cmpf oeq, %39, %88 : vector<8x8xf32>
    %cst_44 = arith.constant -1.000000e+09 : f32
    %90 = vector.broadcast %cst_44 : f32 to vector<8x8xf32>
    %91 = arith.select %89, %90, %87 : vector<8x8xi1>, vector<8x8xf32>
    %cst_45 = arith.constant dense<0xFF800000> : vector<8xf32>
    %92 = vector.multi_reduction <maximumf>, %91, %cst_45 [1] : vector<8x8xf32> to vector<8xf32>
    %93 = vector.shape_cast %92 : vector<8xf32> to vector<8x1xf32>
    %94 = vector.broadcast %93 : vector<8x1xf32> to vector<8x8xf32>
    %95 = arith.subf %91, %94 : vector<8x8xf32>
    %96 = math.exp %95 : vector<8x8xf32>
    %cst_46 = arith.constant dense<0.000000e+00> : vector<8xf32>
    %97 = vector.multi_reduction <add>, %96, %cst_46 [1] : vector<8x8xf32> to vector<8xf32>
    %98 = vector.shape_cast %97 : vector<8xf32> to vector<8x1xf32>
    %99 = tpu.reciprocal %98 {approx = true} : vector<8x1xf32> -> vector<8x1xf32>
    %100 = vector.broadcast %99 : vector<8x1xf32> to vector<8x8xf32>
    %101 = arith.mulf %96, %100 : vector<8x8xf32>
    %cst_47 = arith.constant dense<0.000000e+00> : vector<8x8xf32>
    %102 = tpu.matmul %101, %84, %cst_47 {dimension_numbers = #tpu.dot_dimension_numbers<[1], [0], [0], [1], [0, 0, 1, 1], [], []>} : vector<8x8xf32>, vector<8x8xf32>, vector<8x8xf32> -> vector<8x8xf32>
    %103 = vector.extract_strided_slice %30 {offsets = [0, 24], sizes = [8, 8], strides = [1, 1]} : vector<8x32xf32> to vector<8x8xf32>
    %104 = vector.extract_strided_slice %36 {offsets = [0, 24], sizes = [8, 8], strides = [1, 1]} : vector<8x32xf32> to vector<8x8xf32>
    %105 = vector.extract_strided_slice %37 {offsets = [0, 24], sizes = [8, 8], strides = [1, 1]} : vector<8x32xf32> to vector<8x8xf32>
    %cst_48 = arith.constant dense<0.000000e+00> : vector<8x8xf32>
    %106 = tpu.matmul %103, %104, %cst_48 {dimension_numbers = #tpu.dot_dimension_numbers<[1], [1], [0], [0], [0, 0, 1, 0], [], []>} : vector<8x8xf32>, vector<8x8xf32>, vector<8x8xf32> -> vector<8x8xf32>
    %cst_49 = arith.constant 0.353553385 : f32
    %107 = vector.broadcast %cst_49 : f32 to vector<8x8xf32>
    %108 = arith.mulf %106, %107 : vector<8x8xf32>
    %cst_50 = arith.constant 0.000000e+00 : f32
    %109 = vector.broadcast %cst_50 : f32 to vector<8x8xf32>
    %110 = arith.cmpf oeq, %39, %109 : vector<8x8xf32>
    %cst_51 = arith.constant -1.000000e+09 : f32
    %111 = vector.broadcast %cst_51 : f32 to vector<8x8xf32>
    %112 = arith.select %110, %111, %108 : vector<8x8xi1>, vector<8x8xf32>
    %cst_52 = arith.constant dense<0xFF800000> : vector<8xf32>
    %113 = vector.multi_reduction <maximumf>, %112, %cst_52 [1] : vector<8x8xf32> to vector<8xf32>
    %114 = vector.shape_cast %113 : vector<8xf32> to vector<8x1xf32>
    %115 = vector.broadcast %114 : vector<8x1xf32> to vector<8x8xf32>
    %116 = arith.subf %112, %115 : vector<8x8xf32>
    %117 = math.exp %116 : vector<8x8xf32>
    %cst_53 = arith.constant dense<0.000000e+00> : vector<8xf32>
    %118 = vector.multi_reduction <add>, %117, %cst_53 [1] : vector<8x8xf32> to vector<8xf32>
    %119 = vector.shape_cast %118 : vector<8xf32> to vector<8x1xf32>
    %120 = tpu.reciprocal %119 {approx = true} : vector<8x1xf32> -> vector<8x1xf32>
    %121 = vector.broadcast %120 : vector<8x1xf32> to vector<8x8xf32>
    %122 = arith.mulf %117, %121 : vector<8x8xf32>
    %cst_54 = arith.constant dense<0.000000e+00> : vector<8x8xf32>
    %123 = tpu.matmul %122, %105, %cst_54 {dimension_numbers = #tpu.dot_dimension_numbers<[1], [0], [0], [1], [0, 0, 1, 1], [], []>} : vector<8x8xf32>, vector<8x8xf32>, vector<8x8xf32> -> vector<8x8xf32>
    %124 = tpu.concatenate %60, %81, %102, %123 in 1 : vector<8x8xf32>, vector<8x8xf32>, vector<8x8xf32>, vector<8x8xf32> -> vector<8x32xf32>
    %c0_55 = arith.constant 0 : index
    %c0_56 = arith.constant 0 : index
    %125 = vector.load %arg10[%c0_55, %c0_56] : memref<32x32xf32, #tpu.memory_space<vmem>>, vector<32x32xf32>
    %cst_57 = arith.constant dense<0.000000e+00> : vector<8x32xf32>
    %126 = tpu.matmul %124, %125, %cst_57 {dimension_numbers = #tpu.dot_dimension_numbers<[1], [0], [0], [1], [0, 0, 1, 1], [], []>} : vector<8x32xf32>, vector<32x32xf32>, vector<8x32xf32> -> vector<8x32xf32>
    %c0_58 = arith.constant 0 : index
    %c0_59 = arith.constant 0 : index
    %127 = vector.load %arg11[%c0_58, %c0_59] : memref<1x32xf32, #tpu.memory_space<vmem>>, vector<1x32xf32>
    %128 = vector.broadcast %127 : vector<1x32xf32> to vector<8x32xf32>
    %129 = arith.addf %126, %128 : vector<8x32xf32>
    %130 = arith.addf %1, %129 : vector<8x32xf32>
    %c0_60 = arith.constant 0 : index
    %c0_61 = arith.constant 0 : index
    %c0_62 = arith.constant 0 : index
    %131 = vector.load %arg12[%c0_60, %c0_61, %c0_62] : memref<1x8x32xf32, #tpu.memory_space<vmem>>, vector<1x8x32xf32>
    %132 = vector.shape_cast %131 : vector<1x8x32xf32> to vector<8x32xf32>
    %133 = vector.shape_cast %130 : vector<8x32xf32> to vector<1x8x32xf32>
    tpu.vector_store %arg12[%c0_60, %c0_61, %c0_62], %133 {strides = array<i32>} : memref<1x8x32xf32, #tpu.memory_space<vmem>>, vector<1x8x32xf32>,
    return
  }
  func.func @transform_0(%arg0: i32) -> (i32, i32, i32) {
    %c0_i32 = arith.constant 0 : i32
    %c0_i32_0 = arith.constant 0 : i32
    %c0_i32_1 = arith.constant 0 : i32
    return %arg0, %c0_i32, %c0_i32_0 : i32, i32, i32
  }
  func.func @transform_1(%arg0: i32) -> (i32, i32, i32) {
    %c0_i32 = arith.constant 0 : i32
    %c0_i32_0 = arith.constant 0 : i32
    %c0_i32_1 = arith.constant 0 : i32
    return %arg0, %c0_i32, %c0_i32_0 : i32, i32, i32
  }
  func.func @transform_2(%arg0: i32) -> (i32, i32, i32, i32) {
    %c0_i32 = arith.constant 0 : i32
    %c0_i32_0 = arith.constant 0 : i32
    %c0_i32_1 = arith.constant 0 : i32
    %c0_i32_2 = arith.constant 0 : i32
    %c0_i32_3 = arith.constant 0 : i32
    return %c0_i32, %c0_i32_0, %c0_i32_1, %c0_i32_2 : i32, i32, i32, i32
  }
  func.func @transform_3(%arg0: i32) -> (i32, i32) {
    %c0_i32 = arith.constant 0 : i32
    %c0_i32_0 = arith.constant 0 : i32
    %c0_i32_1 = arith.constant 0 : i32
    return %c0_i32, %c0_i32_0 : i32, i32
  }
  func.func @transform_4(%arg0: i32) -> (i32, i32) {
    %c0_i32 = arith.constant 0 : i32
    %c0_i32_0 = arith.constant 0 : i32
    %c0_i32_1 = arith.constant 0 : i32
    return %c0_i32, %c0_i32_0 : i32, i32
  }
  func.func @transform_5(%arg0: i32) -> (i32, i32) {
    %c0_i32 = arith.constant 0 : i32
    %c0_i32_0 = arith.constant 0 : i32
    %c0_i32_1 = arith.constant 0 : i32
    return %c0_i32, %c0_i32_0 : i32, i32
  }
  func.func @transform_6(%arg0: i32) -> (i32, i32) {
    %c0_i32 = arith.constant 0 : i32
    %c0_i32_0 = arith.constant 0 : i32
    %c0_i32_1 = arith.constant 0 : i32
    return %c0_i32, %c0_i32_0 : i32, i32
  }
  func.func @transform_7(%arg0: i32) -> (i32, i32) {
    %c0_i32 = arith.constant 0 : i32
    %c0_i32_0 = arith.constant 0 : i32
    %c0_i32_1 = arith.constant 0 : i32
    return %c0_i32, %c0_i32_0 : i32, i32
  }
  func.func @transform_8(%arg0: i32) -> (i32, i32) {
    %c0_i32 = arith.constant 0 : i32
    %c0_i32_0 = arith.constant 0 : i32
    %c0_i32_1 = arith.constant 0 : i32
    return %c0_i32, %c0_i32_0 : i32, i32
  }
  func.func @transform_9(%arg0: i32) -> (i32, i32) {
    %c0_i32 = arith.constant 0 : i32
    %c0_i32_0 = arith.constant 0 : i32
    %c0_i32_1 = arith.constant 0 : i32
    return %c0_i32, %c0_i32_0 : i32, i32
  }
  func.func @transform_10(%arg0: i32) -> (i32, i32) {
    %c0_i32 = arith.constant 0 : i32
    %c0_i32_0 = arith.constant 0 : i32
    %c0_i32_1 = arith.constant 0 : i32
    return %c0_i32, %c0_i32_0 : i32, i32
  }
  func.func @transform_11(%arg0: i32) -> (i32, i32, i32) {
    %c0_i32 = arith.constant 0 : i32
    %c0_i32_0 = arith.constant 0 : i32
    %c0_i32_1 = arith.constant 0 : i32
    return %arg0, %c0_i32, %c0_i32_0 : i32, i32, i32
  }
}

</mosaic_0001>

<bundles_post_ra>
// kernel: decoder_forward.9
= control target key start
LH: loop header
LB: loop body
LE: loop exit
PB: predicated region body
PF: predicated region fallthrough
CT: control target
= control target key end

     0   :  { %vm30_vm0 = vcmask 261120   ;;  %vm183_vm1 = vcmask 523264   ;;  %s449_s0 = inlined_call_operand.vmem [shape: f32[16,32], index: 0, kind: input, shape index: {}]   ;;  %s450_s3 = inlined_call_operand.vmem [shape: f32[32,64], index: 3, kind: input, shape index: {}]   ;;  %s451_s5 = inlined_call_operand.vmem [shape: f32[64,32], index: 5, kind: input, shape index: {}]   ;;  %s452_s1 = inlined_call_operand.vmem [shape: f32[1,32], index: 1, kind: input, shape index: {}]   ;;  %s453_s2 = inlined_call_operand.vmem [shape: f32[1,32], index: 2, kind: input, shape index: {}]   ;;  %s454_s4 = inlined_call_operand.vmem [shape: f32[1,64], index: 4, kind: input, shape index: {}]   ;;  %s455_s6 = inlined_call_operand.vmem [shape: f32[1,32], index: 6, kind: input, shape index: {}]   ;;  %s456_s7 = inlined_call_operand.vmem [shape: f32[16,32], index: 7, kind: output, shape index: {}]  }
   0x1   :  { %v374_v0 = vld [vmem:[%s449_s0] sm:$0xff]  ;;  %v379_v1 = vld [vmem:[%s449_s0 + $0x8] sm:$0xff]  ;;  %v77_v14 = vld [vmem:[%s450_s3 + $0x18] sm:$0xff] }
   0x2   :  { %v31_v2 = vsel %vm30_vm0, %v374_v0, 0.0  ;;  %v34_v3 = vsel %vm30_vm0, %v379_v1, 0.0  ;;  %v76_v15 = vld [vmem:[%s450_s3 + $0x10] sm:$0xff]  ;;  %297 = vmatprep.subr.mxu0 %v77_v14  ;;  %v75_v16 = vld [vmem:[%s450_s3 + $0x8] sm:$0xff]  ;;  %v74_v17 = vld [vmem:[%s450_s3] sm:$0xff] }
   0x3   :  { %32 = vadd.xlane.f32.xlu0 %v31_v2  ;;  %298 = vmatpush3.msra.mxu0 %v77_v14  ;;  %v175_v18 = vld [vmem:[%s451_s5 + $0x38] sm:$0xff]  ;;  %v174_v19 = vld [vmem:[%s451_s5 + $0x30] sm:$0xff]  ;;  %v173_v20 = vld [vmem:[%s451_s5 + $0x28] sm:$0xff] }
   0x4   :  { %299 = vmatprep.subr.mxu0 %v76_v15  ;;  %308 = vmatprep.subr.mxu1 %v175_v18  ;;  %v172_v21 = vld [vmem:[%s451_s5 + $0x20] sm:$0xff]  ;;  %v171_v38 = vld [vmem:[%s451_s5 + $0x18] sm:$0xff]  ;;  %v170_v39 = vld [vmem:[%s451_s5 + $0x10] sm:$0xff] }
   0x5   :  { %300 = vmatpush3.msra.mxu0 %v76_v15  ;;  %309 = vmatpush3.msra.mxu1 %v175_v18  ;;  %v273_v29 = vld [vmem:[%s452_s1] ss:$0 sm:$0xff]  ;;  %v169_v40 = vld [vmem:[%s451_s5 + $0x8] sm:$0xff] }
   0x6   :  { %301 = vmatprep.subr.mxu0 %v75_v16  ;;  %310 = vmatprep.subr.mxu1 %v174_v19  ;;  %v274_v31 = vld [vmem:[%s453_s2] ss:$0 sm:$0xff] }
   0x7   :  { %35 = vadd.xlane.f32.xlu0 %v34_v3  ;;  %302 = vmatpush3.msra.mxu0 %v75_v16  ;;  %v168_v41 = vld [vmem:[%s451_s5] sm:$0xff] }
   0x8   :  { %303 = vmatprep.subr.mxu0 %v74_v17  ;;  %311 = vmatpush3.msra.mxu1 %v174_v19  ;;  %v275_v42 = vld [vmem:[%s454_s4] ss:$0 sm:$0xff] }
   0x9   :  { %304 = vmatpush3.msra.mxu0 %v74_v17  ;;  %312 = vmatprep.subr.mxu1 %v173_v20  ;;  %v278_v49 = vld [vmem:[%s455_s6] ss:$0 sm:$0xff] }
   0xa   :  { %313 = vmatpush3.msra.mxu1 %v173_v20 }
   0xb   :  { %314 = vmatprep.subr.mxu1 %v172_v21 }
   0xc   :  { %315 = vmatpush3.msra.mxu1 %v172_v21 }
   0xd   :  { %316 = vmatprep.subr.mxu1 %v171_v38 }
   0xe   :  { %317 = vmatpush3.msra.mxu1 %v171_v38 }
   0xf   :  { %318 = vmatprep.subr.mxu1 %v170_v39 }
  0x10   :  { %319 = vmatpush3.msra.mxu1 %v170_v39 }
  0x11   :  { %320 = vmatprep.subr.mxu1 %v169_v40 }
  0x12   :  { %321 = vmatpush3.msra.mxu1 %v169_v40 }
  0x13   :  { %322 = vmatprep.subr.mxu1 %v168_v41 }
  0x14   :  { %323 = vmatpush3.msra.mxu1 %v168_v41 }
  0x8c   :  { %v33_v4 = vpop.xlane.xlu0 %32 }
  0x8d   :  { %v38_v5 = vmul.f32 0.03125, %v33_v4 }
  0x8f   :  { %v40_v6 = vsub.f32 %v374_v0, %v38_v5 }
  0x90   :  { %v36_v7 = vpop.xlane.xlu0 %35 }
  0x91   :  { %v39_v8 = vmul.f32 0.03125, %v36_v7  ;;  %v42_v9 = vmul.f32 %v40_v6, %v40_v6 }
  0x93   :  { %v41_v10 = vsub.f32 %v379_v1, %v39_v8  ;;  %v44_v11 = vsel %vm30_vm0, %v42_v9, 0.0 }
  0x94   :  { %45 = vadd.xlane.f32.xlu1 %v44_v11 }
  0x95   :  { %v43_v12 = vmul.f32 %v41_v10, %v41_v10 }
  0x97   :  { %v47_v13 = vsel %vm30_vm0, %v43_v12, 0.0 }
  0x98   :  { %48 = vadd.xlane.f32.xlu1 %v47_v13 }
 0x11d   :  { %v46_v22 = vpop.xlane.xlu1 %45 }
 0x11e   :  { %v50_v23 = vmul.f32 0.032258064, %v46_v22 }
 0x120   :  { %v52_v24 = vadd.f32 1e-06, %v50_v23 }
 0x121   :  { %v49_v25 = vpop.xlane.xlu1 %48 }
 0x122   :  { %327 = vrsqrt.f32 %v52_v24  ;;  %v51_v26 = vmul.f32 0.032258064, %v49_v25 }
 0x124   :  { %v53_v27 = vadd.f32 1e-06, %v51_v26 }
 0x126   :  { %329 = vrsqrt.f32 %v53_v27 }
 0x12f   :  { %v328_v28 = vpop.eup %327 }
 0x130   :  { %v56_v30 = vmul.f32 %v328_v28, %v40_v6 }
 0x132   :  { %v64_v32 = vmul.f32 %v273_v29, %v56_v30 }
 0x133   :  { %v330_v33 = vpop.eup %329 }
 0x134   :  { %v57_v34 = vmul.f32 %v330_v33, %v41_v10  ;;  %v72_v35 = vadd.f32 %v274_v31, %v64_v32 }
 0x136   :  { %v65_v36 = vmul.f32 %v273_v29, %v57_v34  ;;  %305 = vmatprep.mubr.msk.f32.mxu0 %vm30_vm0, %v72_v35 }
 0x138   :  { %v73_v37 = vadd.f32 %v274_v31, %v65_v36 }
 0x13a   :  { %306 = vmatmul.mubr.msk.f32.vlgmr.msra.gmra.mxu0 %vm30_vm0, %v73_v37 }
 0x1fa   :  { %v307_v43 = vpop.f32.mrf.mxu0 }
 0x1fb   :  { %v163_v44 = vadd.f32 %v307_v43, %v275_v42 }
 0x1fc   :  { %v157_v45 = vpop.f32.mrf.mxu0 }
 0x1fd   :  { %v158_v46 = vadd.f32 %v275_v42, %v157_v45  ;;  %v167_v48 = vmax.f32 %v163_v44, 0.0 }
 0x1ff   :  { %v166_v47 = vmax.f32 %v158_v46, 0.0 }
 0x201   :  { %324 = vmatprep.mubr.msk.f32.mxu1 %vm183_vm1, %v166_v47 }
 0x202   :  { %325 = vmatmul.mubr.msk.f32.vlgmr.msra.gmra.mxu1 %vm183_vm1, %v167_v48 }
 0x2c2   :  { %v326_v50 = vpop.f32.mrf.mxu1 }
 0x2c3   :  { %v262_v51 = vadd.f32 %v326_v50, %v278_v49 }
 0x2c4   :  { %v256_v52 = vpop.f32.mrf.mxu1 }
 0x2c5   :  { %v266_v53 = vadd.f32 %v262_v51, %v379_v1  ;;  %v257_v54 = vadd.f32 %v278_v49, %v256_v52 }
 0x2c7   :  { %268 = vst.msk [vmem:[%s456_s7 + $0x8] sm:$0xff] %vm30_vm0, %v266_v53  ;;  %v265_v55 = vadd.f32 %v257_v54, %v374_v0 }
 0x2c9   :  { %267 = vst.msk [vmem:[%s456_s7] sm:$0xff] %vm30_vm0, %v265_v55 }

// kernel: decoder_forward.7
= control target key start
LH: loop header
LB: loop body
LE: loop exit
PB: predicated region body
PF: predicated region fallthrough
CT: control target
= control target key end

     0   :  { %13 = vsyncpa [#allocation3], 0  ;;  %s1824_s0 = inlined_call_operand.hbm [shape: f32[2,8,32], index: 0, kind: input, shape index: {}]   ;;  %s1825_s1 = inlined_call_operand.vmem [shape: f32[1,1,8,8], index: 1, kind: input, shape index: {}]   ;;  %s1826_s2 = inlined_call_operand.vmem [shape: f32[1,32], index: 2, kind: input, shape index: {}]   ;;  %s1827_s3 = inlined_call_operand.vmem [shape: f32[1,32], index: 3, kind: input, shape index: {}]   ;;  %s1828_s4 = inlined_call_operand.vmem [shape: f32[32,96], index: 4, kind: input, shape index: {}]   ;;  %s1829_s5 = inlined_call_operand.vmem [shape: f32[1,96], index: 5, kind: input, shape index: {}]   ;;  %s1830_s6 = inlined_call_operand.vmem [shape: f32[32,32], index: 6, kind: input, shape index: {}]   ;;  %s1831_s7 = inlined_call_operand.vmem [shape: f32[1,32], index: 7, kind: input, shape index: {}]   ;;  %s1832_s8 = inlined_call_operand.vmem [shape: f32[2,8,32], index: 8, kind: output, shape index: {}]  }
   0x1   :  { %15 = vsyncpa [#allocation3 + $0x1], 0  ;;  %s1590_s27 = smov 0   ;;  %s1592_s28 = smov 0  }
   0x2   :  { %s1594_s29 = smov 0   ;;  %s1596_s30 = smov 0  }
   0x3 LB: > { %s1609_s9 = sadd.s32 4294967295, %s1526_s30   ;;  %s1612_s10 = sadd.s32 1, %s1526_s30   ;;  %s1526_s30 = sphi %s1596_s30, %s1842_s30   ;;  %s1522_s29 = sphi %s1594_s29, %s1841_s29   ;;  %s1518_s28 = sphi %s1592_s28, %s1840_s28   ;;  %s1514_s27 = sphi %s1590_s27, %s1839_s27  }
   0x4   : > { %s25_s11 = ssub.s32 %s1526_s30, %s1612_s10  ;;  %s28_s12 = sadd.s32 1, %s1522_s29 }
   0x5   : > { %p26_p0 = scmp.eq.s32.totalorder %s25_s11, 0  ;;  %p35_p1 = scmp.ne.s32.totalorder %s1522_s29, %s1518_s28 }
   0x6   : > { %p36_p2 = scmp.eq.s32.totalorder %s1526_s30, 0  ;;  %p41_p3 = scmp.ne.s32.totalorder %s1518_s28, %s1514_s27 }
   0x7   : > { %s1622_s13 = scalar_select %p26_p0, %s1522_s29, %s28_s12  }
   0x8   : > { %p37_p4 = por %p36_p2, %p35_p1  ;;  %p42_p5 = scmp.eq.s32.totalorder %s1609_s9, 0 }
   0x9   : > { %p1397_p6 = scmp.lt.s32.totalorder %s1526_s30, 2  ;;  %s259_s15 = sand.u32 1, %s1522_s29  }
   0xa   : > { %p1626_p7 = por %p42_p5, %p41_p3  ;;  %s1278_s16 = sshll.u32 %s259_s15, 3 }
   0xb   : > { %s1279_s17 = sshll.u32 %s1526_s30, 7  ;;  %s263_s21 = scalar_lea.vmem [#allocation2], %s1278_s16 }
   0xc   : > { %s1834_s14 = scalar_select %p1626_p7, 1, 0 }
   0xd   : > { %s1635_s20 = scalar_lea.hbm %s1824_s0, %s1279_s17  ;;  %s270_s22 = sshll.u32 %s263_s21, 4  ;;  %s1637_s22 = int_to_ptr.vmem [resolvable:$true] %s270_s22 }
   0xe   : > { %p1639_p8 = pnand %p1397_p6, %p37_p4  ;;  %s260_s24 = scalar_lea.sflag [#allocation3], %s259_s15 }
   0xf   : > { %s1464_s25 = scalar_lea.hbm %s1635_s20, 128  ;;  %s1469_s11 = scalar_lea.hbm %s1824_s0, 256 }
  0x10   : > { %p1465_p11 = scmp.ne.s32.totalorder %s1635_s20, %s1464_s25  ;;  %p1466_p12 = pneg %p1639_p8 }
  0x11   : > { %p1470_p1 = scmp.lt.s32.totalorder %s1635_s20, %s1824_s0  ;;  %p1471_p2 = scmp.lt.s32.totalorder %s1469_s11, %s1464_s25 }
  0x12   : > { %p1467_p13 = pnand %p1466_p12, %p1465_p11 }
  0x13   : > { %p1472_p3 = por %p1471_p2, %p1470_p1 }
  0x14   : > { %p1468_p0 = pneg %p1467_p13 }
  0x16   : > { %p1473_p4 = pnand %p1472_p3, %p1468_p0 }
  0x18   : > { %1476 = shalt.err (!%p1473_p4)
}
  0x19   : > { %s1477_s15 = scalar_lea.vmem %s1637_s22, 128  ;;  %s1528_s17 = smov [#allocation2]  }
  0x1a   : > { %p1478_p5 = scmp.ne.s32.totalorder %s1637_s22, %s1477_s15  ;;  %s1482_s18 = sshll.u32 %s1528_s17, 4  ;;  %s1483_s18 = int_to_ptr.vmem [resolvable:$false] %s1482_s18 }
  0x1b   : > { %s1484_s19 = scalar_lea.vmem %s1483_s18, 256  ;;  %p1485_p13 = scmp.lt.s32.totalorder %s1637_s22, %s1483_s18 }
  0x1c   : > { %p1480_p6 = pnand %p1478_p5, %p1466_p12  ;;  %p1486_p9 = scmp.lt.s32.totalorder %s1484_s19, %s1477_s15 }
  0x1e   : > { %p1481_p11 = pneg %p1480_p6  ;;  %p1487_p10 = por %p1486_p9, %p1485_p13 }
  0x20   : > { %p1488_p7 = pnand %p1487_p10, %p1481_p11 }
  0x22   : > { %1491 = shalt.err (!%p1488_p7)
}
  0x23   : > { %1396 = dma.hbm_to_vmem [thread:$0]  (!%p1639_p8), %s1635_s20, 128, %s1637_s22, %s260_s24  }
  0x24   : > { %p1836_p0 = scmp.lt.s32.totalorder %s1526_s30, 3  ;;  %p1837_p1 = scmp.ge.s32.totalorder %s1526_s30, 1 }
  0x26   : > { %p276_p12 = pnand %p1837_p1, %p1836_p0 }
  0x27   : > { %s281_s21 = sand.u32 (!%p276_p12), 1, %s1518_s28   ;;  %p1838_p9 = scmp.ne.s32.totalorder (!%p276_p12), %s1834_s14, 0 }
  0x28   : > { %279 = sbr.rel (%p276_p12) target bundleno = 2203 (0x89b), region = 52  ;;  %s1281_s25 = sshll.u32 (!%p276_p12), %s281_s21, 3 }
  0x29   : > { %s282_s26 = scalar_lea.sflag (!%p276_p12), [#allocation3], %s281_s21  ;;  %s285_s27 = scalar_lea.vmem (!%p276_p12), [#allocation2], %s1281_s25 }
  0x2d   : > { %1509 = dma.done.wait (%p1838_p9), %s282_s26, 128  }
  0x2e   : > { %1511 = vsyncadd (%p1838_p9), %s282_s26, 4294967168  ;;  %vm324_vm0 = vcmask 261120   ;;  %v1672_v0 = vld [vmem:[%s285_s27] sm:$0xff]  ;;  %v356_v7 = vld [vmem:[%s1828_s4 + $0x18] sm:$0xff]  ;;  %v1529_v8 = vmov 0.0   ;;  %vm1530_vm1 = vmmov 0  }
  0x2f   : > { %v325_v1 = vsel %vm324_vm0, %v1672_v0, 0.0  ;;  %1329 = vmatprep.subr.mxu0 %v1529_v8  ;;  %v355_v9 = vld [vmem:[%s1828_s4 + $0x10] sm:$0xff]  ;;  %1337 = vmatprep.mubr.msk.f32.mxu0 %vm1530_vm1, %v1529_v8  ;;  %v354_v10 = vld [vmem:[%s1828_s4 + $0x8] sm:$0xff]  ;;  %v353_v11 = vld [vmem:[%s1828_s4] sm:$0xff]  ;;  %s1531_s25 = smov 64   ;;  %s1532_s26 = smov 96  }
  0x30   : > { %326 = vadd.xlane.f32.xlu0 %v325_v1  ;;  %1330 = vmatpush3.msra.mxu0 %v356_v7  ;;  %v1283_v16 = vld [vmem:[%s1826_s2] ss:$0 sm:$0xff]  ;;  %s1533_s27 = smov 88   ;;  %vm441_vm2 = vcmask 64512   ;;  %s1534_s14 = smov 80   ;;  %vm1120_vm4 = vcmask 130048  }
  0x31   : > { %1340 = vmatprep.subr.mxu1 %v1529_v8  ;;  %1331 = vmatprep.subr.mxu0 %v1529_v8  ;;  %v1284_v18 = vld [vmem:[%s1827_s3] ss:$0 sm:$0xff]  ;;  %s1535_s22 = smov 120   ;;  %s1536_s23 = smov 112   ;;  %vm1122_vm5 = vcmask 195584  }
  0x32   : > { %1342 = vmatprep.mubr.msk.f32.mxu1 %vm1530_vm1, %v1529_v8  ;;  %1332 = vmatpush3.msra.mxu0 %v355_v9  ;;  %v1285_v21 = vld [vmem:[%s1829_s5] ss:$0 sm:$0xff]  ;;  %s1537_s24 = smov 72   ;;  %s1538_s11 = smov 104  }
  0x33   : > { %1333 = vmatprep.subr.mxu0 %v1529_v8  ;;  %v1727_v27 = vld [vmem:[%s1825_s1] sm:$0xff]  ;;  %s1539_s12 = smov 48   ;;  %s1540_s16 = smov 56  }
  0x34   : > { %1334 = vmatpush3.msra.mxu0 %v354_v10  ;;  %vm517_vm3 = vcmp.eq.f32.partialorder %v1727_v27, 0.0  ;;  %s1541_s15 = smov 40   ;;  %s1542_s20 = smov 8  }
  0x35   : > { %1335 = vmatprep.subr.mxu0 %v1529_v8  ;;  %p317_p7 = scmp.lt.s32.totalorder %s1609_s9, 1 }
  0x36   : > { %1336 = vmatpush3.msra.mxu0 %v353_v11 }
  0x37   : > { %1360 = vmatprep.subr.mxu0 %v1529_v8  ;;  %s1844_s9 = smov (!%p317_p7, %s1609_s9), 1 }
  0xb9   : > { %v327_v2 = vpop.xlane.xlu0 %326 }
  0xba   : > { %v329_v3 = vmul.f32 0.03125, %v327_v2 }
  0xbc   : > { %v330_v4 = vsub.f32 %v1672_v0, %v329_v3 }
  0xbe   : > { %v331_v5 = vmul.f32 %v330_v4, %v330_v4 }
  0xc0   : > { %v332_v6 = vsel %vm324_vm0, %v331_v5, 0.0 }
  0xc1   : > { %333 = vadd.xlane.f32.xlu0 %v332_v6 }
 0x14a   : > { %v334_v12 = vpop.xlane.xlu0 %333 }
 0x14b   : > { %v335_v13 = vmul.f32 0.032258064, %v334_v12 }
 0x14d   : > { %v336_v14 = vadd.f32 1e-06, %v335_v13 }
 0x14f   : > { %1446 = vrsqrt.f32 %v336_v14 }
 0x15c   : > { %v1447_v15 = vpop.eup %1446 }
 0x15d   : > { %v338_v17 = vmul.f32 %v1447_v15, %v330_v4 }
 0x15f   : > { %v345_v19 = vmul.f32 %v1283_v16, %v338_v17 }
 0x161   : > { %v352_v20 = vadd.f32 %v1284_v18, %v345_v19 }
 0x163   : > { %1338 = vmatmul.mubr.msk.f32.vlgmr.msra.gmra.mxu0 %vm324_vm0, %v352_v20 }
 0x164   : > { %1362 = vmatprep.mubr.msk.f32.mxu0 %vm1530_vm1, %v1529_v8 }
 0x223   : > { %v433_v22 = vpop.f32.mrf.mxu0 }
 0x224   : > { %v1712_v23 = vadd.f32 %v1285_v21, %v433_v22 }
 0x225   : > { %v1339_v24 = vpop.f32.mrf.mxu0 }
 0x226   : > { %530 = vrot.lane.b32.xlu0 %v1712_v23, %s1531_s25  ;;  %439 = vrot.lane.b32.xlu1 %v1712_v23, %s1532_s26 }
 0x22a   : > { %608 = vrot.lane.b32.xlu0 %v1712_v23, %s1533_s27 }
 0x298   : > { %v440_v25 = vpop.permute.xlu1 %439  ;;  %v531_v26 = vpop.permute.xlu0 %530 }
 0x299   : > { %1341 = vmatpush3.xpose.msk.msra.mxu1 %vm441_vm2, %v440_v25 }
 0x29a   : > { %1345 = vmatprep.subr.mxu1 %v1529_v8 }
 0x29c   : > { %1343 = vmatmul.mubr.msk.f32.vlgmr.msra.gmra.mxu1 %vm441_vm2, %v1712_v23  ;;  %v609_v39 = vpop.permute.xlu0 %608 }
 0x29d   : > { %1346 = vmatpush3.msra.mxu1 %v531_v26  ;;  %1347 = vmatprep.mubr.msk.f32.mxu1 %vm1530_vm1, %v1529_v8 }
 0x29e   : > { %1350 = vmatprep.subr.mxu1 %v1529_v8 }
 0x35c   : > { %v512_v28 = vpop.f32.mrf.mxu1 }
 0x35d   : > { %v516_v29 = vmul.f32 0.35355338, %v512_v28 }
 0x35e   : > { %v1344_v30 = vpop.f32.mrf.mxu1 }
 0x35f   : > { %v518_v31 = vsel %vm517_vm3, -1e+09, %v516_v29  ;;  %v1127_v29 = vld [vmem:[%s1830_s6 + $0x18] sm:$0xff]  ;;  %v1126_v30 = vld [vmem:[%s1830_s6 + $0x10] sm:$0xff] }
 0x360   : > { %v519_v32 = vsel %vm441_vm2, %v518_v31, -inf }
 0x361   : > { %520 = vmax.xlane.f32.xlu1 %v519_v32  ;;  %v1124_v32 = vld [vmem:[%s1830_s6] sm:$0xff] }
 0x372   : > { %775 = vrot.lane.b32.xlu1 %v1712_v23, %s1534_s14  ;;  %s1543_s14 = smov 16  }
 0x3ea   : > { %v521_v33 = vpop.xlane.xlu1 %520 }
 0x3eb   : > { %v522_v34 = vsub.f32 %v518_v31, %v521_v33  ;;  %v1125_v31 = vld [vmem:[%s1830_s6 + $0x8] sm:$0xff] }
 0x3ed   : > { %v523_v35 = vmul.f32 1.442695, %v522_v34 }
 0x3ee   : > { %v776_v36 = vpop.permute.xlu1 %775 }
 0x3ef   : > { %1448 = vpow2.f32 %v523_v35  ;;  %1361 = vmatpush3.xpose.msk.msra.mxu0 %vm441_vm2, %v776_v36 }
 0x3f0   : > { %1370 = vmatprep.subr.mxu0 %v1529_v8 }
 0x3fc   : > { %v1449_v37 = vpop.eup %1448 }
 0x3fd   : > { %v525_v38 = vsel %vm441_vm2, %v1449_v37, 0.0 }
 0x3fe   : > { %526 = vadd.xlane.f32.xlu0 %v525_v38 }
 0x414   : > { %606 = vrot.lane.b32.xlu0 %v1712_v23, %s1535_s22  ;;  %s1544_s22 = smov 24  }
 0x418   : > { %773 = vrot.lane.b32.xlu0 %v1712_v23, %s1536_s23 }
 0x41c   : > { %942 = vrot.lane.b32.xlu0 %v1712_v23, %s1537_s24 }
 0x420   : > { %940 = vrot.lane.b32.xlu0 %v1712_v23, %s1538_s11  ;;  %s1282_s11 = sshll.u32 %s1844_s9, 3 }
 0x487   : > { %v527_v40 = vpop.xlane.xlu0 %526 }
 0x488   : > { %1450 = vrcp.f32 %v527_v40 }
 0x48b   : > { %v607_v41 = vpop.permute.xlu0 %606 }
 0x48f   : > { %v774_v42 = vpop.permute.xlu0 %773 }
 0x490   : > { %1363 = vmatmul.mubr.msk.f32.vlgmr.msra.gmra.mxu0 %vm441_vm2, %v774_v42 }
 0x491   : > { %1372 = vmatprep.mubr.msk.f32.mxu0 %vm1530_vm1, %v1529_v8 }
 0x493   : > { %v943_v43 = vpop.permute.xlu0 %942 }
 0x494   : > { %1371 = vmatpush3.xpose.msk.msra.mxu0 %vm441_vm2, %v943_v43 }
 0x495   : > { %v1451_v44 = vpop.eup %1450  ;;  %1380 = vmatprep.subr.mxu0 %v1529_v8 }
 0x496   : > { %v529_v45 = vmul.f32 %v1451_v44, %v1449_v37  ;;  %v1299_v44 = vld [vmem:[%s1831_s7] ss:$0 sm:$0xff] }
 0x497   : > { %v941_v46 = vpop.permute.xlu0 %940 }
 0x498   : > { %1348 = vmatmul.mubr.msk.f32.vlgmr.msra.gmra.mxu1 %vm441_vm2, %v529_v45  ;;  %1373 = vmatmul.mubr.msk.f32.vlgmr.msra.gmra.mxu0 %vm441_vm2, %v941_v46 }
 0x499   : > { %1351 = vmatpush3.xpose.msk.msra.mxu1 %vm441_vm2, %v609_v39  ;;  %1352 = vmatprep.mubr.msk.f32.mxu1 %vm1530_vm1, %v1529_v8 }
 0x49a   : > { %1355 = vmatprep.subr.mxu1 %v1529_v8  ;;  %1388 = vmatprep.mubr.msk.f32.mxu0 %vm1530_vm1, %v1529_v8 }
 0x49b   : > { %1381 = vmatpush3.msra.mxu0 %v1127_v29 }
 0x49c   : > { %1353 = vmatmul.mubr.msk.f32.vlgmr.msra.gmra.mxu1 %vm441_vm2, %v607_v41  ;;  %1382 = vmatprep.subr.mxu0 %v1529_v8 }
 0x49d   : > { %1357 = vmatprep.mubr.msk.f32.mxu1 %vm1530_vm1, %v1529_v8  ;;  %1383 = vmatpush3.msra.mxu0 %v1126_v30 }
 0x49e   : > { %1384 = vmatprep.subr.mxu0 %v1529_v8 }
 0x49f   : > { %1385 = vmatpush3.msra.mxu0 %v1125_v31 }
 0x4a0   : > { %1386 = vmatprep.subr.mxu0 %v1529_v8 }
 0x4a1   : > { %1387 = vmatpush3.msra.mxu0 %v1124_v32 }
 0x550   : > { %v847_v47 = vpop.f32.mrf.mxu0 }
 0x551   : > { %v851_v48 = vmul.f32 0.35355338, %v847_v47 }
 0x552   : > { %v1364_v49 = vpop.f32.mrf.mxu0 }
 0x553   : > { %v852_v50 = vsel %vm517_vm3, -1e+09, %v851_v48 }
 0x554   : > { %v853_v51 = vsel %vm441_vm2, %v852_v50, -inf }
 0x555   : > { %854 = vmax.xlane.f32.xlu1 %v853_v51 }
 0x558   : > { %v1760_v52 = vpop.f32.mrf.mxu1  ;;  %v1014_v53 = vpop.f32.mrf.mxu0 }
 0x559   : > { %v1018_v57 = vmul.f32 0.35355338, %v1014_v53 }
 0x55a   : > { %v1349_v54 = vpop.f32.mrf.mxu1  ;;  %v1374_v55 = vpop.f32.mrf.mxu0 }
 0x55b   : > { %v1019_v62 = vsel %vm517_vm3, -1e+09, %v1018_v57 }
 0x55c   : > { %v680_v56 = vpop.f32.mrf.mxu1  ;;  %v1020_v63 = vsel %vm441_vm2, %v1019_v62, -inf }
 0x55d   : > { %v684_v58 = vmul.f32 0.35355338, %v680_v56 }
 0x55e   : > { %v1354_v59 = vpop.f32.mrf.mxu1 }
 0x55f   : > { %v685_v60 = vsel %vm517_vm3, -1e+09, %v684_v58 }
 0x560   : > { %v686_v61 = vsel %vm441_vm2, %v685_v60, -inf }
 0x561   : > { %687 = vmax.xlane.f32.xlu0 %v686_v61 }
 0x565   : > { %1021 = vmax.xlane.f32.xlu0 %v1020_v63 }
 0x5de   : > { %v855_v1 = vpop.xlane.xlu1 %854 }
 0x5df   : > { %v856_v2 = vsub.f32 %v852_v50, %v855_v1 }
 0x5e1   : > { %v857_v3 = vmul.f32 1.442695, %v856_v2 }
 0x5e3   : > { %1452 = vpow2.f32 %v857_v3 }
 0x5ea   : > { %v688_v4 = vpop.xlane.xlu0 %687 }
 0x5eb   : > { %v689_v5 = vsub.f32 %v685_v60, %v688_v4 }
 0x5ed   : > { %v690_v6 = vmul.f32 1.442695, %v689_v5 }
 0x5ee   : > { %v1022_v7 = vpop.xlane.xlu0 %1021 }
 0x5ef   : > { %1454 = vpow2.f32 %v690_v6  ;;  %v1023_v9 = vsub.f32 %v1019_v62, %v1022_v7 }
 0x5f0   : > { %v1453_v10 = vpop.eup %1452 }
 0x5f1   : > { %v1024_v11 = vmul.f32 1.442695, %v1023_v9  ;;  %v859_v12 = vsel %vm441_vm2, %v1453_v10, 0.0 }
 0x5f2   : > { %860 = vadd.xlane.f32.xlu0 %v859_v12 }
 0x5f3   : > { %1456 = vpow2.f32 %v1024_v11 }
 0x5fc   : > { %v1455_v13 = vpop.eup %1454 }
 0x5fd   : > { %v692_v14 = vsel %vm441_vm2, %v1455_v13, 0.0 }
 0x5fe   : > { %693 = vadd.xlane.f32.xlu0 %v692_v14 }
 0x600   : > { %v1457_v15 = vpop.eup %1456 }
 0x601   : > { %v1026_v16 = vsel %vm441_vm2, %v1457_v15, 0.0 }
 0x602   : > { %1027 = vadd.xlane.f32.xlu1 %v1026_v16 }
 0x613   : > { %864 = vrot.lane.b32.xlu1 %v1712_v23, %s1539_s12 }
 0x614   : > { %697 = vrot.lane.b32.xlu0 %v1712_v23, %s1540_s16 }
 0x617   : > { %1031 = vrot.lane.b32.xlu1 %v1712_v23, %s1541_s15  ;;  %s320_s15 = scalar_lea.vmem %s1832_s8, %s1282_s11 }
 0x67b   : > { %v861_v17 = vpop.xlane.xlu0 %860 }
 0x687   : > { %v694_v18 = vpop.xlane.xlu0 %693 }
 0x688   : > { %1458 = vrcp.f32 %v694_v18 }
 0x689   : > { %1460 = vrcp.f32 %v861_v17 }
 0x68b   : > { %v1028_v19 = vpop.xlane.xlu1 %1027  ;;  %v698_v20 = vpop.permute.xlu0 %697 }
 0x68c   : > { %1356 = vmatpush3.msra.mxu1 %v698_v20  ;;  %1462 = vrcp.f32 %v1028_v19 }
 0x68d   : > { %1365 = vmatprep.subr.mxu1 %v1529_v8 }
 0x68f   : > { %v865_v22 = vpop.permute.xlu1 %864 }
 0x693   : > { %v1032_v27 = vpop.permute.xlu1 %1031 }
 0x695   : > { %v1459_v21 = vpop.eup %1458 }
 0x696   : > { %v696_v24 = vmul.f32 %v1459_v21, %v1455_v13  ;;  %v1461_v25 = vpop.eup %1460 }
 0x697   : > { %v863_v23 = vmul.f32 %v1461_v25, %v1453_v10 }
 0x698   : > { %1358 = vmatmul.mubr.msk.f32.vlgmr.msra.gmra.mxu1 %vm441_vm2, %v696_v24 }
 0x699   : > { %1366 = vmatpush3.msra.mxu1 %v865_v22  ;;  %1367 = vmatprep.mubr.msk.f32.mxu1 %vm1530_vm1, %v1529_v8  ;;  %v1463_v26 = vpop.eup %1462 }
 0x69a   : > { %1375 = vmatprep.subr.mxu1 %v1529_v8  ;;  %v1030_v28 = vmul.f32 %v1463_v26, %v1457_v15 }
 0x69c   : > { %1368 = vmatmul.mubr.msk.f32.vlgmr.msra.gmra.mxu1 %vm441_vm2, %v863_v23 }
 0x69d   : > { %1376 = vmatpush3.msra.mxu1 %v1032_v27  ;;  %1377 = vmatprep.mubr.msk.f32.mxu1 %vm1530_vm1, %v1529_v8 }
 0x6a0   : > { %1378 = vmatmul.mubr.msk.f32.vlgmr.msra.gmra.mxu1 %vm441_vm2, %v1030_v28 }
 0x758   : > { %v769_v33 = vpop.f32.mrf.mxu1 }
 0x759   : > { %1108 = vrot.lane.b32.xlu1 %v769_v33, %s1542_s20 }
 0x75a   : > { %v1359_v34 = vpop.f32.mrf.mxu1 }
 0x75c   : > { %v936_v35 = vpop.f32.mrf.mxu1 }
 0x75d   : > { %1112 = vrot.lane.b32.xlu0 %v936_v35, %s1543_s14 }
 0x75e   : > { %v1369_v36 = vpop.f32.mrf.mxu1 }
 0x760   : > { %v1103_v37 = vpop.f32.mrf.mxu1 }
 0x761   : > { %1116 = vrot.lane.b32.xlu1 %v1103_v37, %s1544_s22 }
 0x762   : > { %v1379_v38 = vpop.f32.mrf.mxu1 }
 0x7cb   : > { %v1109_v8 = vpop.permute.xlu1 %1108 }
 0x7cc   : > { %v1119_v40 = vsel %vm441_vm2, %v1760_v52, %v1109_v8 }
 0x7cf   : > { %v1113_v39 = vpop.permute.xlu0 %1112 }
 0x7d0   : > { %v1121_v41 = vsel %vm1120_vm4, %v1119_v40, %v1113_v39 }
 0x7d3   : > { %v1117_v42 = vpop.permute.xlu1 %1116 }
 0x7d4   : > { %v1123_v43 = vsel %vm1122_vm5, %v1121_v41, %v1117_v42 }
 0x7d5   : > { %1389 = vmatmul.mubr.msk.f32.vlgmr.msra.gmra.mxu0 %vm324_vm0, %v1123_v43 }
 0x895   : > { %v1204_v45 = vpop.f32.mrf.mxu0 }
 0x896   : > { %v1205_v46 = vadd.f32 %v1299_v44, %v1204_v45 }
 0x897   : > { %v1390_v47 = vpop.f32.mrf.mxu0 }
 0x898   : > { %v1208_v48 = vadd.f32 %v1205_v46, %v1672_v0 }
 0x89a   : > { %1209 = vst.msk [vmem:[%s320_s15] sm:$0xff] %vm324_vm0, %v1208_v48 }
 0x89b PF: > { %p18_p8 = scmp.ge.s32.totalorder %s1612_s10, 4   ;;  %s1839_s27 = smov %s1518_s28 }
 0x89c   : > { %s1840_s28 = smov %s1522_s29  ;;  %s1841_s29 = smov %s1622_s13 }
 0x89d   : > { %s1842_s30 = smov %s1612_s10  ;;  %20 = sbr.rel (!%p18_p8) target bundleno = 3 (0x3), region = 92 }
 0x8a2   :  { %1229 = vsyncpa [#allocation3], 1 }
 0x8a3   :  { %1231 = vsyncpa [#allocation3 + $0x1], 1 }

// kernel: decoder_forward.8
= control target key start
LH: loop header
LB: loop body
LE: loop exit
PB: predicated region body
PF: predicated region fallthrough
CT: control target
= control target key end

     0   :  { %16 = vsyncpa [#allocation3], 0  ;;  %s1764_s17 = smov 0   ;;  %s1933_s0 = inlined_call_operand.vmem [shape: f32[2,8,32], index: 0, kind: input, shape index: {}]   ;;  %s1934_s1 = inlined_call_operand.vmem [shape: f32[2,8,32], index: 1, kind: input, shape index: {}]   ;;  %s1935_s2 = inlined_call_operand.vmem [shape: f32[1,1,8,8], index: 2, kind: input, shape index: {}]   ;;  %s1936_s3 = inlined_call_operand.vmem [shape: f32[1,32], index: 3, kind: input, shape index: {}]   ;;  %s1937_s4 = inlined_call_operand.vmem [shape: f32[1,32], index: 4, kind: input, shape index: {}]   ;;  %s1938_s5 = inlined_call_operand.vmem [shape: f32[32,32], index: 5, kind: input, shape index: {}]   ;;  %s1939_s6 = inlined_call_operand.vmem [shape: f32[1,32], index: 6, kind: input, shape index: {}]   ;;  %s1940_s7 = inlined_call_operand.vmem [shape: f32[32,64], index: 7, kind: input, shape index: {}]   ;;  %s1941_s8 = inlined_call_operand.vmem [shape: f32[1,64], index: 8, kind: input, shape index: {}]   ;;  %s1942_s9 = inlined_call_operand.hbm [shape: f32[32,32], index: 9, kind: input, shape index: {}]   ;;  %s1943_s10 = inlined_call_operand.vmem [shape: f32[1,32], index: 10, kind: input, shape index: {}]   ;;  %s1944_s11 = inlined_call_operand.vmem [shape: f32[2,8,32], index: 11, kind: output, shape index: {}]  }
   0x1 LB: > { %s1464_s18 = sadd.s32 4294967295, %s1687_s17   ;;  %p1466_p0 = scmp.ge.s32.totalorder %s1687_s17, 1  ;;  %s1687_s17 = sphi %s1764_s17, %s22_s17  }
   0x2   : > { %p294_p1 = scmp.lt.s32.totalorder %s1687_s17, 3  ;;  %s1689_s19 = smov [#allocation2]  }
   0x3   : > { %s327_s20 = sshll.u32 %s1689_s19, 4  ;;  %p1608_p3 = scmp.eq.s32.totalorder %s1464_s18, 0  ;;  %s328_s20 = int_to_ptr.vmem [resolvable:$true] %s327_s20 }
   0x4   : > { %p1772_p2 = pnand %p1466_p0, %p294_p1  ;;  %s1662_s22 = scalar_lea.vmem %s328_s20, 512 }
   0x5   : > { %p1663_p7 = scmp.ne.s32.totalorder %s328_s20, %s1662_s22  ;;  %p1670_p10 = scmp.lt.s32.totalorder %s328_s20, %s328_s20 }
   0x6   : > { %p1604_p4 = pneg %p1772_p2  ;;  %p1671_p11 = scmp.lt.s32.totalorder %s1662_s22, %s1662_s22 }
   0x8   : > { %p1605_p5 = pnand %p1608_p3, %p1604_p4  ;;  %p1672_p12 = por %p1671_p11, %p1670_p10 }
   0xa   : > { %p1653_p6 = pneg %p1605_p5 }
   0xc   : > { %p1665_p8 = pnand %p1663_p7, %p1653_p6 }
   0xe   : > { %p1666_p9 = pneg %p1665_p8 }
  0x10   : > { %p1673_p13 = pnand %p1672_p12, %p1666_p9 }
  0x12   : > { %1676 = shalt.err (!%p1673_p13)
}
  0x13   : > { %s1690_s23 = smov 128   ;;  %s1691_s24 = smov 8  }
  0x14   : > { %1607 = dma.hbm_to_vmem [thread:$0]  (!%p1605_p5), %s1942_s9, 512, %s328_s20, [#allocation3], %s1690_s23, %s1690_s23, %s1691_s24  }
  0x15   : > { %360 = sbr.rel (%p1772_p2) target bundleno = 1674 (0x68a), region = 64 }
  0x1a   : > { %1682 = dma.done.wait (%p1608_p3), [#allocation3], 512  }
  0x1b   : > { %1684 = vsyncadd (%p1608_p3), [#allocation3], 4294966784  ;;  %p402_p0 = scmp.lt.s32.totalorder %s1464_s18, 1  ;;  %vm418_vm0 = vcmask 261120   ;;  %v1692_v7 = vmov 0.0   ;;  %v534_v8 = vld [vmem:[%s1940_s7 + $0x18] sm:$0xff] }
  0x1c   : > { %1538 = vmatprep.subr.mxu1 %v1692_v7  ;;  %v533_v9 = vld [vmem:[%s1940_s7 + $0x10] sm:$0xff]  ;;  %1527 = vmatprep.subr.mxu0 %v1692_v7  ;;  %vm1693_vm1 = vmmov 0   ;;  %v450_v10 = vld [vmem:[%s1938_s5 + $0x18] sm:$0xff]  ;;  %v532_v11 = vld [vmem:[%s1940_s7 + $0x8] sm:$0xff]  ;;  %vm616_vm2 = vcmask 64512   ;;  %s1694_s21 = smov 120  }
  0x1d   : > { %s1947_s18 = smov (!%p402_p0, %s1464_s18), 1  ;;  %1539 = vmatpush3.msra.mxu1 %v534_v8  ;;  %1546 = vmatprep.mubr.msk.f32.mxu1 %vm1693_vm1, %v1692_v7  ;;  %v449_v12 = vld [vmem:[%s1938_s5 + $0x10] sm:$0xff]  ;;  %v448_v13 = vld [vmem:[%s1938_s5 + $0x8] sm:$0xff]  ;;  %v531_v14 = vld [vmem:[%s1940_s7] sm:$0xff]  ;;  %s1695_s22 = smov 112   ;;  %vm1297_vm4 = vcmask 130048  }
  0x1e   : > { %s1786_s27 = sshll.u32 %s1947_s18, 3  ;;  %1540 = vmatprep.subr.mxu1 %v1692_v7  ;;  %1528 = vmatpush3.msra.mxu0 %v450_v10  ;;  %v447_v16 = vld [vmem:[%s1938_s5] sm:$0xff]  ;;  %s1697_s29 = smov 88   ;;  %vm1299_vm5 = vcmask 195584  }
  0x1f   : > { %s405_s30 = scalar_lea.vmem %s1933_s0, %s1786_s27  ;;  %s409_s23 = scalar_lea.vmem %s1934_s1, %s1786_s27  ;;  %1541 = vmatpush3.msra.mxu1 %v533_v9  ;;  %1529 = vmatprep.subr.mxu0 %v1692_v7  ;;  %v1474_v21 = vld [vmem:[%s1936_s3] ss:$0 sm:$0xff] }
  0x20   : > { %v1792_v0 = vld [vmem:[%s405_s30] sm:$0xff]  ;;  %1542 = vmatprep.subr.mxu1 %v1692_v7  ;;  %1530 = vmatpush3.msra.mxu0 %v449_v12  ;;  %s1698_s30 = smov 96   ;;  %s1699_s12 = smov 80  }
  0x21   : > { %v419_v1 = vsel %vm418_vm0, %v1792_v0, 0.0  ;;  %1543 = vmatpush3.msra.mxu1 %v532_v11  ;;  %v415_v15 = vld [vmem:[%s409_s23] sm:$0xff]  ;;  %1531 = vmatprep.subr.mxu0 %v1692_v7  ;;  %s1696_s23 = smov 104   ;;  %s1700_s13 = smov 72  }
  0x22   : > { %420 = vadd.xlane.f32.xlu0 %v419_v1  ;;  %1544 = vmatprep.subr.mxu1 %v1692_v7  ;;  %v1475_v23 = vld [vmem:[%s1937_s4] ss:$0 sm:$0xff]  ;;  %s1701_s14 = smov 8   ;;  %s1702_s15 = smov 16  }
  0x23   : > { %1532 = vmatpush3.msra.mxu0 %v448_v13  ;;  %1545 = vmatpush3.msra.mxu1 %v531_v14  ;;  %v1478_v26 = vld [vmem:[%s1941_s8] ss:$0 sm:$0xff]  ;;  %s1703_s16 = smov 24  }
  0x24   : > { %1533 = vmatprep.subr.mxu0 %v1692_v7  ;;  %1547 = vmatmul.mubr.msk.f32.vlgmr.msra.gmra.mxu1 %vm418_vm0, %v415_v15  ;;  %v1476_v31 = vld [vmem:[%s1939_s6] ss:$0 sm:$0xff] }
  0x25   : > { %1534 = vmatpush3.msra.mxu0 %v447_v16  ;;  %1535 = vmatprep.mubr.msk.f32.mxu0 %vm1693_vm1, %v1692_v7  ;;  %v615_v40 = vld [vmem:[%s1935_s2] sm:$0xff] }
  0x26   : > { %1549 = vmatprep.subr.mxu1 %v1692_v7  ;;  %1551 = vmatprep.mubr.msk.f32.mxu1 %vm1693_vm1, %v1692_v7  ;;  %vm694_vm3 = vcmp.eq.f32.partialorder %v615_v40, 0.0  ;;  %v1301_v40 = vld [vmem:[#allocation2] sm:$0xff] }
  0x27   : > { %1559 = vmatprep.subr.mxu0 %v1692_v7 }
  0xab   : > { %v421_v2 = vpop.xlane.xlu0 %420 }
  0xac   : > { %v423_v3 = vmul.f32 0.03125, %v421_v2 }
  0xae   : > { %v424_v4 = vsub.f32 %v1792_v0, %v423_v3 }
  0xb0   : > { %v425_v5 = vmul.f32 %v424_v4, %v424_v4 }
  0xb2   : > { %v426_v6 = vsel %vm418_vm0, %v425_v5, 0.0 }
  0xb3   : > { %427 = vadd.xlane.f32.xlu0 %v426_v6 }
  0xe4   : > { %v611_v27 = vpop.f32.mrf.mxu1 }
  0xe5   : > { %v1855_v28 = vadd.f32 %v1478_v26, %v611_v27 }
  0xe6   : > { %v1548_v29 = vpop.f32.mrf.mxu1 }
  0xe7   : > { %785 = vrot.lane.b32.xlu1 %v1855_v28, %s1694_s21  ;;  %1550 = vmatpush3.xpose.msk.msra.mxu1 %vm616_vm2, %v1855_v28 }
  0xe8   : > { %952 = vrot.lane.b32.xlu0 %v1855_v28, %s1695_s22  ;;  %1554 = vmatprep.subr.mxu1 %v1692_v7 }
  0xeb   : > { %1119 = vrot.lane.b32.xlu1 %v1855_v28, %s1696_s23 }
 0x13c   : > { %v428_v17 = vpop.xlane.xlu0 %427 }
 0x13d   : > { %v429_v18 = vmul.f32 0.032258064, %v428_v17 }
 0x13f   : > { %v430_v19 = vadd.f32 1e-06, %v429_v18 }
 0x141   : > { %1633 = vrsqrt.f32 %v430_v19 }
 0x14e   : > { %v1634_v20 = vpop.eup %1633 }
 0x14f   : > { %v432_v22 = vmul.f32 %v1634_v20, %v424_v4 }
 0x151   : > { %v439_v24 = vmul.f32 %v1474_v21, %v432_v22 }
 0x153   : > { %v446_v25 = vadd.f32 %v1475_v23, %v439_v24 }
 0x155   : > { %1536 = vmatmul.mubr.msk.f32.vlgmr.msra.gmra.mxu0 %vm418_vm0, %v446_v25 }
 0x156   : > { %1561 = vmatprep.mubr.msk.f32.mxu0 %vm1693_vm1, %v1692_v7 }
 0x159   : > { %v786_v30 = vpop.permute.xlu1 %785 }
 0x15a   : > { %1560 = vmatpush3.xpose.msk.msra.mxu0 %vm616_vm2, %v786_v30  ;;  %v953_v37 = vpop.permute.xlu0 %952 }
 0x15b   : > { %1569 = vmatprep.subr.mxu0 %v1692_v7 }
 0x15d   : > { %v1120_v35 = vpop.permute.xlu1 %1119 }
 0x215   : > { %v527_v32 = vpop.f32.mrf.mxu0 }
 0x216   : > { %v528_v33 = vadd.f32 %v1476_v31, %v527_v32 }
 0x217   : > { %v1537_v34 = vpop.f32.mrf.mxu0 }
 0x218   : > { %783 = vrot.lane.b32.xlu1 %v528_v33, %s1694_s21  ;;  %1552 = vmatmul.mubr.msk.f32.vlgmr.msra.gmra.mxu1 %vm616_vm2, %v528_v33 }
 0x219   : > { %1556 = vmatprep.mubr.msk.f32.mxu1 %vm1693_vm1, %v1692_v7 }
 0x21c   : > { %950 = vrot.lane.b32.xlu1 %v528_v33, %s1695_s22  ;;  %s413_s22 = scalar_lea.vmem %s1944_s11, %s1786_s27 }
 0x220   : > { %1117 = vrot.lane.b32.xlu1 %v528_v33, %s1696_s23 }
 0x28a   : > { %v784_v36 = vpop.permute.xlu1 %783 }
 0x28b   : > { %1562 = vmatmul.mubr.msk.f32.vlgmr.msra.gmra.mxu0 %vm616_vm2, %v784_v36 }
 0x28c   : > { %1570 = vmatpush3.xpose.msk.msra.mxu0 %vm616_vm2, %v953_v37  ;;  %1571 = vmatprep.mubr.msk.f32.mxu0 %vm1693_vm1, %v1692_v7  ;;  %v1304_v37 = vld [vmem:[#allocation2 + $0x18] sm:$0xff] }
 0x28d   : > { %1579 = vmatprep.subr.mxu0 %v1692_v7 }
 0x28e   : > { %v951_v38 = vpop.permute.xlu1 %950 }
 0x28f   : > { %1572 = vmatmul.mubr.msk.f32.vlgmr.msra.gmra.mxu0 %vm616_vm2, %v951_v38  ;;  %v1303_v38 = vld [vmem:[#allocation2 + $0x10] sm:$0xff] }
 0x290   : > { %1580 = vmatpush3.xpose.msk.msra.mxu0 %vm616_vm2, %v1120_v35  ;;  %1581 = vmatprep.mubr.msk.f32.mxu0 %vm1693_vm1, %v1692_v7 }
 0x291   : > { %1589 = vmatprep.subr.mxu0 %v1692_v7 }
 0x292   : > { %v1118_v39 = vpop.permute.xlu1 %1117 }
 0x293   : > { %1582 = vmatmul.mubr.msk.f32.vlgmr.msra.gmra.mxu0 %vm616_vm2, %v1118_v39  ;;  %v1302_v39 = vld [vmem:[#allocation2 + $0x8] sm:$0xff] }
 0x294   : > { %1597 = vmatprep.mubr.msk.f32.mxu0 %vm1693_vm1, %v1692_v7  ;;  %1590 = vmatpush3.msra.mxu0 %v1304_v37 }
 0x295   : > { %1591 = vmatprep.subr.mxu0 %v1692_v7 }
 0x296   : > { %1592 = vmatpush3.msra.mxu0 %v1303_v38 }
 0x297   : > { %1593 = vmatprep.subr.mxu0 %v1692_v7 }
 0x298   : > { %1594 = vmatpush3.msra.mxu0 %v1302_v39 }
 0x299   : > { %1595 = vmatprep.subr.mxu0 %v1692_v7 }
 0x29a   : > { %1596 = vmatpush3.msra.mxu0 %v1301_v40 }
 0x2d8   : > { %v689_v41 = vpop.f32.mrf.mxu1 }
 0x2d9   : > { %v693_v42 = vmul.f32 0.35355338, %v689_v41 }
 0x2da   : > { %v1553_v43 = vpop.f32.mrf.mxu1 }
 0x2db   : > { %v695_v44 = vsel %vm694_vm3, -1e+09, %v693_v42 }
 0x2dc   : > { %v696_v45 = vsel %vm616_vm2, %v695_v44, -inf }
 0x2dd   : > { %697 = vmax.xlane.f32.xlu1 %v696_v45 }
 0x34b   : > { %v857_v46 = vpop.f32.mrf.mxu0 }
 0x34c   : > { %v861_v47 = vmul.f32 0.35355338, %v857_v46 }
 0x34d   : > { %v1563_v48 = vpop.f32.mrf.mxu0 }
 0x34e   : > { %v862_v49 = vsel %vm694_vm3, -1e+09, %v861_v47 }
 0x34f   : > { %v1024_v50 = vpop.f32.mrf.mxu0  ;;  %v863_v51 = vsel %vm616_vm2, %v862_v49, -inf }
 0x350   : > { %v1028_v52 = vmul.f32 0.35355338, %v1024_v50  ;;  %864 = vmax.xlane.f32.xlu0 %v863_v51 }
 0x351   : > { %v1573_v53 = vpop.f32.mrf.mxu0 }
 0x352   : > { %v1029_v54 = vsel %vm694_vm3, -1e+09, %v1028_v52  ;;  %v1492_v52 = vld [vmem:[%s1943_s10] ss:$0 sm:$0xff] }
 0x353   : > { %v1191_v55 = vpop.f32.mrf.mxu0  ;;  %v1030_v56 = vsel %vm616_vm2, %v1029_v54, -inf }
 0x354   : > { %v1195_v57 = vmul.f32 0.35355338, %v1191_v55  ;;  %1031 = vmax.xlane.f32.xlu1 %v1030_v56 }
 0x355   : > { %v1583_v58 = vpop.f32.mrf.mxu0 }
 0x356   : > { %v1196_v59 = vsel %vm694_vm3, -1e+09, %v1195_v57 }
 0x357   : > { %v1197_v60 = vsel %vm616_vm2, %v1196_v59, -inf }
 0x358   : > { %1198 = vmax.xlane.f32.xlu1 %v1197_v60 }
 0x366   : > { %v698_v61 = vpop.xlane.xlu1 %697 }
 0x367   : > { %v699_v62 = vsub.f32 %v695_v44, %v698_v61 }
 0x369   : > { %v700_v63 = vmul.f32 1.442695, %v699_v62  ;;  %874 = vrot.lane.b32.xlu1 %v1855_v28, %s1697_s29 }
 0x36b   : > { %1635 = vpow2.f32 %v700_v63 }
 0x378   : > { %v1636_v1 = vpop.eup %1635 }
 0x379   : > { %v702_v2 = vsel %vm616_vm2, %v1636_v1, 0.0 }
 0x37a   : > { %703 = vadd.xlane.f32.xlu0 %v702_v2 }
 0x390   : > { %707 = vrot.lane.b32.xlu0 %v1855_v28, %s1698_s30 }
 0x3d9   : > { %v865_v3 = vpop.xlane.xlu0 %864 }
 0x3da   : > { %v866_v4 = vsub.f32 %v862_v49, %v865_v3 }
 0x3dc   : > { %v867_v5 = vmul.f32 1.442695, %v866_v4 }
 0x3dd   : > { %v1032_v6 = vpop.xlane.xlu1 %1031 }
 0x3de   : > { %1637 = vpow2.f32 %v867_v5  ;;  %v1033_v8 = vsub.f32 %v1029_v54, %v1032_v6 }
 0x3e0   : > { %v1034_v9 = vmul.f32 1.442695, %v1033_v8 }
 0x3e1   : > { %v1199_v10 = vpop.xlane.xlu1 %1198 }
 0x3e2   : > { %1639 = vpow2.f32 %v1034_v9  ;;  %v1200_v11 = vsub.f32 %v1196_v59, %v1199_v10 }
 0x3e4   : > { %v1201_v12 = vmul.f32 1.442695, %v1200_v11 }
 0x3e5   : > { %v875_v23 = vpop.permute.xlu1 %874 }
 0x3e6   : > { %1641 = vpow2.f32 %v1201_v12 }
 0x3eb   : > { %v1638_v13 = vpop.eup %1637 }
 0x3ec   : > { %v869_v14 = vsel %vm616_vm2, %v1638_v13, 0.0 }
 0x3ed   : > { %870 = vadd.xlane.f32.xlu1 %v869_v14 }
 0x3ef   : > { %v1640_v15 = vpop.eup %1639 }
 0x3f0   : > { %v1036_v16 = vsel %vm616_vm2, %v1640_v15, 0.0 }
 0x3f1   : > { %1037 = vadd.xlane.f32.xlu0 %v1036_v16 }
 0x3f3   : > { %v1642_v17 = vpop.eup %1641 }
 0x3f4   : > { %v1203_v18 = vsel %vm616_vm2, %v1642_v17, 0.0 }
 0x3f5   : > { %1204 = vadd.xlane.f32.xlu1 %v1203_v18 }
 0x403   : > { %v704_v19 = vpop.xlane.xlu0 %703 }
 0x404   : > { %1643 = vrcp.f32 %v704_v19 }
 0x406   : > { %1041 = vrot.lane.b32.xlu1 %v1855_v28, %s1699_s12 }
 0x407   : > { %1208 = vrot.lane.b32.xlu0 %v1855_v28, %s1700_s13  ;;  %v708_v20 = vpop.permute.xlu0 %707 }
 0x408   : > { %1555 = vmatpush3.msra.mxu1 %v708_v20 }
 0x409   : > { %1564 = vmatprep.subr.mxu1 %v1692_v7 }
 0x411   : > { %v1644_v21 = vpop.eup %1643 }
 0x412   : > { %v706_v22 = vmul.f32 %v1644_v21, %v1636_v1 }
 0x414   : > { %1557 = vmatmul.mubr.msk.f32.vlgmr.msra.gmra.mxu1 %vm616_vm2, %v706_v22 }
 0x415   : > { %1565 = vmatpush3.msra.mxu1 %v875_v23  ;;  %1566 = vmatprep.mubr.msk.f32.mxu1 %vm1693_vm1, %v1692_v7 }
 0x416   : > { %1574 = vmatprep.subr.mxu1 %v1692_v7 }
 0x476   : > { %v871_v24 = vpop.xlane.xlu1 %870 }
 0x477   : > { %1645 = vrcp.f32 %v871_v24 }
 0x47a   : > { %v1038_v25 = vpop.xlane.xlu0 %1037 }
 0x47b   : > { %1647 = vrcp.f32 %v1038_v25 }
 0x47e   : > { %v1205_v26 = vpop.xlane.xlu1 %1204  ;;  %v1209_v32 = vpop.permute.xlu0 %1208 }
 0x47f   : > { %1649 = vrcp.f32 %v1205_v26 }
 0x482   : > { %v1042_v29 = vpop.permute.xlu1 %1041 }
 0x484   : > { %v1646_v27 = vpop.eup %1645 }
 0x485   : > { %v873_v28 = vmul.f32 %v1646_v27, %v1638_v13 }
 0x487   : > { %1567 = vmatmul.mubr.msk.f32.vlgmr.msra.gmra.mxu1 %vm616_vm2, %v873_v28 }
 0x488   : > { %v1648_v30 = vpop.eup %1647  ;;  %1575 = vmatpush3.msra.mxu1 %v1042_v29  ;;  %1576 = vmatprep.mubr.msk.f32.mxu1 %vm1693_vm1, %v1692_v7 }
 0x489   : > { %1584 = vmatprep.subr.mxu1 %v1692_v7  ;;  %v1040_v31 = vmul.f32 %v1648_v30, %v1640_v15 }
 0x48b   : > { %1577 = vmatmul.mubr.msk.f32.vlgmr.msra.gmra.mxu1 %vm616_vm2, %v1040_v31 }
 0x48c   : > { %v1650_v33 = vpop.eup %1649  ;;  %1585 = vmatpush3.msra.mxu1 %v1209_v32  ;;  %1586 = vmatprep.mubr.msk.f32.mxu1 %vm1693_vm1, %v1692_v7 }
 0x48d   : > { %v1207_v34 = vmul.f32 %v1650_v33, %v1642_v17 }
 0x48f   : > { %1587 = vmatmul.mubr.msk.f32.vlgmr.msra.gmra.mxu1 %vm616_vm2, %v1207_v34 }
 0x4d4   : > { %v779_v35 = vpop.f32.mrf.mxu1 }
 0x4d6   : > { %v1558_v36 = vpop.f32.mrf.mxu1 }
 0x547   : > { %v946_v41 = vpop.f32.mrf.mxu1 }
 0x548   : > { %1285 = vrot.lane.b32.xlu1 %v946_v41, %s1701_s14 }
 0x549   : > { %v1568_v42 = vpop.f32.mrf.mxu1 }
 0x54b   : > { %v1113_v43 = vpop.f32.mrf.mxu1 }
 0x54c   : > { %1289 = vrot.lane.b32.xlu0 %v1113_v43, %s1702_s15 }
 0x54d   : > { %v1578_v44 = vpop.f32.mrf.mxu1 }
 0x54f   : > { %v1280_v45 = vpop.f32.mrf.mxu1 }
 0x550   : > { %1293 = vrot.lane.b32.xlu1 %v1280_v45, %s1703_s16 }
 0x551   : > { %v1588_v46 = vpop.f32.mrf.mxu1 }
 0x5ba   : > { %v1286_v47 = vpop.permute.xlu1 %1285 }
 0x5bb   : > { %v1296_v7 = vsel %vm616_vm2, %v779_v35, %v1286_v47 }
 0x5be   : > { %v1290_v48 = vpop.permute.xlu0 %1289 }
 0x5bf   : > { %v1298_v49 = vsel %vm1297_vm4, %v1296_v7, %v1290_v48 }
 0x5c2   : > { %v1294_v50 = vpop.permute.xlu1 %1293 }
 0x5c3   : > { %v1300_v51 = vsel %vm1299_vm5, %v1298_v49, %v1294_v50 }
 0x5c4   : > { %1598 = vmatmul.mubr.msk.f32.vlgmr.msra.gmra.mxu0 %vm418_vm0, %v1300_v51 }
 0x684   : > { %v1381_v53 = vpop.f32.mrf.mxu0 }
 0x685   : > { %v1382_v54 = vadd.f32 %v1492_v52, %v1381_v53 }
 0x686   : > { %v1599_v55 = vpop.f32.mrf.mxu0 }
 0x687   : > { %v1385_v56 = vadd.f32 %v1382_v54, %v1792_v0 }
 0x689   : > { %1386 = vst.msk [vmem:[%s413_s22] sm:$0xff] %vm418_vm0, %v1385_v56 }
 0x68a PF: > { %s22_s17 = sadd.s32 1, %s1687_s17  }
 0x68b   : > { %p19_p1 = scmp.ge.s32.totalorder %s22_s17, 4  }
 0x68d   :  { %21 = sbr.rel (!%p19_p1) target bundleno = 1 (0x1), region = 102 }
 0x692   :  { %1406 = vsyncpa [#allocation3], 1 }
 0x693   :  { %1408 = vsyncpa [#allocation3 + $0x1], 1 }

// kernel: decoder_forward.10
= control target key start
LH: loop header
LB: loop body
LE: loop exit
PB: predicated region body
PF: predicated region fallthrough
CT: control target
= control target key end

     0   :  { %s1469_s27 = smov 0   ;;  %s1627_s0 = inlined_call_operand.vmem [shape: f32[2,8,32], index: 0, kind: input, shape index: {}]   ;;  %s1628_s1 = inlined_call_operand.vmem [shape: f32[1,1,8,8], index: 1, kind: input, shape index: {}]   ;;  %s1629_s2 = inlined_call_operand.vmem [shape: f32[1,32], index: 2, kind: input, shape index: {}]   ;;  %s1630_s3 = inlined_call_operand.vmem [shape: f32[1,32], index: 3, kind: input, shape index: {}]   ;;  %s1631_s4 = inlined_call_operand.vmem [shape: f32[32,96], index: 4, kind: input, shape index: {}]   ;;  %s1632_s5 = inlined_call_operand.vmem [shape: f32[1,96], index: 5, kind: input, shape index: {}]   ;;  %s1633_s6 = inlined_call_operand.vmem [shape: f32[32,32], index: 6, kind: input, shape index: {}]   ;;  %s1634_s7 = inlined_call_operand.vmem [shape: f32[1,32], index: 7, kind: input, shape index: {}]   ;;  %s1635_s8 = inlined_call_operand.vmem [shape: f32[2,8,32], index: 8, kind: output, shape index: {}]  }
   0x1 LB: > { %s1243_s28 = sadd.s32 4294967295, %s1406_s27   ;;  %p1247_p0 = scmp.ge.s32.totalorder %s1406_s27, 1  ;;  %s1406_s27 = sphi %s1469_s27, %s18_s27  }
   0x2   : > { %p261_p1 = scmp.lt.s32.totalorder %s1406_s27, 3 }
   0x4   : > { %p262_p2 = pnand %p1247_p0, %p261_p1 }
   0x5   : > { %p293_p3 = scmp.lt.s32.totalorder (!%p262_p2), %s1243_s28, 1  ;;  %s1410_s25 = smov (!%p262_p2), 64  }
   0x6   : > { %265 = sbr.rel (%p262_p2) target bundleno = 2171 (0x87b), region = 52  ;;  %s1411_s26 = smov (!%p262_p2), 96  }
   0x7   : > { %s1412_s30 = smov (!%p262_p2), 88   ;;  %s1413_s11 = smov (!%p262_p2), 80  }
   0x8   : > { %s1414_s12 = smov (!%p262_p2), 120   ;;  %s1415_s13 = smov (!%p262_p2), 112  }
   0x9   : > { %s1416_s14 = smov (!%p262_p2), 72   ;;  %s1417_s15 = smov (!%p262_p2), 104  }
   0xa   : > { %s1418_s16 = smov (!%p262_p2), 48   ;;  %s1419_s17 = smov (!%p262_p2), 56  }
   0xb   : > { %s1637_s28 = smov (!%p293_p3, %s1243_s28), 1  ;;  %vm304_vm0 = vcmask 261120   ;;  %v336_v7 = vld [vmem:[%s1631_s4 + $0x18] sm:$0xff]  ;;  %v1408_v8 = vmov 0.0   ;;  %v335_v9 = vld [vmem:[%s1631_s4 + $0x10] sm:$0xff]  ;;  %vm1409_vm1 = vmmov 0  }
   0xc   : > { %s1248_s29 = sshll.u32 %s1637_s28, 3  ;;  %1296 = vmatprep.subr.mxu0 %v1408_v8  ;;  %1304 = vmatprep.mubr.msk.f32.mxu0 %vm1409_vm1, %v1408_v8  ;;  %v334_v10 = vld [vmem:[%s1631_s4 + $0x8] sm:$0xff]  ;;  %v333_v11 = vld [vmem:[%s1631_s4] sm:$0xff]  ;;  %vm421_vm2 = vcmask 64512   ;;  %s1420_s18 = smov 40   ;;  %vm1100_vm4 = vcmask 130048  }
   0xd   : > { %s296_s10 = scalar_lea.vmem %s1627_s0, %s1248_s29  ;;  %1297 = vmatpush3.msra.mxu0 %v336_v7  ;;  %1307 = vmatprep.subr.mxu1 %v1408_v8  ;;  %v1250_v16 = vld [vmem:[%s1629_s2] ss:$0 sm:$0xff]  ;;  %s1422_s9 = smov 16   ;;  %vm1102_vm5 = vcmask 195584  }
   0xe   : > { %v1485_v0 = vld [vmem:[%s296_s10] sm:$0xff]  ;;  %1298 = vmatprep.subr.mxu0 %v1408_v8  ;;  %1309 = vmatprep.mubr.msk.f32.mxu1 %vm1409_vm1, %v1408_v8  ;;  %s1423_s10 = smov 24  }
   0xf   : > { %v305_v1 = vsel %vm304_vm0, %v1485_v0, 0.0  ;;  %1299 = vmatpush3.msra.mxu0 %v335_v9  ;;  %v1251_v18 = vld [vmem:[%s1630_s3] ss:$0 sm:$0xff] }
  0x10   : > { %306 = vadd.xlane.f32.xlu0 %v305_v1  ;;  %1300 = vmatprep.subr.mxu0 %v1408_v8  ;;  %v1252_v21 = vld [vmem:[%s1632_s5] ss:$0 sm:$0xff] }
  0x11   : > { %1301 = vmatpush3.msra.mxu0 %v334_v10  ;;  %v1540_v27 = vld [vmem:[%s1628_s1] sm:$0xff] }
  0x12   : > { %1302 = vmatprep.subr.mxu0 %v1408_v8  ;;  %vm497_vm3 = vcmp.eq.f32.partialorder %v1540_v27, 0.0 }
  0x13   : > { %1303 = vmatpush3.msra.mxu0 %v333_v11 }
  0x14   : > { %1327 = vmatprep.subr.mxu0 %v1408_v8 }
  0x99   : > { %v307_v2 = vpop.xlane.xlu0 %306 }
  0x9a   : > { %v309_v3 = vmul.f32 0.03125, %v307_v2 }
  0x9c   : > { %v310_v4 = vsub.f32 %v1485_v0, %v309_v3 }
  0x9e   : > { %v311_v5 = vmul.f32 %v310_v4, %v310_v4 }
  0xa0   : > { %v312_v6 = vsel %vm304_vm0, %v311_v5, 0.0 }
  0xa1   : > { %313 = vadd.xlane.f32.xlu0 %v312_v6 }
 0x12a   : > { %v314_v12 = vpop.xlane.xlu0 %313 }
 0x12b   : > { %v315_v13 = vmul.f32 0.032258064, %v314_v12 }
 0x12d   : > { %v316_v14 = vadd.f32 1e-06, %v315_v13 }
 0x12f   : > { %1382 = vrsqrt.f32 %v316_v14 }
 0x13c   : > { %v1383_v15 = vpop.eup %1382 }
 0x13d   : > { %v318_v17 = vmul.f32 %v1383_v15, %v310_v4 }
 0x13f   : > { %v325_v19 = vmul.f32 %v1250_v16, %v318_v17 }
 0x141   : > { %v332_v20 = vadd.f32 %v1251_v18, %v325_v19 }
 0x143   : > { %1305 = vmatmul.mubr.msk.f32.vlgmr.msra.gmra.mxu0 %vm304_vm0, %v332_v20 }
 0x144   : > { %1329 = vmatprep.mubr.msk.f32.mxu0 %vm1409_vm1, %v1408_v8 }
 0x203   : > { %v413_v22 = vpop.f32.mrf.mxu0 }
 0x204   : > { %v1525_v23 = vadd.f32 %v1252_v21, %v413_v22 }
 0x205   : > { %v1306_v24 = vpop.f32.mrf.mxu0 }
 0x206   : > { %510 = vrot.lane.b32.xlu0 %v1525_v23, %s1410_s25  ;;  %419 = vrot.lane.b32.xlu1 %v1525_v23, %s1411_s26 }
 0x20a   : > { %588 = vrot.lane.b32.xlu0 %v1525_v23, %s1412_s30  ;;  %s1421_s30 = smov 8  }
 0x278   : > { %v420_v25 = vpop.permute.xlu1 %419  ;;  %v511_v26 = vpop.permute.xlu0 %510 }
 0x279   : > { %1308 = vmatpush3.xpose.msk.msra.mxu1 %vm421_vm2, %v420_v25 }
 0x27a   : > { %1312 = vmatprep.subr.mxu1 %v1408_v8 }
 0x27c   : > { %1310 = vmatmul.mubr.msk.f32.vlgmr.msra.gmra.mxu1 %vm421_vm2, %v1525_v23  ;;  %v589_v39 = vpop.permute.xlu0 %588 }
 0x27d   : > { %1313 = vmatpush3.msra.mxu1 %v511_v26  ;;  %1314 = vmatprep.mubr.msk.f32.mxu1 %vm1409_vm1, %v1408_v8 }
 0x27e   : > { %1317 = vmatprep.subr.mxu1 %v1408_v8 }
 0x33c   : > { %v492_v28 = vpop.f32.mrf.mxu1 }
 0x33d   : > { %v496_v29 = vmul.f32 0.35355338, %v492_v28 }
 0x33e   : > { %v1311_v30 = vpop.f32.mrf.mxu1 }
 0x33f   : > { %v498_v31 = vsel %vm497_vm3, -1e+09, %v496_v29  ;;  %v1107_v29 = vld [vmem:[%s1633_s6 + $0x18] sm:$0xff]  ;;  %v1106_v30 = vld [vmem:[%s1633_s6 + $0x10] sm:$0xff] }
 0x340   : > { %v499_v32 = vsel %vm421_vm2, %v498_v31, -inf }
 0x341   : > { %500 = vmax.xlane.f32.xlu1 %v499_v32  ;;  %v1104_v32 = vld [vmem:[%s1633_s6] sm:$0xff] }
 0x352   : > { %755 = vrot.lane.b32.xlu1 %v1525_v23, %s1413_s11 }
 0x3ca   : > { %v501_v33 = vpop.xlane.xlu1 %500 }
 0x3cb   : > { %v502_v34 = vsub.f32 %v498_v31, %v501_v33  ;;  %v1105_v31 = vld [vmem:[%s1633_s6 + $0x8] sm:$0xff] }
 0x3cd   : > { %v503_v35 = vmul.f32 1.442695, %v502_v34 }
 0x3ce   : > { %v756_v36 = vpop.permute.xlu1 %755 }
 0x3cf   : > { %1384 = vpow2.f32 %v503_v35  ;;  %1328 = vmatpush3.xpose.msk.msra.mxu0 %vm421_vm2, %v756_v36 }
 0x3d0   : > { %1337 = vmatprep.subr.mxu0 %v1408_v8 }
 0x3dc   : > { %v1385_v37 = vpop.eup %1384 }
 0x3dd   : > { %v505_v38 = vsel %vm421_vm2, %v1385_v37, 0.0 }
 0x3de   : > { %506 = vadd.xlane.f32.xlu0 %v505_v38 }
 0x3f4   : > { %586 = vrot.lane.b32.xlu0 %v1525_v23, %s1414_s12 }
 0x3f8   : > { %753 = vrot.lane.b32.xlu0 %v1525_v23, %s1415_s13 }
 0x3fc   : > { %922 = vrot.lane.b32.xlu0 %v1525_v23, %s1416_s14 }
 0x400   : > { %920 = vrot.lane.b32.xlu0 %v1525_v23, %s1417_s15  ;;  %s300_s15 = scalar_lea.vmem %s1635_s8, %s1248_s29 }
 0x467   : > { %v507_v40 = vpop.xlane.xlu0 %506 }
 0x468   : > { %1386 = vrcp.f32 %v507_v40 }
 0x46b   : > { %v587_v41 = vpop.permute.xlu0 %586 }
 0x46f   : > { %v754_v42 = vpop.permute.xlu0 %753 }
 0x470   : > { %1330 = vmatmul.mubr.msk.f32.vlgmr.msra.gmra.mxu0 %vm421_vm2, %v754_v42 }
 0x471   : > { %1339 = vmatprep.mubr.msk.f32.mxu0 %vm1409_vm1, %v1408_v8 }
 0x473   : > { %v923_v43 = vpop.permute.xlu0 %922 }
 0x474   : > { %1338 = vmatpush3.xpose.msk.msra.mxu0 %vm421_vm2, %v923_v43 }
 0x475   : > { %v1387_v44 = vpop.eup %1386  ;;  %1347 = vmatprep.subr.mxu0 %v1408_v8 }
 0x476   : > { %v509_v45 = vmul.f32 %v1387_v44, %v1385_v37  ;;  %v1266_v44 = vld [vmem:[%s1634_s7] ss:$0 sm:$0xff] }
 0x477   : > { %v921_v46 = vpop.permute.xlu0 %920 }
 0x478   : > { %1315 = vmatmul.mubr.msk.f32.vlgmr.msra.gmra.mxu1 %vm421_vm2, %v509_v45  ;;  %1340 = vmatmul.mubr.msk.f32.vlgmr.msra.gmra.mxu0 %vm421_vm2, %v921_v46 }
 0x479   : > { %1318 = vmatpush3.xpose.msk.msra.mxu1 %vm421_vm2, %v589_v39  ;;  %1319 = vmatprep.mubr.msk.f32.mxu1 %vm1409_vm1, %v1408_v8 }
 0x47a   : > { %1322 = vmatprep.subr.mxu1 %v1408_v8  ;;  %1355 = vmatprep.mubr.msk.f32.mxu0 %vm1409_vm1, %v1408_v8 }
 0x47b   : > { %1348 = vmatpush3.msra.mxu0 %v1107_v29 }
 0x47c   : > { %1320 = vmatmul.mubr.msk.f32.vlgmr.msra.gmra.mxu1 %vm421_vm2, %v587_v41  ;;  %1349 = vmatprep.subr.mxu0 %v1408_v8 }
 0x47d   : > { %1324 = vmatprep.mubr.msk.f32.mxu1 %vm1409_vm1, %v1408_v8  ;;  %1350 = vmatpush3.msra.mxu0 %v1106_v30 }
 0x47e   : > { %1351 = vmatprep.subr.mxu0 %v1408_v8 }
 0x47f   : > { %1352 = vmatpush3.msra.mxu0 %v1105_v31 }
 0x480   : > { %1353 = vmatprep.subr.mxu0 %v1408_v8 }
 0x481   : > { %1354 = vmatpush3.msra.mxu0 %v1104_v32 }
 0x530   : > { %v827_v47 = vpop.f32.mrf.mxu0 }
 0x531   : > { %v831_v48 = vmul.f32 0.35355338, %v827_v47 }
 0x532   : > { %v1331_v49 = vpop.f32.mrf.mxu0 }
 0x533   : > { %v832_v50 = vsel %vm497_vm3, -1e+09, %v831_v48 }
 0x534   : > { %v833_v51 = vsel %vm421_vm2, %v832_v50, -inf }
 0x535   : > { %834 = vmax.xlane.f32.xlu1 %v833_v51 }
 0x538   : > { %v1573_v52 = vpop.f32.mrf.mxu1  ;;  %v994_v53 = vpop.f32.mrf.mxu0 }
 0x539   : > { %v998_v57 = vmul.f32 0.35355338, %v994_v53 }
 0x53a   : > { %v1316_v54 = vpop.f32.mrf.mxu1  ;;  %v1341_v55 = vpop.f32.mrf.mxu0 }
 0x53b   : > { %v999_v62 = vsel %vm497_vm3, -1e+09, %v998_v57 }
 0x53c   : > { %v660_v56 = vpop.f32.mrf.mxu1  ;;  %v1000_v63 = vsel %vm421_vm2, %v999_v62, -inf }
 0x53d   : > { %v664_v58 = vmul.f32 0.35355338, %v660_v56 }
 0x53e   : > { %v1321_v59 = vpop.f32.mrf.mxu1 }
 0x53f   : > { %v665_v60 = vsel %vm497_vm3, -1e+09, %v664_v58 }
 0x540   : > { %v666_v61 = vsel %vm421_vm2, %v665_v60, -inf }
 0x541   : > { %667 = vmax.xlane.f32.xlu0 %v666_v61 }
 0x545   : > { %1001 = vmax.xlane.f32.xlu0 %v1000_v63 }
 0x5be   : > { %v835_v1 = vpop.xlane.xlu1 %834 }
 0x5bf   : > { %v836_v2 = vsub.f32 %v832_v50, %v835_v1 }
 0x5c1   : > { %v837_v3 = vmul.f32 1.442695, %v836_v2 }
 0x5c3   : > { %1388 = vpow2.f32 %v837_v3 }
 0x5ca   : > { %v668_v4 = vpop.xlane.xlu0 %667 }
 0x5cb   : > { %v669_v5 = vsub.f32 %v665_v60, %v668_v4 }
 0x5cd   : > { %v670_v6 = vmul.f32 1.442695, %v669_v5 }
 0x5ce   : > { %v1002_v7 = vpop.xlane.xlu0 %1001 }
 0x5cf   : > { %1390 = vpow2.f32 %v670_v6  ;;  %v1003_v9 = vsub.f32 %v999_v62, %v1002_v7 }
 0x5d0   : > { %v1389_v10 = vpop.eup %1388 }
 0x5d1   : > { %v1004_v11 = vmul.f32 1.442695, %v1003_v9  ;;  %v839_v12 = vsel %vm421_vm2, %v1389_v10, 0.0 }
 0x5d2   : > { %840 = vadd.xlane.f32.xlu0 %v839_v12 }
 0x5d3   : > { %1392 = vpow2.f32 %v1004_v11 }
 0x5dc   : > { %v1391_v13 = vpop.eup %1390 }
 0x5dd   : > { %v672_v14 = vsel %vm421_vm2, %v1391_v13, 0.0 }
 0x5de   : > { %673 = vadd.xlane.f32.xlu0 %v672_v14 }
 0x5e0   : > { %v1393_v15 = vpop.eup %1392 }
 0x5e1   : > { %v1006_v16 = vsel %vm421_vm2, %v1393_v15, 0.0 }
 0x5e2   : > { %1007 = vadd.xlane.f32.xlu1 %v1006_v16 }
 0x5f3   : > { %844 = vrot.lane.b32.xlu1 %v1525_v23, %s1418_s16 }
 0x5f4   : > { %677 = vrot.lane.b32.xlu0 %v1525_v23, %s1419_s17 }
 0x5f7   : > { %1011 = vrot.lane.b32.xlu1 %v1525_v23, %s1420_s18 }
 0x65b   : > { %v841_v17 = vpop.xlane.xlu0 %840 }
 0x667   : > { %v674_v18 = vpop.xlane.xlu0 %673 }
 0x668   : > { %1394 = vrcp.f32 %v674_v18 }
 0x669   : > { %1396 = vrcp.f32 %v841_v17 }
 0x66b   : > { %v1008_v19 = vpop.xlane.xlu1 %1007  ;;  %v678_v20 = vpop.permute.xlu0 %677 }
 0x66c   : > { %1323 = vmatpush3.msra.mxu1 %v678_v20  ;;  %1398 = vrcp.f32 %v1008_v19 }
 0x66d   : > { %1332 = vmatprep.subr.mxu1 %v1408_v8 }
 0x66f   : > { %v845_v22 = vpop.permute.xlu1 %844 }
 0x673   : > { %v1012_v27 = vpop.permute.xlu1 %1011 }
 0x675   : > { %v1395_v21 = vpop.eup %1394 }
 0x676   : > { %v676_v24 = vmul.f32 %v1395_v21, %v1391_v13  ;;  %v1397_v25 = vpop.eup %1396 }
 0x677   : > { %v843_v23 = vmul.f32 %v1397_v25, %v1389_v10 }
 0x678   : > { %1325 = vmatmul.mubr.msk.f32.vlgmr.msra.gmra.mxu1 %vm421_vm2, %v676_v24 }
 0x679   : > { %1333 = vmatpush3.msra.mxu1 %v845_v22  ;;  %1334 = vmatprep.mubr.msk.f32.mxu1 %vm1409_vm1, %v1408_v8  ;;  %v1399_v26 = vpop.eup %1398 }
 0x67a   : > { %1342 = vmatprep.subr.mxu1 %v1408_v8  ;;  %v1010_v28 = vmul.f32 %v1399_v26, %v1393_v15 }
 0x67c   : > { %1335 = vmatmul.mubr.msk.f32.vlgmr.msra.gmra.mxu1 %vm421_vm2, %v843_v23 }
 0x67d   : > { %1343 = vmatpush3.msra.mxu1 %v1012_v27  ;;  %1344 = vmatprep.mubr.msk.f32.mxu1 %vm1409_vm1, %v1408_v8 }
 0x680   : > { %1345 = vmatmul.mubr.msk.f32.vlgmr.msra.gmra.mxu1 %vm421_vm2, %v1010_v28 }
 0x738   : > { %v749_v33 = vpop.f32.mrf.mxu1 }
 0x739   : > { %1088 = vrot.lane.b32.xlu1 %v749_v33, %s1421_s30 }
 0x73a   : > { %v1326_v34 = vpop.f32.mrf.mxu1 }
 0x73c   : > { %v916_v35 = vpop.f32.mrf.mxu1 }
 0x73d   : > { %1092 = vrot.lane.b32.xlu0 %v916_v35, %s1422_s9 }
 0x73e   : > { %v1336_v36 = vpop.f32.mrf.mxu1 }
 0x740   : > { %v1083_v37 = vpop.f32.mrf.mxu1 }
 0x741   : > { %1096 = vrot.lane.b32.xlu1 %v1083_v37, %s1423_s10 }
 0x742   : > { %v1346_v38 = vpop.f32.mrf.mxu1 }
 0x7ab   : > { %v1089_v39 = vpop.permute.xlu1 %1088 }
 0x7ac   : > { %v1099_v40 = vsel %vm421_vm2, %v1573_v52, %v1089_v39 }
 0x7af   : > { %v1093_v8 = vpop.permute.xlu0 %1092 }
 0x7b0   : > { %v1101_v41 = vsel %vm1100_vm4, %v1099_v40, %v1093_v8 }
 0x7b3   : > { %v1097_v42 = vpop.permute.xlu1 %1096 }
 0x7b4   : > { %v1103_v43 = vsel %vm1102_vm5, %v1101_v41, %v1097_v42 }
 0x7b5   : > { %1356 = vmatmul.mubr.msk.f32.vlgmr.msra.gmra.mxu0 %vm304_vm0, %v1103_v43 }
 0x875   : > { %v1184_v45 = vpop.f32.mrf.mxu0 }
 0x876   : > { %v1185_v46 = vadd.f32 %v1266_v44, %v1184_v45 }
 0x877   : > { %v1357_v47 = vpop.f32.mrf.mxu0 }
 0x878   : > { %v1188_v48 = vadd.f32 %v1185_v46, %v1485_v0 }
 0x87a   : > { %1189 = vst.msk [vmem:[%s300_s15] sm:$0xff] %vm304_vm0, %v1188_v48 }
 0x87b PF: > { %s18_s27 = sadd.s32 1, %s1406_s27  }
 0x87c   : > { %p15_p4 = scmp.ge.s32.totalorder %s18_s27, 4  }
 0x87e   :  { %17 = sbr.rel (!%p15_p4) target bundleno = 1 (0x1), region = 82 }

// kernel: decoder_forward.13
= control target key start
LH: loop header
LB: loop body
LE: loop exit
PB: predicated region body
PF: predicated region fallthrough
CT: control target
= control target key end

     0   :  { %vm19_vm0 = vcmask 261120   ;;  %s156_s0 = inlined_call_operand.vmem [shape: f32[16,32], index: 0, kind: input, shape index: {}]   ;;  %s157_s1 = inlined_call_operand.vmem [shape: f32[1,32], index: 1, kind: input, shape index: {}]   ;;  %s158_s2 = inlined_call_operand.vmem [shape: f32[1,32], index: 2, kind: input, shape index: {}]   ;;  %s159_s3 = inlined_call_operand.hbm [shape: f32[16,32], index: 3, kind: output, shape index: {}]  }
   0x1   :  { %v15_v0 = vld [vmem:[%s156_s0] sm:$0xff]  ;;  %v16_v1 = vld [vmem:[%s156_s0 + $0x8] sm:$0xff] }
   0x2   :  { %8 = vsyncpa [#allocation3], 0  ;;  %v20_v2 = vsel %vm19_vm0, %v15_v0, 0.0  ;;  %v23_v3 = vsel %vm19_vm0, %v16_v1, 0.0  ;;  %v81_v21 = vld [vmem:[%s157_s1] ss:$0 sm:$0xff] }
   0x3   :  { %21 = vadd.xlane.f32.xlu0 %v20_v2  ;;  %v82_v23 = vld [vmem:[%s158_s2] ss:$0 sm:$0xff]  ;;  %s112_s19 = smov [#allocation2]  }
   0x4   :  { %s70_s20 = sshll.u32 %s112_s19, 4  ;;  %s71_s20 = int_to_ptr.vmem [resolvable:$true] %s70_s20 }
   0x5   :  { %s90_s21 = scalar_lea.vmem %s71_s20, 256  ;;  %p95_p1 = scmp.lt.s32.totalorder %s71_s20, %s71_s20 }
   0x6   :  { %p91_p0 = scmp.ne.s32.totalorder %s71_s20, %s90_s21  ;;  %p96_p2 = scmp.lt.s32.totalorder %s90_s21, %s90_s21 }
   0x7   :  { %24 = vadd.xlane.f32.xlu0 %v23_v3 }
   0x8   :  { %p97_p3 = por %p96_p2, %p95_p1 }
   0xa   :  { %p98_p4 = pnand %p97_p3, %p91_p0 }
  0x8c   :  { %v22_v4 = vpop.xlane.xlu0 %21 }
  0x8d   :  { %v27_v5 = vmul.f32 0.03125, %v22_v4 }
  0x8f   :  { %v29_v6 = vsub.f32 %v15_v0, %v27_v5 }
  0x90   :  { %v25_v7 = vpop.xlane.xlu0 %24 }
  0x91   :  { %v28_v8 = vmul.f32 0.03125, %v25_v7  ;;  %v31_v9 = vmul.f32 %v29_v6, %v29_v6 }
  0x93   :  { %v30_v10 = vsub.f32 %v16_v1, %v28_v8  ;;  %v33_v11 = vsel %vm19_vm0, %v31_v9, 0.0 }
  0x94   :  { %34 = vadd.xlane.f32.xlu1 %v33_v11 }
  0x95   :  { %v32_v12 = vmul.f32 %v30_v10, %v30_v10 }
  0x97   :  { %v36_v13 = vsel %vm19_vm0, %v32_v12, 0.0 }
  0x98   :  { %37 = vadd.xlane.f32.xlu1 %v36_v13 }
 0x11d   :  { %v35_v14 = vpop.xlane.xlu1 %34 }
 0x11e   :  { %v39_v15 = vmul.f32 0.032258064, %v35_v14 }
 0x120   :  { %v41_v16 = vadd.f32 1e-06, %v39_v15 }
 0x121   :  { %v38_v17 = vpop.xlane.xlu1 %37 }
 0x122   :  { %86 = vrsqrt.f32 %v41_v16  ;;  %v40_v18 = vmul.f32 0.032258064, %v38_v17 }
 0x124   :  { %v42_v19 = vadd.f32 1e-06, %v40_v18 }
 0x126   :  { %88 = vrsqrt.f32 %v42_v19 }
 0x12f   :  { %v87_v20 = vpop.eup %86 }
 0x130   :  { %v45_v22 = vmul.f32 %v87_v20, %v29_v6 }
 0x132   :  { %v53_v24 = vmul.f32 %v81_v21, %v45_v22 }
 0x133   :  { %v89_v25 = vpop.eup %88 }
 0x134   :  { %v46_v26 = vmul.f32 %v89_v25, %v30_v10  ;;  %v61_v27 = vadd.f32 %v82_v23, %v53_v24 }
 0x136   :  { %v54_v28 = vmul.f32 %v81_v21, %v46_v26  ;;  %63 = vst.msk [vmem:[#allocation2] sm:$0xff] %vm19_vm0, %v61_v27 }
 0x138   :  { %v62_v29 = vadd.f32 %v82_v23, %v54_v28 }
 0x13a   :  { %64 = vst.msk [vmem:[#allocation2 + $0x8] sm:$0xff] %vm19_vm0, %v62_v29 }
 0x13b   :  { %101 = shalt.err (!%p98_p4)
}
 0x13c   :  { %s113_s1 = smov 128   ;;  %s114_s2 = smov 8  }
 0x13d   :  { %76 = dma.vmem_to_hbm [thread:$0]  %s71_s20, 256, %s159_s3, [#allocation3], %s113_s1, %s113_s1, %s114_s2  }
 0x13e   :  { %110 = dma.done.wait [#allocation3], 256  }
 0x13f   :  { %111 = vsyncadd [#allocation3], 4294967040 }
 0x140   :  { %80 = vsyncpa [#allocation3], 1 }

// kernel: decoder_forward.11
= control target key start
LH: loop header
LB: loop body
LE: loop exit
PB: predicated region body
PF: predicated region fallthrough
CT: control target
= control target key end

     0   :  { %s1689_s17 = smov 0   ;;  %s1856_s0 = inlined_call_operand.vmem [shape: f32[2,8,32], index: 0, kind: input, shape index: {}]   ;;  %s1857_s1 = inlined_call_operand.vmem [shape: f32[2,8,32], index: 1, kind: input, shape index: {}]   ;;  %s1858_s2 = inlined_call_operand.vmem [shape: f32[1,1,8,8], index: 2, kind: input, shape index: {}]   ;;  %s1859_s3 = inlined_call_operand.vmem [shape: f32[1,32], index: 3, kind: input, shape index: {}]   ;;  %s1860_s4 = inlined_call_operand.vmem [shape: f32[1,32], index: 4, kind: input, shape index: {}]   ;;  %s1861_s5 = inlined_call_operand.vmem [shape: f32[32,32], index: 5, kind: input, shape index: {}]   ;;  %s1862_s6 = inlined_call_operand.vmem [shape: f32[1,32], index: 6, kind: input, shape index: {}]   ;;  %s1863_s7 = inlined_call_operand.vmem [shape: f32[32,64], index: 7, kind: input, shape index: {}]   ;;  %s1864_s8 = inlined_call_operand.vmem [shape: f32[1,64], index: 8, kind: input, shape index: {}]   ;;  %s1865_s9 = inlined_call_operand.vmem [shape: f32[32,32], index: 9, kind: input, shape index: {}]   ;;  %s1866_s10 = inlined_call_operand.vmem [shape: f32[1,32], index: 10, kind: input, shape index: {}]   ;;  %s1867_s11 = inlined_call_operand.vmem [shape: f32[2,8,32], index: 11, kind: output, shape index: {}]  }
   0x1 LB: > { %s1437_s18 = sadd.s32 4294967295, %s1615_s17   ;;  %p1441_p0 = scmp.ge.s32.totalorder %s1615_s17, 1  ;;  %s1615_s17 = sphi %s1689_s17, %s21_s17  }
   0x2   : > { %p345_p1 = scmp.lt.s32.totalorder %s1615_s17, 3 }
   0x4   : > { %p346_p2 = pnand %p1441_p0, %p345_p1 }
   0x5   : > { %p387_p3 = scmp.lt.s32.totalorder (!%p346_p2), %s1437_s18, 1  ;;  %s1619_s12 = smov (!%p346_p2), 120  }
   0x6   : > { %349 = sbr.rel (%p346_p2) target bundleno = 1656 (0x678), region = 64  ;;  %s1620_s13 = smov (!%p346_p2), 112  }
   0x7   : > { %s1622_s21 = smov (!%p346_p2), 88   ;;  %s1624_s23 = smov (!%p346_p2), 80  }
   0x8   : > { %s1625_s24 = smov (!%p346_p2), 72   ;;  %s1627_s15 = smov (!%p346_p2), 16  }
   0x9   : > { %s1628_s16 = smov (!%p346_p2), 24  }
   0xb   : > { %s1869_s18 = smov (!%p387_p3, %s1437_s18), 1  ;;  %vm403_vm0 = vcmask 261120   ;;  %v1617_v7 = vmov 0.0   ;;  %v519_v8 = vld [vmem:[%s1863_s7 + $0x18] sm:$0xff]  ;;  %v518_v9 = vld [vmem:[%s1863_s7 + $0x10] sm:$0xff]  ;;  %vm1618_vm1 = vmmov 0  }
   0xc   : > { %s1697_s19 = sshll.u32 %s1869_s18, 3  ;;  %1509 = vmatprep.subr.mxu1 %v1617_v7  ;;  %1498 = vmatprep.subr.mxu0 %v1617_v7  ;;  %v435_v10 = vld [vmem:[%s1861_s5 + $0x18] sm:$0xff]  ;;  %v517_v11 = vld [vmem:[%s1863_s7 + $0x8] sm:$0xff]  ;;  %v434_v12 = vld [vmem:[%s1861_s5 + $0x10] sm:$0xff]  ;;  %vm601_vm2 = vcmask 64512   ;;  %vm1282_vm4 = vcmask 130048  }
   0xd   : > { %s390_s22 = scalar_lea.vmem %s1856_s0, %s1697_s19  ;;  %1510 = vmatpush3.msra.mxu1 %v519_v8  ;;  %1517 = vmatprep.mubr.msk.f32.mxu1 %vm1618_vm1, %v1617_v7  ;;  %s394_s14 = scalar_lea.vmem %s1857_s1, %s1697_s19  ;;  %v433_v13 = vld [vmem:[%s1861_s5 + $0x8] sm:$0xff]  ;;  %v516_v14 = vld [vmem:[%s1863_s7] sm:$0xff]  ;;  %vm1284_vm5 = vcmask 195584  }
   0xe   : > { %v1703_v0 = vld [vmem:[%s390_s22] sm:$0xff]  ;;  %1511 = vmatprep.subr.mxu1 %v1617_v7  ;;  %1499 = vmatpush3.msra.mxu0 %v435_v10  ;;  %s1623_s22 = smov 96  }
   0xf   : > { %v404_v1 = vsel %vm403_vm0, %v1703_v0, 0.0  ;;  %1512 = vmatpush3.msra.mxu1 %v518_v9  ;;  %1500 = vmatprep.subr.mxu0 %v1617_v7  ;;  %v400_v15 = vld [vmem:[%s394_s14] sm:$0xff]  ;;  %s1621_s14 = smov 104  }
  0x10   : > { %405 = vadd.xlane.f32.xlu0 %v404_v1  ;;  %1513 = vmatprep.subr.mxu1 %v1617_v7  ;;  %v432_v16 = vld [vmem:[%s1861_s5] sm:$0xff] }
  0x11   : > { %1501 = vmatpush3.msra.mxu0 %v434_v12  ;;  %1514 = vmatpush3.msra.mxu1 %v517_v11  ;;  %v1445_v21 = vld [vmem:[%s1859_s3] ss:$0 sm:$0xff] }
  0x12   : > { %1502 = vmatprep.subr.mxu0 %v1617_v7  ;;  %1515 = vmatprep.subr.mxu1 %v1617_v7  ;;  %v1446_v23 = vld [vmem:[%s1860_s4] ss:$0 sm:$0xff] }
  0x13   : > { %1503 = vmatpush3.msra.mxu0 %v433_v13  ;;  %1516 = vmatpush3.msra.mxu1 %v516_v14  ;;  %v1449_v26 = vld [vmem:[%s1864_s8] ss:$0 sm:$0xff] }
  0x14   : > { %1504 = vmatprep.subr.mxu0 %v1617_v7  ;;  %1518 = vmatmul.mubr.msk.f32.vlgmr.msra.gmra.mxu1 %vm403_vm0, %v400_v15  ;;  %v1447_v31 = vld [vmem:[%s1862_s6] ss:$0 sm:$0xff] }
  0x15   : > { %1505 = vmatpush3.msra.mxu0 %v432_v16  ;;  %1506 = vmatprep.mubr.msk.f32.mxu0 %vm1618_vm1, %v1617_v7  ;;  %v600_v40 = vld [vmem:[%s1858_s2] sm:$0xff] }
  0x16   : > { %1520 = vmatprep.subr.mxu1 %v1617_v7  ;;  %1522 = vmatprep.mubr.msk.f32.mxu1 %vm1618_vm1, %v1617_v7  ;;  %vm679_vm3 = vcmp.eq.f32.partialorder %v600_v40, 0.0  ;;  %v1286_v40 = vld [vmem:[%s1865_s9] sm:$0xff] }
  0x17   : > { %1530 = vmatprep.subr.mxu0 %v1617_v7 }
  0x99   : > { %v406_v2 = vpop.xlane.xlu0 %405 }
  0x9a   : > { %v408_v3 = vmul.f32 0.03125, %v406_v2 }
  0x9c   : > { %v409_v4 = vsub.f32 %v1703_v0, %v408_v3 }
  0x9e   : > { %v410_v5 = vmul.f32 %v409_v4, %v409_v4 }
  0xa0   : > { %v411_v6 = vsel %vm403_vm0, %v410_v5, 0.0 }
  0xa1   : > { %412 = vadd.xlane.f32.xlu0 %v411_v6 }
  0xd4   : > { %v596_v27 = vpop.f32.mrf.mxu1 }
  0xd5   : > { %v1766_v28 = vadd.f32 %v1449_v26, %v596_v27 }
  0xd6   : > { %v1519_v29 = vpop.f32.mrf.mxu1 }
  0xd7   : > { %770 = vrot.lane.b32.xlu1 %v1766_v28, %s1619_s12  ;;  %1521 = vmatpush3.xpose.msk.msra.mxu1 %vm601_vm2, %v1766_v28 }
  0xd8   : > { %937 = vrot.lane.b32.xlu0 %v1766_v28, %s1620_s13  ;;  %1525 = vmatprep.subr.mxu1 %v1617_v7 }
  0xdb   : > { %1104 = vrot.lane.b32.xlu1 %v1766_v28, %s1621_s14 }
 0x12a   : > { %v413_v17 = vpop.xlane.xlu0 %412 }
 0x12b   : > { %v414_v18 = vmul.f32 0.032258064, %v413_v17 }
 0x12d   : > { %v415_v19 = vadd.f32 1e-06, %v414_v18 }
 0x12f   : > { %1591 = vrsqrt.f32 %v415_v19 }
 0x13c   : > { %v1592_v20 = vpop.eup %1591 }
 0x13d   : > { %v417_v22 = vmul.f32 %v1592_v20, %v409_v4 }
 0x13f   : > { %v424_v24 = vmul.f32 %v1445_v21, %v417_v22 }
 0x141   : > { %v431_v25 = vadd.f32 %v1446_v23, %v424_v24 }
 0x143   : > { %1507 = vmatmul.mubr.msk.f32.vlgmr.msra.gmra.mxu0 %vm403_vm0, %v431_v25 }
 0x144   : > { %1532 = vmatprep.mubr.msk.f32.mxu0 %vm1618_vm1, %v1617_v7 }
 0x149   : > { %v771_v30 = vpop.permute.xlu1 %770 }
 0x14a   : > { %1531 = vmatpush3.xpose.msk.msra.mxu0 %vm601_vm2, %v771_v30  ;;  %v938_v37 = vpop.permute.xlu0 %937 }
 0x14b   : > { %1540 = vmatprep.subr.mxu0 %v1617_v7 }
 0x14d   : > { %v1105_v35 = vpop.permute.xlu1 %1104 }
 0x203   : > { %v512_v32 = vpop.f32.mrf.mxu0 }
 0x204   : > { %v513_v33 = vadd.f32 %v1447_v31, %v512_v32 }
 0x205   : > { %v1508_v34 = vpop.f32.mrf.mxu0 }
 0x206   : > { %768 = vrot.lane.b32.xlu1 %v513_v33, %s1619_s12  ;;  %1523 = vmatmul.mubr.msk.f32.vlgmr.msra.gmra.mxu1 %vm601_vm2, %v513_v33 }
 0x207   : > { %1527 = vmatprep.mubr.msk.f32.mxu1 %vm1618_vm1, %v1617_v7 }
 0x20a   : > { %935 = vrot.lane.b32.xlu1 %v513_v33, %s1620_s13 }
 0x20e   : > { %1102 = vrot.lane.b32.xlu1 %v513_v33, %s1621_s14  ;;  %s1626_s14 = smov 8  }
 0x278   : > { %v769_v36 = vpop.permute.xlu1 %768 }
 0x279   : > { %1533 = vmatmul.mubr.msk.f32.vlgmr.msra.gmra.mxu0 %vm601_vm2, %v769_v36 }
 0x27a   : > { %1541 = vmatpush3.xpose.msk.msra.mxu0 %vm601_vm2, %v938_v37  ;;  %1542 = vmatprep.mubr.msk.f32.mxu0 %vm1618_vm1, %v1617_v7  ;;  %v1289_v37 = vld [vmem:[%s1865_s9 + $0x18] sm:$0xff] }
 0x27b   : > { %1550 = vmatprep.subr.mxu0 %v1617_v7 }
 0x27c   : > { %v936_v38 = vpop.permute.xlu1 %935 }
 0x27d   : > { %1543 = vmatmul.mubr.msk.f32.vlgmr.msra.gmra.mxu0 %vm601_vm2, %v936_v38  ;;  %v1288_v38 = vld [vmem:[%s1865_s9 + $0x10] sm:$0xff] }
 0x27e   : > { %1551 = vmatpush3.xpose.msk.msra.mxu0 %vm601_vm2, %v1105_v35  ;;  %1552 = vmatprep.mubr.msk.f32.mxu0 %vm1618_vm1, %v1617_v7 }
 0x27f   : > { %1560 = vmatprep.subr.mxu0 %v1617_v7 }
 0x280   : > { %v1103_v39 = vpop.permute.xlu1 %1102 }
 0x281   : > { %1553 = vmatmul.mubr.msk.f32.vlgmr.msra.gmra.mxu0 %vm601_vm2, %v1103_v39  ;;  %v1287_v39 = vld [vmem:[%s1865_s9 + $0x8] sm:$0xff] }
 0x282   : > { %1568 = vmatprep.mubr.msk.f32.mxu0 %vm1618_vm1, %v1617_v7  ;;  %1561 = vmatpush3.msra.mxu0 %v1289_v37 }
 0x283   : > { %1562 = vmatprep.subr.mxu0 %v1617_v7 }
 0x284   : > { %1563 = vmatpush3.msra.mxu0 %v1288_v38 }
 0x285   : > { %1564 = vmatprep.subr.mxu0 %v1617_v7 }
 0x286   : > { %1565 = vmatpush3.msra.mxu0 %v1287_v39 }
 0x287   : > { %1566 = vmatprep.subr.mxu0 %v1617_v7 }
 0x288   : > { %1567 = vmatpush3.msra.mxu0 %v1286_v40 }
 0x2c6   : > { %v674_v41 = vpop.f32.mrf.mxu1 }
 0x2c7   : > { %v678_v42 = vmul.f32 0.35355338, %v674_v41 }
 0x2c8   : > { %v1524_v43 = vpop.f32.mrf.mxu1 }
 0x2c9   : > { %v680_v44 = vsel %vm679_vm3, -1e+09, %v678_v42 }
 0x2ca   : > { %v681_v45 = vsel %vm601_vm2, %v680_v44, -inf }
 0x2cb   : > { %682 = vmax.xlane.f32.xlu1 %v681_v45 }
 0x339   : > { %v842_v46 = vpop.f32.mrf.mxu0 }
 0x33a   : > { %v846_v47 = vmul.f32 0.35355338, %v842_v46 }
 0x33b   : > { %v1534_v48 = vpop.f32.mrf.mxu0 }
 0x33c   : > { %v847_v49 = vsel %vm679_vm3, -1e+09, %v846_v47 }
 0x33d   : > { %v1009_v50 = vpop.f32.mrf.mxu0  ;;  %v848_v51 = vsel %vm601_vm2, %v847_v49, -inf }
 0x33e   : > { %v1013_v52 = vmul.f32 0.35355338, %v1009_v50  ;;  %849 = vmax.xlane.f32.xlu0 %v848_v51 }
 0x33f   : > { %v1544_v53 = vpop.f32.mrf.mxu0 }
 0x340   : > { %v1014_v54 = vsel %vm679_vm3, -1e+09, %v1013_v52  ;;  %v1463_v52 = vld [vmem:[%s1866_s10] ss:$0 sm:$0xff] }
 0x341   : > { %v1176_v55 = vpop.f32.mrf.mxu0  ;;  %v1015_v56 = vsel %vm601_vm2, %v1014_v54, -inf }
 0x342   : > { %v1180_v57 = vmul.f32 0.35355338, %v1176_v55  ;;  %1016 = vmax.xlane.f32.xlu1 %v1015_v56 }
 0x343   : > { %v1554_v58 = vpop.f32.mrf.mxu0 }
 0x344   : > { %v1181_v59 = vsel %vm679_vm3, -1e+09, %v1180_v57 }
 0x345   : > { %v1182_v60 = vsel %vm601_vm2, %v1181_v59, -inf }
 0x346   : > { %1183 = vmax.xlane.f32.xlu1 %v1182_v60 }
 0x354   : > { %v683_v61 = vpop.xlane.xlu1 %682 }
 0x355   : > { %v684_v62 = vsub.f32 %v680_v44, %v683_v61 }
 0x357   : > { %v685_v63 = vmul.f32 1.442695, %v684_v62  ;;  %859 = vrot.lane.b32.xlu1 %v1766_v28, %s1622_s21 }
 0x359   : > { %1593 = vpow2.f32 %v685_v63 }
 0x366   : > { %v1594_v1 = vpop.eup %1593 }
 0x367   : > { %v687_v2 = vsel %vm601_vm2, %v1594_v1, 0.0 }
 0x368   : > { %688 = vadd.xlane.f32.xlu0 %v687_v2 }
 0x37e   : > { %692 = vrot.lane.b32.xlu0 %v1766_v28, %s1623_s22 }
 0x3c7   : > { %v850_v3 = vpop.xlane.xlu0 %849 }
 0x3c8   : > { %v851_v4 = vsub.f32 %v847_v49, %v850_v3 }
 0x3ca   : > { %v852_v5 = vmul.f32 1.442695, %v851_v4 }
 0x3cb   : > { %v1017_v6 = vpop.xlane.xlu1 %1016 }
 0x3cc   : > { %1595 = vpow2.f32 %v852_v5  ;;  %v1018_v8 = vsub.f32 %v1014_v54, %v1017_v6 }
 0x3ce   : > { %v1019_v9 = vmul.f32 1.442695, %v1018_v8 }
 0x3cf   : > { %v1184_v10 = vpop.xlane.xlu1 %1183 }
 0x3d0   : > { %1597 = vpow2.f32 %v1019_v9  ;;  %v1185_v11 = vsub.f32 %v1181_v59, %v1184_v10 }
 0x3d2   : > { %v1186_v12 = vmul.f32 1.442695, %v1185_v11 }
 0x3d3   : > { %v860_v23 = vpop.permute.xlu1 %859 }
 0x3d4   : > { %1599 = vpow2.f32 %v1186_v12 }
 0x3d9   : > { %v1596_v13 = vpop.eup %1595 }
 0x3da   : > { %v854_v14 = vsel %vm601_vm2, %v1596_v13, 0.0 }
 0x3db   : > { %855 = vadd.xlane.f32.xlu1 %v854_v14 }
 0x3dd   : > { %v1598_v15 = vpop.eup %1597 }
 0x3de   : > { %v1021_v16 = vsel %vm601_vm2, %v1598_v15, 0.0 }
 0x3df   : > { %1022 = vadd.xlane.f32.xlu0 %v1021_v16 }
 0x3e1   : > { %v1600_v17 = vpop.eup %1599 }
 0x3e2   : > { %v1188_v18 = vsel %vm601_vm2, %v1600_v17, 0.0 }
 0x3e3   : > { %1189 = vadd.xlane.f32.xlu1 %v1188_v18 }
 0x3f1   : > { %v689_v19 = vpop.xlane.xlu0 %688 }
 0x3f2   : > { %1601 = vrcp.f32 %v689_v19 }
 0x3f4   : > { %1026 = vrot.lane.b32.xlu1 %v1766_v28, %s1624_s23  ;;  %s398_s23 = scalar_lea.vmem %s1867_s11, %s1697_s19 }
 0x3f5   : > { %1193 = vrot.lane.b32.xlu0 %v1766_v28, %s1625_s24  ;;  %v693_v20 = vpop.permute.xlu0 %692 }
 0x3f6   : > { %1526 = vmatpush3.msra.mxu1 %v693_v20 }
 0x3f7   : > { %1535 = vmatprep.subr.mxu1 %v1617_v7 }
 0x3ff   : > { %v1602_v21 = vpop.eup %1601 }
 0x400   : > { %v691_v22 = vmul.f32 %v1602_v21, %v1594_v1 }
 0x402   : > { %1528 = vmatmul.mubr.msk.f32.vlgmr.msra.gmra.mxu1 %vm601_vm2, %v691_v22 }
 0x403   : > { %1536 = vmatpush3.msra.mxu1 %v860_v23  ;;  %1537 = vmatprep.mubr.msk.f32.mxu1 %vm1618_vm1, %v1617_v7 }
 0x404   : > { %1545 = vmatprep.subr.mxu1 %v1617_v7 }
 0x464   : > { %v856_v24 = vpop.xlane.xlu1 %855 }
 0x465   : > { %1603 = vrcp.f32 %v856_v24 }
 0x468   : > { %v1023_v25 = vpop.xlane.xlu0 %1022 }
 0x469   : > { %1605 = vrcp.f32 %v1023_v25 }
 0x46c   : > { %v1190_v26 = vpop.xlane.xlu1 %1189  ;;  %v1194_v32 = vpop.permute.xlu0 %1193 }
 0x46d   : > { %1607 = vrcp.f32 %v1190_v26 }
 0x470   : > { %v1027_v29 = vpop.permute.xlu1 %1026 }
 0x472   : > { %v1604_v27 = vpop.eup %1603 }
 0x473   : > { %v858_v28 = vmul.f32 %v1604_v27, %v1596_v13 }
 0x475   : > { %1538 = vmatmul.mubr.msk.f32.vlgmr.msra.gmra.mxu1 %vm601_vm2, %v858_v28 }
 0x476   : > { %v1606_v30 = vpop.eup %1605  ;;  %1546 = vmatpush3.msra.mxu1 %v1027_v29  ;;  %1547 = vmatprep.mubr.msk.f32.mxu1 %vm1618_vm1, %v1617_v7 }
 0x477   : > { %1555 = vmatprep.subr.mxu1 %v1617_v7  ;;  %v1025_v31 = vmul.f32 %v1606_v30, %v1598_v15 }
 0x479   : > { %1548 = vmatmul.mubr.msk.f32.vlgmr.msra.gmra.mxu1 %vm601_vm2, %v1025_v31 }
 0x47a   : > { %v1608_v33 = vpop.eup %1607  ;;  %1556 = vmatpush3.msra.mxu1 %v1194_v32  ;;  %1557 = vmatprep.mubr.msk.f32.mxu1 %vm1618_vm1, %v1617_v7 }
 0x47b   : > { %v1192_v34 = vmul.f32 %v1608_v33, %v1600_v17 }
 0x47d   : > { %1558 = vmatmul.mubr.msk.f32.vlgmr.msra.gmra.mxu1 %vm601_vm2, %v1192_v34 }
 0x4c2   : > { %v764_v35 = vpop.f32.mrf.mxu1 }
 0x4c4   : > { %v1529_v36 = vpop.f32.mrf.mxu1 }
 0x535   : > { %v931_v41 = vpop.f32.mrf.mxu1 }
 0x536   : > { %1270 = vrot.lane.b32.xlu1 %v931_v41, %s1626_s14 }
 0x537   : > { %v1539_v42 = vpop.f32.mrf.mxu1 }
 0x539   : > { %v1098_v43 = vpop.f32.mrf.mxu1 }
 0x53a   : > { %1274 = vrot.lane.b32.xlu0 %v1098_v43, %s1627_s15 }
 0x53b   : > { %v1549_v44 = vpop.f32.mrf.mxu1 }
 0x53d   : > { %v1265_v45 = vpop.f32.mrf.mxu1 }
 0x53e   : > { %1278 = vrot.lane.b32.xlu1 %v1265_v45, %s1628_s16 }
 0x53f   : > { %v1559_v46 = vpop.f32.mrf.mxu1 }
 0x5a8   : > { %v1271_v47 = vpop.permute.xlu1 %1270 }
 0x5a9   : > { %v1281_v48 = vsel %vm601_vm2, %v764_v35, %v1271_v47 }
 0x5ac   : > { %v1275_v7 = vpop.permute.xlu0 %1274 }
 0x5ad   : > { %v1283_v49 = vsel %vm1282_vm4, %v1281_v48, %v1275_v7 }
 0x5b0   : > { %v1279_v50 = vpop.permute.xlu1 %1278 }
 0x5b1   : > { %v1285_v51 = vsel %vm1284_vm5, %v1283_v49, %v1279_v50 }
 0x5b2   : > { %1569 = vmatmul.mubr.msk.f32.vlgmr.msra.gmra.mxu0 %vm403_vm0, %v1285_v51 }
 0x672   : > { %v1366_v53 = vpop.f32.mrf.mxu0 }
 0x673   : > { %v1367_v54 = vadd.f32 %v1463_v52, %v1366_v53 }
 0x674   : > { %v1570_v55 = vpop.f32.mrf.mxu0 }
 0x675   : > { %v1370_v56 = vadd.f32 %v1367_v54, %v1703_v0 }
 0x677   : > { %1371 = vst.msk [vmem:[%s398_s23] sm:$0xff] %vm403_vm0, %v1370_v56 }
 0x678 PF: > { %s21_s17 = sadd.s32 1, %s1615_s17  }
 0x679   : > { %p18_p4 = scmp.ge.s32.totalorder %s21_s17, 4  }
 0x67b   :  { %20 = sbr.rel (!%p18_p4) target bundleno = 1 (0x1), region = 97 }

</bundles_post_ra>
